<compile_context>
chip_gen: v7x
topology: tpu7x:2x2x1
jax: 0.10.0
libtpu: 0.0.40
codegen_flags: <defaults>
</compile_context>

<pallas_src>
import functools
import math

import jax
import jax.numpy as jnp
from jax.experimental import pallas as pl
from jax.experimental.pallas import tpu as pltpu


# ----------------------------------------------------------------------------
# Pallas kernels
# ----------------------------------------------------------------------------

def _matmul_kernel(x_ref, w_ref, b_ref, o_ref, *, relu):
    """Single-shot (full-K) matmul with fused bias and optional ReLU.

    Operands are bf16, accumulation + epilogue in f32.
    """
    y = jnp.dot(x_ref[...], w_ref[...], preferred_element_type=jnp.float32)
    y = y + b_ref[...]
    if relu:
        y = jnp.maximum(y, 0.0)
    o_ref[...] = y.astype(o_ref.dtype)


def _max4_kernel(a_ref, b_ref, c_ref, d_ref, o_ref):
    """Elementwise max of the four corners of every 2x2 pooling window."""
    o_ref[...] = jnp.maximum(jnp.maximum(a_ref[...], b_ref[...]),
                             jnp.maximum(c_ref[...], d_ref[...]))


# ----------------------------------------------------------------------------
# Pallas wrappers
# ----------------------------------------------------------------------------

def _round_up(x, m):
    return (x + m - 1) // m * m


def pallas_matmul(x, w, bias=None, relu=False, tm_max=128, tn_max=128):
    """out = relu?(x @ w + bias) on the MXU.  bf16 operands, f32 epilogue."""
    M, K = x.shape
    Kw, N = w.shape
    assert K == Kw

    xb = x.astype(jnp.bfloat16)
    wb = w.astype(jnp.bfloat16)
    if bias is None:
        bias = jnp.zeros((N,), jnp.float32)
    b2 = bias.astype(jnp.float32).reshape(1, N)

    # Single full-extent K block; pad K to a lane multiple for a clean MXU
    # contraction (only K=39 and K=576 actually get padded in this network).
    Kp = _round_up(K, 128)
    if Kp != K:
        xb = jnp.pad(xb, ((0, 0), (0, Kp - K)))
        wb = jnp.pad(wb, ((0, Kp - K), (0, 0)))

    # Shape-aware M/N tiling: full-extent blocks (no padding) for small dims.
    if M >= tm_max:
        tm = tm_max
        Mp = _round_up(M, tm)
        if Mp != M:
            xb = jnp.pad(xb, ((0, Mp - M), (0, 0)))
    else:
        tm, Mp = M, M
    if N >= tn_max:
        tn = tn_max
        Np = _round_up(N, tn)
        if Np != N:
            wb = jnp.pad(wb, ((0, 0), (0, Np - N)))
            b2 = jnp.pad(b2, ((0, 0), (0, Np - N)))
    else:
        tn, Np = N, N

    grid = (Mp // tm, Np // tn)
    out = pl.pallas_call(
        functools.partial(_matmul_kernel, relu=relu),
        out_shape=jax.ShapeDtypeStruct((Mp, Np), jnp.float32),
        grid_spec=pltpu.PrefetchScalarGridSpec(
            num_scalar_prefetch=0,
            grid=grid,
            in_specs=[
                pl.BlockSpec((tm, Kp), lambda i, j: (i, 0)),
                pl.BlockSpec((Kp, tn), lambda i, j: (0, j)),
                pl.BlockSpec((1, tn), lambda i, j: (0, j)),
            ],
            out_specs=pl.BlockSpec((tm, tn), lambda i, j: (i, j)),
        ),
        compiler_params=pltpu.CompilerParams(
            dimension_semantics=("parallel", "parallel")),
    )(xb, wb, b2)

    if (Mp, Np) != (M, N):
        out = out[:M, :N]
    return out


def pallas_maxpool2x2(x):
    """2x2 / stride-2 max pool.  x: NHWC -> NHWC with halved spatial dims."""
    N, H, W, C = x.shape
    Ho, Wo = H // 2, W // 2
    r = x.reshape(N, Ho, 2, Wo, 2, C)
    corners = (r[:, :, 0, :, 0, :], r[:, :, 0, :, 1, :],
               r[:, :, 1, :, 0, :], r[:, :, 1, :, 1, :])

    total = N * Ho * Wo * C
    if total % 1024 == 0:
        rows, cols = total // 128, 128          # lane-dense, unmasked stores
    else:
        rows, cols = N * Ho * Wo, C             # full-extent block fallback
    flat = [c_.reshape(rows, cols) for c_ in corners]

    out = pl.pallas_call(
        _max4_kernel,
        out_shape=jax.ShapeDtypeStruct((rows, cols), x.dtype),
        grid=(1,),
        in_specs=[pl.BlockSpec((rows, cols), lambda i: (0, 0))] * 4,
        out_specs=pl.BlockSpec((rows, cols), lambda i: (0, 0)),
    )(*flat)
    return out.reshape(N, Ho, Wo, C)


# ----------------------------------------------------------------------------
# Conv2d via im2col + Pallas matmul
# ----------------------------------------------------------------------------

def conv2d(x, w, b=None, stride=(1, 1), padding=(0, 0), relu=False):
    """x: NHWC, w: OIHW (PyTorch layout).  Returns NHWC (float32)."""
    N, H, W, Cin = x.shape
    Cout, Cin2, kh, kw = w.shape
    assert Cin == Cin2
    sh, sw = stride
    ph, pw = padding

    # Cast before building patches so the im2col glue moves bf16 bytes.
    xb = x.astype(jnp.bfloat16)
    xp = jnp.pad(xb, ((0, 0), (ph, ph), (pw, pw), (0, 0)))
    Ho = (H + 2 * ph - kh) // sh + 1
    Wo = (W + 2 * pw - kw) // sw + 1

    pats = []
    for p in range(kh):
        for q in range(kw):
            pats.append(xp[:, p:p + Ho * sh:sh, q:q + Wo * sw:sw, :])
    pat = jnp.stack(pats, axis=-1)                   # (N,Ho,Wo,Cin,kh*kw)
    pat = pat.reshape(N * Ho * Wo, Cin * kh * kw)    # idx = c*kh*kw + p*kw + q
    wf = w.reshape(Cout, Cin * kh * kw).T            # matches im2col ordering

    y = pallas_matmul(pat, wf, bias=b, relu=relu)
    return y.reshape(N, Ho, Wo, Cout)


# ----------------------------------------------------------------------------
# LogPoolingCovLayer(5, 5, stride=1, pool_type='avg_pool',
#                    num_levels=2, ang_levels=6, facbase=3)  -- reconstruction
# ----------------------------------------------------------------------------

def _avg_pool_5x5_same(x, win=5):
    """Channel-wise 5x5 stride-1 'same' average pool (count_include_pad)."""
    s = jax.lax.reduce_window(
        x, 0.0, jax.lax.add,
        window_dimensions=(1, win, win, 1),
        window_strides=(1, 1, 1, 1),
        padding=((0, 0), (win // 2, win // 2), (win // 2, win // 2), (0, 0)))
    return s * (1.0 / (win * win))


def log_pooling_cov_samples(x, win=5, num_levels=2, ang_levels=6, facbase=3):
    """x: NHWC (N,H,W,C) -> per-pixel samples (N,H,W,C, num_levels*ang_levels)."""
    N, H, W, C = x.shape
    pooled = _avg_pool_5x5_same(x, win)

    r_max = facbase ** (num_levels - 1)
    padded = jnp.pad(pooled, ((0, 0), (r_max, r_max), (r_max, r_max), (0, 0)))
    samples = []
    for lvl in range(num_levels):
        r = facbase ** lvl
        for a in range(ang_levels):
            ang = 2.0 * math.pi * a / ang_levels
            dy = int(round(r * math.sin(ang)))
            dx = int(round(r * math.cos(ang)))
            samples.append(
                padded[:, r_max + dy:r_max + dy + H,
                       r_max + dx:r_max + dx + W, :])
    return jnp.stack(samples, axis=-1)        # (N,H,W,C,12), idx = lvl*6 + a


# ----------------------------------------------------------------------------
# Parameter construction (deterministic, mirrors _initialize_weights shapes)
# ----------------------------------------------------------------------------

def conv_params(key, cout, cin, kh, kw):
    n = kh * kw * cout
    w = jax.random.normal(key, (cout, cin, kh, kw), jnp.float32) * math.sqrt(2.0 / n)
    b = jnp.zeros((cout,), jnp.float32)
    return w, b


def build_params(key, cfg, num_classes):
    n_convs = sum(1 for v in cfg if v != "M")
    keys = jax.random.split(key, 3 + n_convs)

    params = {}
    # pre: Conv2d(3, 64, kernel=(4,3), stride=(4,3)); centerconv: Conv2d(3,64,1)
    pre_w, pre_b = conv_params(keys[0], 64, 3, 4, 3)
    cc_w, cc_b = conv_params(keys[1], 64, 3, 1, 1)
    # post: BatchNorm2d(64) -- inference mode, gamma=1, beta=0, mean=0, var=1
    eps = 1e-5
    bn_scale = jnp.full((64,), 1.0 / math.sqrt(1.0 + eps), jnp.float32)
    bn_shift = jnp.zeros((64,), jnp.float32)

    # Fuse pre (per-pixel 3x12 linear map on the log-polar samples) with the
    # 1x1 centerconv along K, and fold BN scale/shift into weights/bias.
    w_pre = pre_w.reshape(64, 3 * 4 * 3).T           # (36, 64)
    w_cc = cc_w.reshape(64, 3).T                     # (3, 64)
    w_cat = jnp.concatenate([w_pre, w_cc], axis=0)   # (39, 64)
    params["fused_w"] = w_cat * bn_scale[None, :]
    params["fused_b"] = (pre_b + cc_b) * bn_scale + bn_shift

    # features: VGG-style conv3x3+ReLU / MaxPool stack, in_channels = 64
    feat = []
    in_c = 64
    ki = 2
    for v in cfg:
        if v != "M":
            w, b = conv_params(keys[ki], v, in_c, 3, 3)
            ki += 1
            feat.append((w, b))
            in_c = v
    params["features"] = feat

    # classifier: Linear(512, num_classes)
    params["cls_w"] = jax.random.normal(keys[-1], (num_classes, 512),
                                        jnp.float32) * 0.01
    params["cls_b"] = jnp.zeros((num_classes,), jnp.float32)
    return params


# ----------------------------------------------------------------------------
# VGG_lpc forward
# ----------------------------------------------------------------------------

def vgg_lpc_forward(params, x_nchw, cfg):
    # NCHW -> NHWC
    x = jnp.transpose(x_nchw, (0, 2, 3, 1)).astype(jnp.float32)
    N, H, W, C = x.shape

    # --- y = pre(x) + centerconv(x);  x = post(y)  (one fused matmul) ---
    samp = log_pooling_cov_samples(x)                          # (N,H,W,3,12)
    feat = jnp.concatenate(
        [samp.reshape(N, H, W, C * 12), x], axis=-1).reshape(N * H * W, C * 13)
    h = pallas_matmul(feat, params["fused_w"], bias=params["fused_b"],
                      relu=True).reshape(N, H, W, 64)

    # --- features ---
    ci = 0
    for v in cfg:
        if v == "M":
            h = pallas_maxpool2x2(h)
        else:
            w, b = params["features"][ci]
            ci += 1
            h = conv2d(h, w, b, stride=(1, 1), padding=(1, 1), relu=True)

    # --- flatten + classifier ---
    Nb, Ho, Wo, Co = h.shape
    assert Ho == 1 and Wo == 1 and Co == 512
    flat = h.reshape(Nb, 512)                                  # same as NCHW view
    logits = pallas_matmul(flat, params["cls_w"].T, bias=params["cls_b"])
    return logits


# ----------------------------------------------------------------------------
# Main
# ----------------------------------------------------------------------------

if __name__ == "__main__":
    key = jax.random.PRNGKey(0)
    k_param, k_x = jax.random.split(key)

    # Small VGG-style `features` config (constructor argument of VGG_lpc):
    # 4 conv+ReLU stages with max-pools, ending at 512 channels and 1x1
    # spatial for a 16x16 input — consistent with the Linear(512, .) head.
    cfg = [64, "M", 128, "M", 256, "M", 512, "M"]
    num_classes = 10

    params = build_params(k_param, cfg, num_classes)
    x = jax.random.normal(k_x, (2, 3, 16, 16), jnp.float32)    # NCHW like PyTorch

    fwd = jax.jit(lambda p, xx: vgg_lpc_forward(p, xx, cfg))
    out = fwd(params, x)
    out = jax.block_until_ready(out)
    assert out.shape == (2, num_classes)
    assert bool(jnp.all(jnp.isfinite(out)))
    print("KERNEL_OK")
</pallas_src>

<mosaic_0001>
module attributes {stable_mosaic.version = 11 : i64} {
  func.func @_matmul_kernel(%arg0: i32, %arg1: i32, %arg2: memref<128x128xbf16, #tpu.memory_space<vmem>>, %arg3: memref<128x64xbf16, #tpu.memory_space<vmem>>, %arg4: memref<1x64xf32, #tpu.memory_space<vmem>>, %arg5: memref<128x64xf32, #tpu.memory_space<vmem>>) attributes {dimension_semantics = [#tpu.dimension_semantics<parallel>, #tpu.dimension_semantics<parallel>], iteration_bounds = array<i64: 4, 1>, scalar_prefetch = 0 : i64, scratch_operands = 0 : i64, tpu.core_type = #tpu.core_type<tc>, window_params = [{transform_indices = @transform_0, window_bounds = array<i64: 128, 128>}, {transform_indices = @transform_1, window_bounds = array<i64: 128, 64>}, {transform_indices = @transform_2, window_bounds = array<i64: 1, 64>}, {transform_indices = @transform_3, window_bounds = array<i64: 128, 64>}]} {
    %c0 = arith.constant 0 : index
    %c0_0 = arith.constant 0 : index
    %0 = vector.load %arg2[%c0, %c0_0] : memref<128x128xbf16, #tpu.memory_space<vmem>>, vector<128x128xbf16>
    %c0_1 = arith.constant 0 : index
    %c0_2 = arith.constant 0 : index
    %1 = vector.load %arg3[%c0_1, %c0_2] : memref<128x64xbf16, #tpu.memory_space<vmem>>, vector<128x64xbf16>
    %cst = arith.constant dense<0.000000e+00> : vector<128x64xf32>
    %2 = tpu.matmul %0, %1, %cst {dimension_numbers = #tpu.dot_dimension_numbers<[1], [0], [0], [1], [0, 0, 1, 1], [], []>} : vector<128x128xbf16>, vector<128x64xbf16>, vector<128x64xf32> -> vector<128x64xf32>
    %c0_3 = arith.constant 0 : index
    %c0_4 = arith.constant 0 : index
    %3 = vector.load %arg4[%c0_3, %c0_4] : memref<1x64xf32, #tpu.memory_space<vmem>>, vector<1x64xf32>
    %4 = vector.broadcast %3 : vector<1x64xf32> to vector<128x64xf32>
    %5 = arith.addf %2, %4 : vector<128x64xf32>
    %cst_5 = arith.constant 0.000000e+00 : f32
    %6 = vector.broadcast %cst_5 : f32 to vector<128x64xf32>
    %7 = arith.maximumf %5, %6 : vector<128x64xf32>
    %c0_6 = arith.constant 0 : index
    %c0_7 = arith.constant 0 : index
    %8 = vector.load %arg5[%c0_6, %c0_7] : memref<128x64xf32, #tpu.memory_space<vmem>>, vector<128x64xf32>
    tpu.vector_store %arg5[%c0_6, %c0_7], %7 {strides = array<i32>} : memref<128x64xf32, #tpu.memory_space<vmem>>, vector<128x64xf32>,
    return
  }
  func.func @transform_0(%arg0: i32, %arg1: i32) -> (i32, i32) {
    %c0_i32 = arith.constant 0 : i32
    %c0_i32_0 = arith.constant 0 : i32
    return %arg0, %c0_i32 : i32, i32
  }
  func.func @transform_1(%arg0: i32, %arg1: i32) -> (i32, i32) {
    %c0_i32 = arith.constant 0 : i32
    %c0_i32_0 = arith.constant 0 : i32
    return %c0_i32, %arg1 : i32, i32
  }
  func.func @transform_2(%arg0: i32, %arg1: i32) -> (i32, i32) {
    %c0_i32 = arith.constant 0 : i32
    %c0_i32_0 = arith.constant 0 : i32
    return %c0_i32, %arg1 : i32, i32
  }
  func.func @transform_3(%arg0: i32, %arg1: i32) -> (i32, i32) {
    %c0_i32 = arith.constant 0 : i32
    return %arg0, %arg1 : i32, i32
  }
}

module attributes {stable_mosaic.version = 11 : i64} {
  func.func @_matmul_kernel(%arg0: i32, %arg1: i32, %arg2: memref<128x640xbf16, #tpu.memory_space<vmem>>, %arg3: memref<640x64xbf16, #tpu.memory_space<vmem>>, %arg4: memref<1x64xf32, #tpu.memory_space<vmem>>, %arg5: memref<128x64xf32, #tpu.memory_space<vmem>>) attributes {dimension_semantics = [#tpu.dimension_semantics<parallel>, #tpu.dimension_semantics<parallel>], iteration_bounds = array<i64: 4, 1>, scalar_prefetch = 0 : i64, scratch_operands = 0 : i64, tpu.core_type = #tpu.core_type<tc>, window_params = [{transform_indices = @transform_0, window_bounds = array<i64: 128, 640>}, {transform_indices = @transform_1, window_bounds = array<i64: 640, 64>}, {transform_indices = @transform_2, window_bounds = array<i64: 1, 64>}, {transform_indices = @transform_3, window_bounds = array<i64: 128, 64>}]} {
    %c0 = arith.constant 0 : index
    %c0_0 = arith.constant 0 : index
    %0 = vector.load %arg2[%c0, %c0_0] : memref<128x640xbf16, #tpu.memory_space<vmem>>, vector<128x640xbf16>
    %c0_1 = arith.constant 0 : index
    %c0_2 = arith.constant 0 : index
    %1 = vector.load %arg3[%c0_1, %c0_2] : memref<640x64xbf16, #tpu.memory_space<vmem>>, vector<640x64xbf16>
    %cst = arith.constant dense<0.000000e+00> : vector<128x64xf32>
    %2 = tpu.matmul %0, %1, %cst {dimension_numbers = #tpu.dot_dimension_numbers<[1], [0], [0], [1], [0, 0, 1, 1], [], []>} : vector<128x640xbf16>, vector<640x64xbf16>, vector<128x64xf32> -> vector<128x64xf32>
    %c0_3 = arith.constant 0 : index
    %c0_4 = arith.constant 0 : index
    %3 = vector.load %arg4[%c0_3, %c0_4] : memref<1x64xf32, #tpu.memory_space<vmem>>, vector<1x64xf32>
    %4 = vector.broadcast %3 : vector<1x64xf32> to vector<128x64xf32>
    %5 = arith.addf %2, %4 : vector<128x64xf32>
    %cst_5 = arith.constant 0.000000e+00 : f32
    %6 = vector.broadcast %cst_5 : f32 to vector<128x64xf32>
    %7 = arith.maximumf %5, %6 : vector<128x64xf32>
    %c0_6 = arith.constant 0 : index
    %c0_7 = arith.constant 0 : index
    %8 = vector.load %arg5[%c0_6, %c0_7] : memref<128x64xf32, #tpu.memory_space<vmem>>, vector<128x64xf32>
    tpu.vector_store %arg5[%c0_6, %c0_7], %7 {strides = array<i32>} : memref<128x64xf32, #tpu.memory_space<vmem>>, vector<128x64xf32>,
    return
  }
  func.func @transform_0(%arg0: i32, %arg1: i32) -> (i32, i32) {
    %c0_i32 = arith.constant 0 : i32
    %c0_i32_0 = arith.constant 0 : i32
    return %arg0, %c0_i32 : i32, i32
  }
  func.func @transform_1(%arg0: i32, %arg1: i32) -> (i32, i32) {
    %c0_i32 = arith.constant 0 : i32
    %c0_i32_0 = arith.constant 0 : i32
    return %c0_i32, %arg1 : i32, i32
  }
  func.func @transform_2(%arg0: i32, %arg1: i32) -> (i32, i32) {
    %c0_i32 = arith.constant 0 : i32
    %c0_i32_0 = arith.constant 0 : i32
    return %c0_i32, %arg1 : i32, i32
  }
  func.func @transform_3(%arg0: i32, %arg1: i32) -> (i32, i32) {
    %c0_i32 = arith.constant 0 : i32
    return %arg0, %arg1 : i32, i32
  }
}

module attributes {stable_mosaic.version = 11 : i64} {
  func.func @_max4_kernel(%arg0: i32, %arg1: memref<64x128xf32, #tpu.memory_space<vmem>>, %arg2: memref<64x128xf32, #tpu.memory_space<vmem>>, %arg3: memref<64x128xf32, #tpu.memory_space<vmem>>, %arg4: memref<64x128xf32, #tpu.memory_space<vmem>>, %arg5: memref<64x128xf32, #tpu.memory_space<vmem>>) attributes {dimension_semantics = [#tpu.dimension_semantics<arbitrary>], iteration_bounds = array<i64: 1>, scalar_prefetch = 0 : i64, scratch_operands = 0 : i64, tpu.core_type = #tpu.core_type<tc>, window_params = [{pipeline_mode = #tpu.pipeline_mode<synchronous>, transform_indices = @transform_0, window_bounds = array<i64: 64, 128>}, {pipeline_mode = #tpu.pipeline_mode<synchronous>, transform_indices = @transform_1, window_bounds = array<i64: 64, 128>}, {pipeline_mode = #tpu.pipeline_mode<synchronous>, transform_indices = @transform_2, window_bounds = array<i64: 64, 128>}, {pipeline_mode = #tpu.pipeline_mode<synchronous>, transform_indices = @transform_3, window_bounds = array<i64: 64, 128>}, {pipeline_mode = #tpu.pipeline_mode<synchronous>, transform_indices = @transform_4, window_bounds = array<i64: 64, 128>}]} {
    %c0 = arith.constant 0 : index
    %c0_0 = arith.constant 0 : index
    %0 = vector.load %arg1[%c0, %c0_0] : memref<64x128xf32, #tpu.memory_space<vmem>>, vector<64x128xf32>
    %c0_1 = arith.constant 0 : index
    %c0_2 = arith.constant 0 : index
    %1 = vector.load %arg2[%c0_1, %c0_2] : memref<64x128xf32, #tpu.memory_space<vmem>>, vector<64x128xf32>
    %2 = arith.maximumf %0, %1 : vector<64x128xf32>
    %c0_3 = arith.constant 0 : index
    %c0_4 = arith.constant 0 : index
    %3 = vector.load %arg3[%c0_3, %c0_4] : memref<64x128xf32, #tpu.memory_space<vmem>>, vector<64x128xf32>
    %c0_5 = arith.constant 0 : index
    %c0_6 = arith.constant 0 : index
    %4 = vector.load %arg4[%c0_5, %c0_6] : memref<64x128xf32, #tpu.memory_space<vmem>>, vector<64x128xf32>
    %5 = arith.maximumf %3, %4 : vector<64x128xf32>
    %6 = arith.maximumf %2, %5 : vector<64x128xf32>
    %c0_7 = arith.constant 0 : index
    %c0_8 = arith.constant 0 : index
    %7 = vector.load %arg5[%c0_7, %c0_8] : memref<64x128xf32, #tpu.memory_space<vmem>>, vector<64x128xf32>
    tpu.vector_store %arg5[%c0_7, %c0_8], %6 {strides = array<i32>} : memref<64x128xf32, #tpu.memory_space<vmem>>, vector<64x128xf32>,
    return
  }
  func.func @transform_0(%arg0: i32) -> (i32, i32) {
    %c0_i32 = arith.constant 0 : i32
    %c0_i32_0 = arith.constant 0 : i32
    %c0_i32_1 = arith.constant 0 : i32
    return %c0_i32, %c0_i32_0 : i32, i32
  }
  func.func @transform_1(%arg0: i32) -> (i32, i32) {
    %c0_i32 = arith.constant 0 : i32
    %c0_i32_0 = arith.constant 0 : i32
    %c0_i32_1 = arith.constant 0 : i32
    return %c0_i32, %c0_i32_0 : i32, i32
  }
  func.func @transform_2(%arg0: i32) -> (i32, i32) {
    %c0_i32 = arith.constant 0 : i32
    %c0_i32_0 = arith.constant 0 : i32
    %c0_i32_1 = arith.constant 0 : i32
    return %c0_i32, %c0_i32_0 : i32, i32
  }
  func.func @transform_3(%arg0: i32) -> (i32, i32) {
    %c0_i32 = arith.constant 0 : i32
    %c0_i32_0 = arith.constant 0 : i32
    %c0_i32_1 = arith.constant 0 : i32
    return %c0_i32, %c0_i32_0 : i32, i32
  }
  func.func @transform_4(%arg0: i32) -> (i32, i32) {
    %c0_i32 = arith.constant 0 : i32
    %c0_i32_0 = arith.constant 0 : i32
    %c0_i32_1 = arith.constant 0 : i32
    return %c0_i32, %c0_i32_0 : i32, i32
  }
}

module attributes {stable_mosaic.version = 11 : i64} {
  func.func @_matmul_kernel(%arg0: i32, %arg1: i32, %arg2: memref<128x640xbf16, #tpu.memory_space<vmem>>, %arg3: memref<640x128xbf16, #tpu.memory_space<vmem>>, %arg4: memref<1x128xf32, #tpu.memory_space<vmem>>, %arg5: memref<128x128xf32, #tpu.memory_space<vmem>>) attributes {dimension_semantics = [#tpu.dimension_semantics<parallel>, #tpu.dimension_semantics<parallel>], iteration_bounds = array<i64: 1, 1>, scalar_prefetch = 0 : i64, scratch_operands = 0 : i64, tpu.core_type = #tpu.core_type<tc>, window_params = [{transform_indices = @transform_0, window_bounds = array<i64: 128, 640>}, {transform_indices = @transform_1, window_bounds = array<i64: 640, 128>}, {transform_indices = @transform_2, window_bounds = array<i64: 1, 128>}, {transform_indices = @transform_3, window_bounds = array<i64: 128, 128>}]} {
    %c0 = arith.constant 0 : index
    %c0_0 = arith.constant 0 : index
    %0 = vector.load %arg2[%c0, %c0_0] : memref<128x640xbf16, #tpu.memory_space<vmem>>, vector<128x640xbf16>
    %c0_1 = arith.constant 0 : index
    %c0_2 = arith.constant 0 : index
    %1 = vector.load %arg3[%c0_1, %c0_2] : memref<640x128xbf16, #tpu.memory_space<vmem>>, vector<640x128xbf16>
    %cst = arith.constant dense<0.000000e+00> : vector<128x128xf32>
    %2 = tpu.matmul %0, %1, %cst {dimension_numbers = #tpu.dot_dimension_numbers<[1], [0], [0], [1], [0, 0, 1, 1], [], []>} : vector<128x640xbf16>, vector<640x128xbf16>, vector<128x128xf32> -> vector<128x128xf32>
    %c0_3 = arith.constant 0 : index
    %c0_4 = arith.constant 0 : index
    %3 = vector.load %arg4[%c0_3, %c0_4] : memref<1x128xf32, #tpu.memory_space<vmem>>, vector<1x128xf32>
    %4 = vector.broadcast %3 : vector<1x128xf32> to vector<128x128xf32>
    %5 = arith.addf %2, %4 : vector<128x128xf32>
    %cst_5 = arith.constant 0.000000e+00 : f32
    %6 = vector.broadcast %cst_5 : f32 to vector<128x128xf32>
    %7 = arith.maximumf %5, %6 : vector<128x128xf32>
    %c0_6 = arith.constant 0 : index
    %c0_7 = arith.constant 0 : index
    %8 = vector.load %arg5[%c0_6, %c0_7] : memref<128x128xf32, #tpu.memory_space<vmem>>, vector<128x128xf32>
    tpu.vector_store %arg5[%c0_6, %c0_7], %7 {strides = array<i32>} : memref<128x128xf32, #tpu.memory_space<vmem>>, vector<128x128xf32>,
    return
  }
  func.func @transform_0(%arg0: i32, %arg1: i32) -> (i32, i32) {
    %c0_i32 = arith.constant 0 : i32
    %c0_i32_0 = arith.constant 0 : i32
    return %arg0, %c0_i32 : i32, i32
  }
  func.func @transform_1(%arg0: i32, %arg1: i32) -> (i32, i32) {
    %c0_i32 = arith.constant 0 : i32
    %c0_i32_0 = arith.constant 0 : i32
    return %c0_i32, %arg1 : i32, i32
  }
  func.func @transform_2(%arg0: i32, %arg1: i32) -> (i32, i32) {
    %c0_i32 = arith.constant 0 : i32
    %c0_i32_0 = arith.constant 0 : i32
    return %c0_i32, %arg1 : i32, i32
  }
  func.func @transform_3(%arg0: i32, %arg1: i32) -> (i32, i32) {
    %c0_i32 = arith.constant 0 : i32
    return %arg0, %arg1 : i32, i32
  }
}

module attributes {stable_mosaic.version = 11 : i64} {
  func.func @_max4_kernel(%arg0: i32, %arg1: memref<32x128xf32, #tpu.memory_space<vmem>>, %arg2: memref<32x128xf32, #tpu.memory_space<vmem>>, %arg3: memref<32x128xf32, #tpu.memory_space<vmem>>, %arg4: memref<32x128xf32, #tpu.memory_space<vmem>>, %arg5: memref<32x128xf32, #tpu.memory_space<vmem>>) attributes {dimension_semantics = [#tpu.dimension_semantics<arbitrary>], iteration_bounds = array<i64: 1>, scalar_prefetch = 0 : i64, scratch_operands = 0 : i64, tpu.core_type = #tpu.core_type<tc>, window_params = [{pipeline_mode = #tpu.pipeline_mode<synchronous>, transform_indices = @transform_0, window_bounds = array<i64: 32, 128>}, {pipeline_mode = #tpu.pipeline_mode<synchronous>, transform_indices = @transform_1, window_bounds = array<i64: 32, 128>}, {pipeline_mode = #tpu.pipeline_mode<synchronous>, transform_indices = @transform_2, window_bounds = array<i64: 32, 128>}, {pipeline_mode = #tpu.pipeline_mode<synchronous>, transform_indices = @transform_3, window_bounds = array<i64: 32, 128>}, {pipeline_mode = #tpu.pipeline_mode<synchronous>, transform_indices = @transform_4, window_bounds = array<i64: 32, 128>}]} {
    %c0 = arith.constant 0 : index
    %c0_0 = arith.constant 0 : index
    %0 = vector.load %arg1[%c0, %c0_0] : memref<32x128xf32, #tpu.memory_space<vmem>>, vector<32x128xf32>
    %c0_1 = arith.constant 0 : index
    %c0_2 = arith.constant 0 : index
    %1 = vector.load %arg2[%c0_1, %c0_2] : memref<32x128xf32, #tpu.memory_space<vmem>>, vector<32x128xf32>
    %2 = arith.maximumf %0, %1 : vector<32x128xf32>
    %c0_3 = arith.constant 0 : index
    %c0_4 = arith.constant 0 : index
    %3 = vector.load %arg3[%c0_3, %c0_4] : memref<32x128xf32, #tpu.memory_space<vmem>>, vector<32x128xf32>
    %c0_5 = arith.constant 0 : index
    %c0_6 = arith.constant 0 : index
    %4 = vector.load %arg4[%c0_5, %c0_6] : memref<32x128xf32, #tpu.memory_space<vmem>>, vector<32x128xf32>
    %5 = arith.maximumf %3, %4 : vector<32x128xf32>
    %6 = arith.maximumf %2, %5 : vector<32x128xf32>
    %c0_7 = arith.constant 0 : index
    %c0_8 = arith.constant 0 : index
    %7 = vector.load %arg5[%c0_7, %c0_8] : memref<32x128xf32, #tpu.memory_space<vmem>>, vector<32x128xf32>
    tpu.vector_store %arg5[%c0_7, %c0_8], %6 {strides = array<i32>} : memref<32x128xf32, #tpu.memory_space<vmem>>, vector<32x128xf32>,
    return
  }
  func.func @transform_0(%arg0: i32) -> (i32, i32) {
    %c0_i32 = arith.constant 0 : i32
    %c0_i32_0 = arith.constant 0 : i32
    %c0_i32_1 = arith.constant 0 : i32
    return %c0_i32, %c0_i32_0 : i32, i32
  }
  func.func @transform_1(%arg0: i32) -> (i32, i32) {
    %c0_i32 = arith.constant 0 : i32
    %c0_i32_0 = arith.constant 0 : i32
    %c0_i32_1 = arith.constant 0 : i32
    return %c0_i32, %c0_i32_0 : i32, i32
  }
  func.func @transform_2(%arg0: i32) -> (i32, i32) {
    %c0_i32 = arith.constant 0 : i32
    %c0_i32_0 = arith.constant 0 : i32
    %c0_i32_1 = arith.constant 0 : i32
    return %c0_i32, %c0_i32_0 : i32, i32
  }
  func.func @transform_3(%arg0: i32) -> (i32, i32) {
    %c0_i32 = arith.constant 0 : i32
    %c0_i32_0 = arith.constant 0 : i32
    %c0_i32_1 = arith.constant 0 : i32
    return %c0_i32, %c0_i32_0 : i32, i32
  }
  func.func @transform_4(%arg0: i32) -> (i32, i32) {
    %c0_i32 = arith.constant 0 : i32
    %c0_i32_0 = arith.constant 0 : i32
    %c0_i32_1 = arith.constant 0 : i32
    return %c0_i32, %c0_i32_0 : i32, i32
  }
}

module attributes {stable_mosaic.version = 11 : i64} {
  func.func @_matmul_kernel(%arg0: i32, %arg1: i32, %arg2: memref<32x1152xbf16, #tpu.memory_space<vmem>>, %arg3: memref<1152x128xbf16, #tpu.memory_space<vmem>>, %arg4: memref<1x128xf32, #tpu.memory_space<vmem>>, %arg5: memref<32x128xf32, #tpu.memory_space<vmem>>) attributes {dimension_semantics = [#tpu.dimension_semantics<parallel>, #tpu.dimension_semantics<parallel>], iteration_bounds = array<i64: 1, 2>, scalar_prefetch = 0 : i64, scratch_operands = 0 : i64, tpu.core_type = #tpu.core_type<tc>, window_params = [{transform_indices = @transform_0, window_bounds = array<i64: 32, 1152>}, {transform_indices = @transform_1, window_bounds = array<i64: 1152, 128>}, {transform_indices = @transform_2, window_bounds = array<i64: 1, 128>}, {transform_indices = @transform_3, window_bounds = array<i64: 32, 128>}]} {
    %c0 = arith.constant 0 : index
    %c0_0 = arith.constant 0 : index
    %0 = vector.load %arg2[%c0, %c0_0] : memref<32x1152xbf16, #tpu.memory_space<vmem>>, vector<32x1152xbf16>
    %c0_1 = arith.constant 0 : index
    %c0_2 = arith.constant 0 : index
    %1 = vector.load %arg3[%c0_1, %c0_2] : memref<1152x128xbf16, #tpu.memory_space<vmem>>, vector<1152x128xbf16>
    %cst = arith.constant dense<0.000000e+00> : vector<32x128xf32>
    %2 = tpu.matmul %0, %1, %cst {dimension_numbers = #tpu.dot_dimension_numbers<[1], [0], [0], [1], [0, 0, 1, 1], [], []>} : vector<32x1152xbf16>, vector<1152x128xbf16>, vector<32x128xf32> -> vector<32x128xf32>
    %c0_3 = arith.constant 0 : index
    %c0_4 = arith.constant 0 : index
    %3 = vector.load %arg4[%c0_3, %c0_4] : memref<1x128xf32, #tpu.memory_space<vmem>>, vector<1x128xf32>
    %4 = vector.broadcast %3 : vector<1x128xf32> to vector<32x128xf32>
    %5 = arith.addf %2, %4 : vector<32x128xf32>
    %cst_5 = arith.constant 0.000000e+00 : f32
    %6 = vector.broadcast %cst_5 : f32 to vector<32x128xf32>
    %7 = arith.maximumf %5, %6 : vector<32x128xf32>
    %c0_6 = arith.constant 0 : index
    %c0_7 = arith.constant 0 : index
    %8 = vector.load %arg5[%c0_6, %c0_7] : memref<32x128xf32, #tpu.memory_space<vmem>>, vector<32x128xf32>
    tpu.vector_store %arg5[%c0_6, %c0_7], %7 {strides = array<i32>} : memref<32x128xf32, #tpu.memory_space<vmem>>, vector<32x128xf32>,
    return
  }
  func.func @transform_0(%arg0: i32, %arg1: i32) -> (i32, i32) {
    %c0_i32 = arith.constant 0 : i32
    %c0_i32_0 = arith.constant 0 : i32
    return %arg0, %c0_i32 : i32, i32
  }
  func.func @transform_1(%arg0: i32, %arg1: i32) -> (i32, i32) {
    %c0_i32 = arith.constant 0 : i32
    %c0_i32_0 = arith.constant 0 : i32
    return %c0_i32, %arg1 : i32, i32
  }
  func.func @transform_2(%arg0: i32, %arg1: i32) -> (i32, i32) {
    %c0_i32 = arith.constant 0 : i32
    %c0_i32_0 = arith.constant 0 : i32
    return %c0_i32, %arg1 : i32, i32
  }
  func.func @transform_3(%arg0: i32, %arg1: i32) -> (i32, i32) {
    %c0_i32 = arith.constant 0 : i32
    return %arg0, %arg1 : i32, i32
  }
}

module attributes {stable_mosaic.version = 11 : i64} {
  func.func @_max4_kernel(%arg0: i32, %arg1: memref<16x128xf32, #tpu.memory_space<vmem>>, %arg2: memref<16x128xf32, #tpu.memory_space<vmem>>, %arg3: memref<16x128xf32, #tpu.memory_space<vmem>>, %arg4: memref<16x128xf32, #tpu.memory_space<vmem>>, %arg5: memref<16x128xf32, #tpu.memory_space<vmem>>) attributes {dimension_semantics = [#tpu.dimension_semantics<arbitrary>], iteration_bounds = array<i64: 1>, scalar_prefetch = 0 : i64, scratch_operands = 0 : i64, tpu.core_type = #tpu.core_type<tc>, window_params = [{pipeline_mode = #tpu.pipeline_mode<synchronous>, transform_indices = @transform_0, window_bounds = array<i64: 16, 128>}, {pipeline_mode = #tpu.pipeline_mode<synchronous>, transform_indices = @transform_1, window_bounds = array<i64: 16, 128>}, {pipeline_mode = #tpu.pipeline_mode<synchronous>, transform_indices = @transform_2, window_bounds = array<i64: 16, 128>}, {pipeline_mode = #tpu.pipeline_mode<synchronous>, transform_indices = @transform_3, window_bounds = array<i64: 16, 128>}, {pipeline_mode = #tpu.pipeline_mode<synchronous>, transform_indices = @transform_4, window_bounds = array<i64: 16, 128>}]} {
    %c0 = arith.constant 0 : index
    %c0_0 = arith.constant 0 : index
    %0 = vector.load %arg1[%c0, %c0_0] : memref<16x128xf32, #tpu.memory_space<vmem>>, vector<16x128xf32>
    %c0_1 = arith.constant 0 : index
    %c0_2 = arith.constant 0 : index
    %1 = vector.load %arg2[%c0_1, %c0_2] : memref<16x128xf32, #tpu.memory_space<vmem>>, vector<16x128xf32>
    %2 = arith.maximumf %0, %1 : vector<16x128xf32>
    %c0_3 = arith.constant 0 : index
    %c0_4 = arith.constant 0 : index
    %3 = vector.load %arg3[%c0_3, %c0_4] : memref<16x128xf32, #tpu.memory_space<vmem>>, vector<16x128xf32>
    %c0_5 = arith.constant 0 : index
    %c0_6 = arith.constant 0 : index
    %4 = vector.load %arg4[%c0_5, %c0_6] : memref<16x128xf32, #tpu.memory_space<vmem>>, vector<16x128xf32>
    %5 = arith.maximumf %3, %4 : vector<16x128xf32>
    %6 = arith.maximumf %2, %5 : vector<16x128xf32>
    %c0_7 = arith.constant 0 : index
    %c0_8 = arith.constant 0 : index
    %7 = vector.load %arg5[%c0_7, %c0_8] : memref<16x128xf32, #tpu.memory_space<vmem>>, vector<16x128xf32>
    tpu.vector_store %arg5[%c0_7, %c0_8], %6 {strides = array<i32>} : memref<16x128xf32, #tpu.memory_space<vmem>>, vector<16x128xf32>,
    return
  }
  func.func @transform_0(%arg0: i32) -> (i32, i32) {
    %c0_i32 = arith.constant 0 : i32
    %c0_i32_0 = arith.constant 0 : i32
    %c0_i32_1 = arith.constant 0 : i32
    return %c0_i32, %c0_i32_0 : i32, i32
  }
  func.func @transform_1(%arg0: i32) -> (i32, i32) {
    %c0_i32 = arith.constant 0 : i32
    %c0_i32_0 = arith.constant 0 : i32
    %c0_i32_1 = arith.constant 0 : i32
    return %c0_i32, %c0_i32_0 : i32, i32
  }
  func.func @transform_2(%arg0: i32) -> (i32, i32) {
    %c0_i32 = arith.constant 0 : i32
    %c0_i32_0 = arith.constant 0 : i32
    %c0_i32_1 = arith.constant 0 : i32
    return %c0_i32, %c0_i32_0 : i32, i32
  }
  func.func @transform_3(%arg0: i32) -> (i32, i32) {
    %c0_i32 = arith.constant 0 : i32
    %c0_i32_0 = arith.constant 0 : i32
    %c0_i32_1 = arith.constant 0 : i32
    return %c0_i32, %c0_i32_0 : i32, i32
  }
  func.func @transform_4(%arg0: i32) -> (i32, i32) {
    %c0_i32 = arith.constant 0 : i32
    %c0_i32_0 = arith.constant 0 : i32
    %c0_i32_1 = arith.constant 0 : i32
    return %c0_i32, %c0_i32_0 : i32, i32
  }
}

module attributes {stable_mosaic.version = 11 : i64} {
  func.func @_matmul_kernel(%arg0: i32, %arg1: i32, %arg2: memref<8x2304xbf16, #tpu.memory_space<vmem>>, %arg3: memref<2304x128xbf16, #tpu.memory_space<vmem>>, %arg4: memref<1x128xf32, #tpu.memory_space<vmem>>, %arg5: memref<8x128xf32, #tpu.memory_space<vmem>>) attributes {dimension_semantics = [#tpu.dimension_semantics<parallel>, #tpu.dimension_semantics<parallel>], iteration_bounds = array<i64: 1, 4>, scalar_prefetch = 0 : i64, scratch_operands = 0 : i64, tpu.core_type = #tpu.core_type<tc>, window_params = [{transform_indices = @transform_0, window_bounds = array<i64: 8, 2304>}, {transform_indices = @transform_1, window_bounds = array<i64: 2304, 128>}, {transform_indices = @transform_2, window_bounds = array<i64: 1, 128>}, {transform_indices = @transform_3, window_bounds = array<i64: 8, 128>}]} {
    %c0 = arith.constant 0 : index
    %c0_0 = arith.constant 0 : index
    %0 = vector.load %arg2[%c0, %c0_0] : memref<8x2304xbf16, #tpu.memory_space<vmem>>, vector<8x2304xbf16>
    %c0_1 = arith.constant 0 : index
    %c0_2 = arith.constant 0 : index
    %1 = vector.load %arg3[%c0_1, %c0_2] : memref<2304x128xbf16, #tpu.memory_space<vmem>>, vector<2304x128xbf16>
    %cst = arith.constant dense<0.000000e+00> : vector<8x128xf32>
    %2 = tpu.matmul %0, %1, %cst {dimension_numbers = #tpu.dot_dimension_numbers<[1], [0], [0], [1], [0, 0, 1, 1], [], []>} : vector<8x2304xbf16>, vector<2304x128xbf16>, vector<8x128xf32> -> vector<8x128xf32>
    %c0_3 = arith.constant 0 : index
    %c0_4 = arith.constant 0 : index
    %3 = vector.load %arg4[%c0_3, %c0_4] : memref<1x128xf32, #tpu.memory_space<vmem>>, vector<1x128xf32>
    %4 = vector.broadcast %3 : vector<1x128xf32> to vector<8x128xf32>
    %5 = arith.addf %2, %4 : vector<8x128xf32>
    %cst_5 = arith.constant 0.000000e+00 : f32
    %6 = vector.broadcast %cst_5 : f32 to vector<8x128xf32>
    %7 = arith.maximumf %5, %6 : vector<8x128xf32>
    %c0_6 = arith.constant 0 : index
    %c0_7 = arith.constant 0 : index
    %8 = vector.load %arg5[%c0_6, %c0_7] : memref<8x128xf32, #tpu.memory_space<vmem>>, vector<8x128xf32>
    tpu.vector_store %arg5[%c0_6, %c0_7], %7 {strides = array<i32>} : memref<8x128xf32, #tpu.memory_space<vmem>>, vector<8x128xf32>,
    return
  }
  func.func @transform_0(%arg0: i32, %arg1: i32) -> (i32, i32) {
    %c0_i32 = arith.constant 0 : i32
    %c0_i32_0 = arith.constant 0 : i32
    return %arg0, %c0_i32 : i32, i32
  }
  func.func @transform_1(%arg0: i32, %arg1: i32) -> (i32, i32) {
    %c0_i32 = arith.constant 0 : i32
    %c0_i32_0 = arith.constant 0 : i32
    return %c0_i32, %arg1 : i32, i32
  }
  func.func @transform_2(%arg0: i32, %arg1: i32) -> (i32, i32) {
    %c0_i32 = arith.constant 0 : i32
    %c0_i32_0 = arith.constant 0 : i32
    return %c0_i32, %arg1 : i32, i32
  }
  func.func @transform_3(%arg0: i32, %arg1: i32) -> (i32, i32) {
    %c0_i32 = arith.constant 0 : i32
    return %arg0, %arg1 : i32, i32
  }
}

module attributes {stable_mosaic.version = 11 : i64} {
  func.func @_max4_kernel(%arg0: i32, %arg1: memref<8x128xf32, #tpu.memory_space<vmem>>, %arg2: memref<8x128xf32, #tpu.memory_space<vmem>>, %arg3: memref<8x128xf32, #tpu.memory_space<vmem>>, %arg4: memref<8x128xf32, #tpu.memory_space<vmem>>, %arg5: memref<8x128xf32, #tpu.memory_space<vmem>>) attributes {dimension_semantics = [#tpu.dimension_semantics<arbitrary>], iteration_bounds = array<i64: 1>, scalar_prefetch = 0 : i64, scratch_operands = 0 : i64, tpu.core_type = #tpu.core_type<tc>, window_params = [{pipeline_mode = #tpu.pipeline_mode<synchronous>, transform_indices = @transform_0, window_bounds = array<i64: 8, 128>}, {pipeline_mode = #tpu.pipeline_mode<synchronous>, transform_indices = @transform_1, window_bounds = array<i64: 8, 128>}, {pipeline_mode = #tpu.pipeline_mode<synchronous>, transform_indices = @transform_2, window_bounds = array<i64: 8, 128>}, {pipeline_mode = #tpu.pipeline_mode<synchronous>, transform_indices = @transform_3, window_bounds = array<i64: 8, 128>}, {pipeline_mode = #tpu.pipeline_mode<synchronous>, transform_indices = @transform_4, window_bounds = array<i64: 8, 128>}]} {
    %c0 = arith.constant 0 : index
    %c0_0 = arith.constant 0 : index
    %0 = vector.load %arg1[%c0, %c0_0] : memref<8x128xf32, #tpu.memory_space<vmem>>, vector<8x128xf32>
    %c0_1 = arith.constant 0 : index
    %c0_2 = arith.constant 0 : index
    %1 = vector.load %arg2[%c0_1, %c0_2] : memref<8x128xf32, #tpu.memory_space<vmem>>, vector<8x128xf32>
    %2 = arith.maximumf %0, %1 : vector<8x128xf32>
    %c0_3 = arith.constant 0 : index
    %c0_4 = arith.constant 0 : index
    %3 = vector.load %arg3[%c0_3, %c0_4] : memref<8x128xf32, #tpu.memory_space<vmem>>, vector<8x128xf32>
    %c0_5 = arith.constant 0 : index
    %c0_6 = arith.constant 0 : index
    %4 = vector.load %arg4[%c0_5, %c0_6] : memref<8x128xf32, #tpu.memory_space<vmem>>, vector<8x128xf32>
    %5 = arith.maximumf %3, %4 : vector<8x128xf32>
    %6 = arith.maximumf %2, %5 : vector<8x128xf32>
    %c0_7 = arith.constant 0 : index
    %c0_8 = arith.constant 0 : index
    %7 = vector.load %arg5[%c0_7, %c0_8] : memref<8x128xf32, #tpu.memory_space<vmem>>, vector<8x128xf32>
    tpu.vector_store %arg5[%c0_7, %c0_8], %6 {strides = array<i32>} : memref<8x128xf32, #tpu.memory_space<vmem>>, vector<8x128xf32>,
    return
  }
  func.func @transform_0(%arg0: i32) -> (i32, i32) {
    %c0_i32 = arith.constant 0 : i32
    %c0_i32_0 = arith.constant 0 : i32
    %c0_i32_1 = arith.constant 0 : i32
    return %c0_i32, %c0_i32_0 : i32, i32
  }
  func.func @transform_1(%arg0: i32) -> (i32, i32) {
    %c0_i32 = arith.constant 0 : i32
    %c0_i32_0 = arith.constant 0 : i32
    %c0_i32_1 = arith.constant 0 : i32
    return %c0_i32, %c0_i32_0 : i32, i32
  }
  func.func @transform_2(%arg0: i32) -> (i32, i32) {
    %c0_i32 = arith.constant 0 : i32
    %c0_i32_0 = arith.constant 0 : i32
    %c0_i32_1 = arith.constant 0 : i32
    return %c0_i32, %c0_i32_0 : i32, i32
  }
  func.func @transform_3(%arg0: i32) -> (i32, i32) {
    %c0_i32 = arith.constant 0 : i32
    %c0_i32_0 = arith.constant 0 : i32
    %c0_i32_1 = arith.constant 0 : i32
    return %c0_i32, %c0_i32_0 : i32, i32
  }
  func.func @transform_4(%arg0: i32) -> (i32, i32) {
    %c0_i32 = arith.constant 0 : i32
    %c0_i32_0 = arith.constant 0 : i32
    %c0_i32_1 = arith.constant 0 : i32
    return %c0_i32, %c0_i32_0 : i32, i32
  }
}

module attributes {stable_mosaic.version = 11 : i64} {
  func.func @_matmul_kernel(%arg0: i32, %arg1: i32, %arg2: memref<2x512xbf16, #tpu.memory_space<vmem>>, %arg3: memref<512x10xbf16, #tpu.memory_space<vmem>>, %arg4: memref<1x10xf32, #tpu.memory_space<vmem>>, %arg5: memref<2x10xf32, #tpu.memory_space<vmem>>) attributes {dimension_semantics = [#tpu.dimension_semantics<parallel>, #tpu.dimension_semantics<parallel>], iteration_bounds = array<i64: 1, 1>, scalar_prefetch = 0 : i64, scratch_operands = 0 : i64, tpu.core_type = #tpu.core_type<tc>, window_params = [{transform_indices = @transform_0, window_bounds = array<i64: 2, 512>}, {transform_indices = @transform_1, window_bounds = array<i64: 512, 10>}, {transform_indices = @transform_2, window_bounds = array<i64: 1, 10>}, {transform_indices = @transform_3, window_bounds = array<i64: 2, 10>}]} {
    %c0 = arith.constant 0 : index
    %c0_0 = arith.constant 0 : index
    %0 = vector.load %arg2[%c0, %c0_0] : memref<2x512xbf16, #tpu.memory_space<vmem>>, vector<2x512xbf16>
    %c0_1 = arith.constant 0 : index
    %c0_2 = arith.constant 0 : index
    %1 = vector.load %arg3[%c0_1, %c0_2] : memref<512x10xbf16, #tpu.memory_space<vmem>>, vector<512x10xbf16>
    %cst = arith.constant dense<0.000000e+00> : vector<2x10xf32>
    %2 = tpu.matmul %0, %1, %cst {dimension_numbers = #tpu.dot_dimension_numbers<[1], [0], [0], [1], [0, 0, 1, 1], [], []>} : vector<2x512xbf16>, vector<512x10xbf16>, vector<2x10xf32> -> vector<2x10xf32>
    %c0_3 = arith.constant 0 : index
    %c0_4 = arith.constant 0 : index
    %3 = vector.load %arg4[%c0_3, %c0_4] : memref<1x10xf32, #tpu.memory_space<vmem>>, vector<1x10xf32>
    %4 = vector.broadcast %3 : vector<1x10xf32> to vector<2x10xf32>
    %5 = arith.addf %2, %4 : vector<2x10xf32>
    %c0_5 = arith.constant 0 : index
    %c0_6 = arith.constant 0 : index
    %6 = vector.load %arg5[%c0_5, %c0_6] : memref<2x10xf32, #tpu.memory_space<vmem>>, vector<2x10xf32>
    tpu.vector_store %arg5[%c0_5, %c0_6], %5 {strides = array<i32>} : memref<2x10xf32, #tpu.memory_space<vmem>>, vector<2x10xf32>,
    return
  }
  func.func @transform_0(%arg0: i32, %arg1: i32) -> (i32, i32) {
    %c0_i32 = arith.constant 0 : i32
    %c0_i32_0 = arith.constant 0 : i32
    return %arg0, %c0_i32 : i32, i32
  }
  func.func @transform_1(%arg0: i32, %arg1: i32) -> (i32, i32) {
    %c0_i32 = arith.constant 0 : i32
    %c0_i32_0 = arith.constant 0 : i32
    return %c0_i32, %arg1 : i32, i32
  }
  func.func @transform_2(%arg0: i32, %arg1: i32) -> (i32, i32) {
    %c0_i32 = arith.constant 0 : i32
    %c0_i32_0 = arith.constant 0 : i32
    return %c0_i32, %arg1 : i32, i32
  }
  func.func @transform_3(%arg0: i32, %arg1: i32) -> (i32, i32) {
    %c0_i32 = arith.constant 0 : i32
    return %arg0, %arg1 : i32, i32
  }
}

</mosaic_0001>

<bundles_post_ra>
// kernel: _lambda_.10
= control target key start
LH: loop header
LB: loop body
LE: loop exit
PB: predicated region body
PF: predicated region fallthrough
CT: control target
= control target key end

     0   :  { %s771_s12 = smov 0   ;;  %s773_s13 = smov 0   ;;  %s879_s0 = inlined_call_operand.vmem [shape: bf16[512,128], index: 0, kind: input, shape index: {}]   ;;  %s880_s1 = inlined_call_operand.vmem [shape: bf16[128,64], index: 1, kind: input, shape index: {}]   ;;  %s881_s2 = inlined_call_operand.vmem [shape: f32[1,64], index: 2, kind: input, shape index: {}]   ;;  %s882_s3 = inlined_call_operand.vmem [shape: f32[512,64], index: 3, kind: output, shape index: {}]  }
   0x1   :  { %s775_s14 = smov 0  }
   0x2 LB: > { %s25_s15 = sadd.s32 1, %s745_s13  ;;  %p599_p0 = scmp.ge.s32.totalorder %s749_s14, 1  ;;  %s749_s14 = sphi %s775_s14, %s13_s14   ;;  %s745_s13 = sphi %s773_s13, %s884_s13   ;;  %s741_s12 = sphi %s771_s12, %s883_s12  }
   0x3   : > { %p27_p1 = scmp.ge.s32.totalorder %s25_s15, 4  ;;  %p169_p2 = scmp.lt.s32.totalorder %s749_s14, 5 }
   0x5   : > { %s886_s15 = smov (%p27_p1, %s25_s15), 0  ;;  %p170_p3 = pnand %p599_p0, %p169_p2 }
   0x6   : > { %v711_v0 = vld [vmem:[%s880_s1] sm:$0xff] (!%p170_p3)   ;;  %s600_s18 = sshll.u32 (!%p170_p3), %s741_s12, 4  ;;  %v712_v1 = vld [vmem:[%s880_s1 + $0x8] sm:$0xff] (!%p170_p3)   ;;  %v713_v2 = vld [vmem:[%s880_s1 + $0x10] sm:$0xff] (!%p170_p3)   ;;  %vm474_vm0 = vcmask (!%p170_p3), 523264  }
   0x7   : > { %173 = sbr.rel (%p170_p3) target bundleno = 267 (0x10b), region = 32  ;;  %p204_p4 = scmp.lt.s32.totalorder (!%p170_p3), %s600_s18, 63  ;;  %639 = vmatprep.subr.bf16.mxu0 (!%p170_p3), %v711_v0  ;;  %671 = vmatprep.subr.bf16.mxu1 (!%p170_p3), %v711_v0  ;;  %v714_v3 = vld [vmem:[%s880_s1 + $0x18] sm:$0xff] (!%p170_p3)   ;;  %v715_v6 = vld [vmem:[%s880_s1 + $0x20] sm:$0xff] (!%p170_p3)   ;;  %v716_v7 = vld [vmem:[%s880_s1 + $0x28] sm:$0xff] (!%p170_p3)  }
   0x8   : > { %640 = vmatpush3.bf16.msra.mxu0 (!%p170_p3), %v711_v0  ;;  %679 = vmatpush3.bf16.msra.mxu1 (!%p170_p3), %v711_v0  ;;  %v717_v8 = vld [vmem:[%s880_s1 + $0x30] sm:$0xff] (!%p170_p3)   ;;  %v718_v9 = vld [vmem:[%s880_s1 + $0x38] sm:$0xff] (!%p170_p3)   ;;  %v604_v16 = vld [vmem:[%s881_s2] ss:$0 sm:$0xff] (!%p170_p3) }
   0x9   : > { %641 = vmatprep.subr.bf16.mxu0 (!%p170_p3), %v712_v1  ;;  %672 = vmatprep.subr.bf16.mxu1 (!%p170_p3), %v712_v1 }
   0xc   : > { %642 = vmatpush3.bf16.msra.mxu0 (!%p170_p3), %v712_v1  ;;  %680 = vmatpush3.bf16.msra.mxu1 (!%p170_p3), %v712_v1 }
   0xd   : > { %643 = vmatprep.subr.bf16.mxu0 (!%p170_p3), %v713_v2  ;;  %673 = vmatprep.subr.bf16.mxu1 (!%p170_p3), %v713_v2 }
   0xe   : > { %s888_s18 = smov (!%p204_p4, %s600_s18), 63 }
   0xf   : > { %s601_s23 = sshll.u32 %s888_s18, 2  ;;  %s603_s12 = sshll.u32 %s888_s18, 3 }
  0x10   : > { %s804_s26 = scalar_lea.vmem %s879_s0, %s601_s23  ;;  %644 = vmatpush3.bf16.msra.mxu0 %v713_v2  ;;  %681 = vmatpush3.bf16.msra.mxu1 %v713_v2  ;;  %s836_s19 = scalar_lea.vmem %s882_s3, %s603_s12 }
  0x11   : > { %v719_v4 = vld [vmem:[%s804_s26] sm:$0xff]   ;;  %645 = vmatprep.subr.bf16.mxu0 %v714_v3  ;;  %674 = vmatprep.subr.bf16.mxu1 %v714_v3  ;;  %v721_v10 = vld [vmem:[%s804_s26 + $0x8] sm:$0xff]   ;;  %v723_v12 = vld [vmem:[%s804_s26 + $0x10] sm:$0xff]  }
  0x12   : > { %v720_v5 = vld [vmem:[%s804_s26 + $0x20] sm:$0xff]   ;;  %655 = vmatprep.mubr.bf16.mxu0 %v719_v4  ;;  %v722_v11 = vld [vmem:[%s804_s26 + $0x28] sm:$0xff]   ;;  %v724_v13 = vld [vmem:[%s804_s26 + $0x30] sm:$0xff]  }
  0x13   : > { %663 = vmatprep.mubr.bf16.mxu1 %v720_v5  ;;  %v725_v14 = vld [vmem:[%s804_s26 + $0x18] sm:$0xff]  }
  0x14   : > { %646 = vmatpush3.bf16.msra.mxu0 %v714_v3  ;;  %682 = vmatpush3.bf16.msra.mxu1 %v714_v3  ;;  %v726_v15 = vld [vmem:[%s804_s26 + $0x38] sm:$0xff]  }
  0x15   : > { %647 = vmatprep.subr.bf16.mxu0 %v715_v6  ;;  %675 = vmatprep.subr.bf16.mxu1 %v715_v6 }
  0x18   : > { %648 = vmatpush3.bf16.msra.mxu0 %v715_v6  ;;  %683 = vmatpush3.bf16.msra.mxu1 %v715_v6 }
  0x19   : > { %649 = vmatprep.subr.bf16.mxu0 %v716_v7  ;;  %676 = vmatprep.subr.bf16.mxu1 %v716_v7 }
  0x1c   : > { %650 = vmatpush3.bf16.msra.mxu0 %v716_v7  ;;  %684 = vmatpush3.bf16.msra.mxu1 %v716_v7 }
  0x1d   : > { %651 = vmatprep.subr.bf16.mxu0 %v717_v8  ;;  %677 = vmatprep.subr.bf16.mxu1 %v717_v8 }
  0x20   : > { %652 = vmatpush3.bf16.msra.mxu0 %v717_v8  ;;  %685 = vmatpush3.bf16.msra.mxu1 %v717_v8 }
  0x21   : > { %653 = vmatprep.subr.bf16.mxu0 %v718_v9  ;;  %678 = vmatprep.subr.bf16.mxu1 %v718_v9 }
  0x24   : > { %654 = vmatpush3.bf16.msra.mxu0 %v718_v9  ;;  %686 = vmatpush3.bf16.msra.mxu1 %v718_v9 }
  0x27   : > { %656 = vmatmul.mubr.bf16.vlgmr.msra.gmra.mrb[0].mxu0 %v721_v10  ;;  %664 = vmatmul.mubr.bf16.vlgmr.msra.gmra.mrb[0].mxu1 %v722_v11 }
  0x28   : > { %659 = vmatprep.mubr.bf16.mxu0 %v723_v12  ;;  %667 = vmatprep.mubr.bf16.mxu1 %v724_v13 }
  0x2f   : > { %660 = vmatmul.mubr.bf16.gmra.mrb[4].mxu0 %v725_v14  ;;  %668 = vmatmul.mubr.bf16.gmra.mrb[4].mxu1 %v726_v15 }
  0xfa   : > { %v657_v17 = vpop.f32.mrb[0].mxu0  ;;  %v665_v18 = vpop.f32.mrb[0].mxu1 }
  0xfb   : > { %v404_v19 = vadd.f32 %v657_v17, %v604_v16  ;;  %v436_v20 = vadd.f32 %v665_v18, %v604_v16  ;;  %v395_v21 = vpop.f32.mrb[1].mxu0  ;;  %v427_v22 = vpop.f32.mrb[1].mxu1 }
  0xfc   : > { %v396_v23 = vadd.f32 %v604_v16, %v395_v21  ;;  %v428_v24 = vadd.f32 %v604_v16, %v427_v22  ;;  %v658_v25 = vpop.f32.mrb[2].mxu0  ;;  %v666_v26 = vpop.f32.mrb[2].mxu1 }
  0xfd   : > { %v460_v27 = vmax.f32 %v404_v19, 0.0  ;;  %v468_v28 = vmax.f32 %v436_v20, 0.0  ;;  %v407_v29 = vadd.f32 %v658_v25, %v604_v16  ;;  %v439_v30 = vadd.f32 %v666_v26, %v604_v16  ;;  %v398_v31 = vpop.f32.mrb[3].mxu0  ;;  %v430_v32 = vpop.f32.mrb[3].mxu1 }
  0xfe   : > { %v458_v33 = vmax.f32 %v396_v23, 0.0  ;;  %v466_v34 = vmax.f32 %v428_v24, 0.0  ;;  %v399_v35 = vadd.f32 %v604_v16, %v398_v31  ;;  %v431_v36 = vadd.f32 %v604_v16, %v430_v32 }
  0xff   : > { %477 = vst.msk [vmem:[%s836_s19 + $0x10] sm:$0xff] %vm474_vm0, %v460_v27  ;;  %485 = vst.msk [vmem:[%s836_s19 + $0x50] sm:$0xff] %vm474_vm0, %v468_v28  ;;  %v461_v37 = vmax.f32 %v407_v29, 0.0  ;;  %v469_v38 = vmax.f32 %v439_v30, 0.0 }
 0x100   : > { %475 = vst.msk [vmem:[%s836_s19] sm:$0xff] %vm474_vm0, %v458_v33  ;;  %483 = vst.msk [vmem:[%s836_s19 + $0x40] sm:$0xff] %vm474_vm0, %v466_v34  ;;  %v459_v39 = vmax.f32 %v399_v35, 0.0  ;;  %v467_v40 = vmax.f32 %v431_v36, 0.0 }
 0x101   : > { %478 = vst.msk [vmem:[%s836_s19 + $0x18] sm:$0xff] %vm474_vm0, %v461_v37  ;;  %486 = vst.msk [vmem:[%s836_s19 + $0x58] sm:$0xff] %vm474_vm0, %v469_v38 }
 0x102   : > { %476 = vst.msk [vmem:[%s836_s19 + $0x8] sm:$0xff] %vm474_vm0, %v459_v39  ;;  %484 = vst.msk [vmem:[%s836_s19 + $0x48] sm:$0xff] %vm474_vm0, %v467_v40  ;;  %v661_v41 = vpop.f32.mrb[4].mxu0  ;;  %v669_v42 = vpop.f32.mrb[4].mxu1 }
 0x103   : > { %v420_v43 = vadd.f32 %v661_v41, %v604_v16  ;;  %v452_v44 = vadd.f32 %v669_v42, %v604_v16  ;;  %v411_v45 = vpop.f32.mrb[5].mxu0  ;;  %v443_v46 = vpop.f32.mrb[5].mxu1 }
 0x104   : > { %v412_v47 = vadd.f32 %v604_v16, %v411_v45  ;;  %v444_v48 = vadd.f32 %v604_v16, %v443_v46  ;;  %v662_v49 = vpop.f32.mrb[6].mxu0  ;;  %v670_v50 = vpop.f32.mrb[6].mxu1 }
 0x105   : > { %v464_v51 = vmax.f32 %v420_v43, 0.0  ;;  %v472_v52 = vmax.f32 %v452_v44, 0.0  ;;  %v423_v53 = vadd.f32 %v662_v49, %v604_v16  ;;  %v455_v54 = vadd.f32 %v670_v50, %v604_v16  ;;  %v414_v55 = vpop.f32.mrb[7].mxu0  ;;  %v446_v56 = vpop.f32.mrb[7].mxu1 }
 0x106   : > { %v462_v57 = vmax.f32 %v412_v47, 0.0  ;;  %v470_v58 = vmax.f32 %v444_v48, 0.0  ;;  %v415_v59 = vadd.f32 %v604_v16, %v414_v55  ;;  %v447_v60 = vadd.f32 %v604_v16, %v446_v56 }
 0x107   : > { %481 = vst.msk [vmem:[%s836_s19 + $0x30] sm:$0xff] %vm474_vm0, %v464_v51  ;;  %489 = vst.msk [vmem:[%s836_s19 + $0x70] sm:$0xff] %vm474_vm0, %v472_v52  ;;  %v465_v61 = vmax.f32 %v423_v53, 0.0  ;;  %v473_v62 = vmax.f32 %v455_v54, 0.0 }
 0x108   : > { %479 = vst.msk [vmem:[%s836_s19 + $0x20] sm:$0xff] %vm474_vm0, %v462_v57  ;;  %487 = vst.msk [vmem:[%s836_s19 + $0x60] sm:$0xff] %vm474_vm0, %v470_v58  ;;  %v463_v63 = vmax.f32 %v415_v59, 0.0  ;;  %v471_v0 = vmax.f32 %v447_v60, 0.0 }
 0x109   : > { %482 = vst.msk [vmem:[%s836_s19 + $0x38] sm:$0xff] %vm474_vm0, %v465_v61  ;;  %490 = vst.msk [vmem:[%s836_s19 + $0x78] sm:$0xff] %vm474_vm0, %v473_v62 }
 0x10a   : > { %480 = vst.msk [vmem:[%s836_s19 + $0x28] sm:$0xff] %vm474_vm0, %v463_v63  ;;  %488 = vst.msk [vmem:[%s836_s19 + $0x68] sm:$0xff] %vm474_vm0, %v471_v0 }
 0x10b PF: > { %s13_s14 = sadd.s32 1, %s749_s14   ;;  %s883_s12 = smov %s745_s13 }
 0x10c   : > { %p10_p5 = scmp.ge.s32.totalorder %s13_s14, 6   ;;  %s884_s13 = smov %s886_s15 }
 0x10e   :  { %12 = sbr.rel (!%p10_p5) target bundleno = 2 (0x2), region = 68 }

// kernel: _lambda_.11
= control target key start
LH: loop header
LB: loop body
LE: loop exit
PB: predicated region body
PF: predicated region fallthrough
CT: control target
= control target key end

     0   :  { %s1689_s12 = smov 0   ;;  %s1691_s13 = smov 0   ;;  %s1976_s0 = inlined_call_operand.vmem [shape: bf16[512,640], index: 0, kind: input, shape index: {}]   ;;  %s1977_s1 = inlined_call_operand.vmem [shape: bf16[640,64], index: 1, kind: input, shape index: {}]   ;;  %s1978_s2 = inlined_call_operand.vmem [shape: f32[1,64], index: 2, kind: input, shape index: {}]   ;;  %s1979_s3 = inlined_call_operand.vmem [shape: f32[512,64], index: 3, kind: output, shape index: {}]  }
   0x1   :  { %s1693_s14 = smov 0  }
   0x2 LB: > { %s25_s15 = sadd.s32 1, %s1663_s13  ;;  %p1244_p0 = scmp.ge.s32.totalorder %s1667_s14, 1  ;;  %s1667_s14 = sphi %s1693_s14, %s13_s14   ;;  %s1663_s13 = sphi %s1691_s13, %s1981_s13   ;;  %s1659_s12 = sphi %s1689_s12, %s1980_s12  }
   0x3   : > { %p27_p1 = scmp.ge.s32.totalorder %s25_s15, 4  ;;  %p170_p2 = scmp.lt.s32.totalorder %s1667_s14, 5 }
   0x5   : > { %s1983_s15 = smov (%p27_p1, %s25_s15), 0  ;;  %p171_p3 = pnand %p1244_p0, %p170_p2 }
   0x6   : > { %v1549_v0 = vld [vmem:[%s1977_s1 + $0x40] sm:$0xff] (!%p171_p3)   ;;  %v1553_v4 = vld [vmem:[%s1977_s1 + $0x48] sm:$0xff] (!%p171_p3)   ;;  %v1557_v8 = vld [vmem:[%s1977_s1 + $0x50] sm:$0xff] (!%p171_p3)   ;;  %s1245_s23 = sshll.u32 (!%p171_p3), %s1659_s12, 4  ;;  %vm1119_vm0 = vcmask (!%p171_p3), 523264  }
   0x7   : > { %174 = sbr.rel (%p171_p3) target bundleno = 333 (0x14d), region = 32  ;;  %v1550_v1 = vld [vmem:[%s1977_s1 + $0xc0] sm:$0xff] (!%p171_p3)   ;;  %1332 = vmatprep.subr.bf16.mxu0 (!%p171_p3), %v1549_v0  ;;  %v1554_v5 = vld [vmem:[%s1977_s1 + $0xc8] sm:$0xff] (!%p171_p3)   ;;  %v1558_v9 = vld [vmem:[%s1977_s1 + $0xd0] sm:$0xff] (!%p171_p3)   ;;  %p206_p4 = scmp.lt.s32.totalorder (!%p171_p3), %s1245_s23, 63 }
   0x8   : > { %v1551_v2 = vld [vmem:[%s1977_s1] sm:$0xff] (!%p171_p3)   ;;  %1396 = vmatprep.subr.bf16.mxu1 (!%p171_p3), %v1550_v1  ;;  %v1555_v6 = vld [vmem:[%s1977_s1 + $0x8] sm:$0xff] (!%p171_p3)   ;;  %v1559_v10 = vld [vmem:[%s1977_s1 + $0x10] sm:$0xff] (!%p171_p3)  }
   0x9   : > { %v1552_v3 = vld [vmem:[%s1977_s1 + $0x80] sm:$0xff] (!%p171_p3)   ;;  %1333 = vmatpush3.bf16.msra.mxu0 (!%p171_p3), %v1551_v2  ;;  %v1556_v7 = vld [vmem:[%s1977_s1 + $0x88] sm:$0xff] (!%p171_p3)   ;;  %v1560_v11 = vld [vmem:[%s1977_s1 + $0x90] sm:$0xff] (!%p171_p3)  }
   0xa   : > { %1397 = vmatpush3.bf16.msra.mxu1 (!%p171_p3), %v1552_v3  ;;  %1334 = vmatprep.subr.bf16.mxu0 (!%p171_p3), %v1553_v4  ;;  %v1561_v12 = vld [vmem:[%s1977_s1 + $0x58] sm:$0xff] (!%p171_p3)   ;;  %v1565_v16 = vld [vmem:[%s1977_s1 + $0x60] sm:$0xff] (!%p171_p3)   ;;  %v1569_v20 = vld [vmem:[%s1977_s1 + $0x68] sm:$0xff] (!%p171_p3)  }
   0xb   : > { %1398 = vmatprep.subr.bf16.mxu1 (!%p171_p3), %v1554_v5  ;;  %v1562_v13 = vld [vmem:[%s1977_s1 + $0xd8] sm:$0xff] (!%p171_p3)   ;;  %v1566_v17 = vld [vmem:[%s1977_s1 + $0xe0] sm:$0xff] (!%p171_p3)   ;;  %v1570_v21 = vld [vmem:[%s1977_s1 + $0xe8] sm:$0xff] (!%p171_p3)  }
   0xc   : > { %v1563_v14 = vld [vmem:[%s1977_s1 + $0x18] sm:$0xff] (!%p171_p3)   ;;  %v1567_v18 = vld [vmem:[%s1977_s1 + $0x20] sm:$0xff] (!%p171_p3)   ;;  %v1571_v22 = vld [vmem:[%s1977_s1 + $0x28] sm:$0xff] (!%p171_p3)  }
   0xd   : > { %1335 = vmatpush3.bf16.msra.mxu0 (!%p171_p3), %v1555_v6  ;;  %v1564_v15 = vld [vmem:[%s1977_s1 + $0x98] sm:$0xff] (!%p171_p3)   ;;  %v1568_v19 = vld [vmem:[%s1977_s1 + $0xa0] sm:$0xff] (!%p171_p3)   ;;  %v1572_v23 = vld [vmem:[%s1977_s1 + $0xa8] sm:$0xff] (!%p171_p3)  }
   0xe   : > { %1399 = vmatpush3.bf16.msra.mxu1 %v1556_v7  ;;  %1336 = vmatprep.subr.bf16.mxu0 %v1557_v8  ;;  %s1985_s23 = smov (!%p206_p4, %s1245_s23), 63  ;;  %v1573_v24 = vld [vmem:[%s1977_s1 + $0x70] sm:$0xff]   ;;  %v1577_v28 = vld [vmem:[%s1977_s1 + $0x78] sm:$0xff]   ;;  %v1587_v36 = vld [vmem:[%s1977_s1 + $0x100] sm:$0xff]  }
   0xf   : > { %1400 = vmatprep.subr.bf16.mxu1 %v1558_v9  ;;  %v1574_v25 = vld [vmem:[%s1977_s1 + $0xf0] sm:$0xff]   ;;  %s1524_s22 = smul.u32 20, %s1985_s23  ;;  %v1578_v29 = vld [vmem:[%s1977_s1 + $0xf8] sm:$0xff]   ;;  %v1594_v39 = vld [vmem:[%s1977_s1 + $0x108] sm:$0xff]  }
  0x10   : > { %v1575_v26 = vld [vmem:[%s1977_s1 + $0x30] sm:$0xff]   ;;  %v1579_v30 = vld [vmem:[%s1977_s1 + $0x38] sm:$0xff]   ;;  %v1615_v50 = vld [vmem:[%s1977_s1 + $0x120] sm:$0xff]  }
  0x11   : > { %1337 = vmatpush3.bf16.msra.mxu0 %v1559_v10  ;;  %v1576_v27 = vld [vmem:[%s1977_s1 + $0xb0] sm:$0xff]   ;;  %s1806_s6 = scalar_lea.vmem %s1976_s0, %s1524_s22  ;;  %v1580_v31 = vld [vmem:[%s1977_s1 + $0xb8] sm:$0xff]   ;;  %v1622_v51 = vld [vmem:[%s1977_s1 + $0x128] sm:$0xff]  }
  0x12   : > { %1401 = vmatpush3.bf16.msra.mxu1 %v1560_v11  ;;  %1338 = vmatprep.subr.bf16.mxu0 %v1561_v12  ;;  %v1581_v32 = vld [vmem:[%s1806_s6] ss:$20 sps:$4 sm:$0xff]   ;;  %v1583_v33 = vld [vmem:[%s1806_s6 + $0x4] ss:$20 sps:$4 sm:$0xff]   ;;  %v1584_v34 = vld [vmem:[%s1806_s6 + $0x8] ss:$20 sps:$4 sm:$0xff]  }
  0x13   : > { %1402 = vmatprep.subr.bf16.mxu1 %v1562_v13  ;;  %v1586_v35 = vld [vmem:[%s1806_s6 + $0xc] ss:$20 sps:$4 sm:$0xff]   ;;  %844 = vmatprep.mubr.bf16.mxu0 %v1583_v33  ;;  %v1590_v38 = vld [vmem:[%s1806_s6 + $0x34] ss:$20 sps:$4 sm:$0xff]   ;;  %v1593_v41 = vld [vmem:[%s1806_s6 + $0x30] ss:$20 sps:$4 sm:$0xff]  }
  0x14   : > { %941 = vmatprep.mubr.bf16.mxu1 %v1586_v35  ;;  %v1588_v37 = vld [vmem:[%s1806_s6 + $0x2c] ss:$20 sps:$4 sm:$0xff]   ;;  %v1592_v40 = vld [vmem:[%s1806_s6 + $0x28] ss:$20 sps:$4 sm:$0xff]   ;;  %v1601_v44 = vld [vmem:[%s1977_s1 + $0x110] sm:$0xff]  }
  0x15   : > { %1339 = vmatpush3.bf16.msra.mxu0 %v1563_v14  ;;  %v1595_v42 = vld [vmem:[%s1806_s6 + $0x54] ss:$20 sps:$4 sm:$0xff]   ;;  %v1597_v43 = vld [vmem:[%s1806_s6 + $0x5c] ss:$20 sps:$4 sm:$0xff]   ;;  %v1600_v47 = vld [vmem:[%s1806_s6 + $0x58] ss:$20 sps:$4 sm:$0xff]  }
  0x16   : > { %1403 = vmatpush3.bf16.msra.mxu1 %v1564_v15  ;;  %1340 = vmatprep.subr.bf16.mxu0 %v1565_v16  ;;  %v1608_v45 = vld [vmem:[%s1977_s1 + $0x118] sm:$0xff]   ;;  %v1599_v46 = vld [vmem:[%s1806_s6 + $0x50] ss:$20 sps:$4 sm:$0xff]   ;;  %v1607_v53 = vld [vmem:[%s1806_s6 + $0x80] ss:$20 sps:$4 sm:$0xff]  }
  0x17   : > { %1404 = vmatprep.subr.bf16.mxu1 %v1566_v17  ;;  %v1602_v48 = vld [vmem:[%s1806_s6 + $0x7c] ss:$20 sps:$4 sm:$0xff]   ;;  %v1604_v49 = vld [vmem:[%s1806_s6 + $0x84] ss:$20 sps:$4 sm:$0xff]   ;;  %v1611_v56 = vld [vmem:[%s1806_s6 + $0xac] ss:$20 sps:$4 sm:$0xff]  }
  0x18   : > { %v1606_v52 = vld [vmem:[%s1806_s6 + $0x78] ss:$20 sps:$4 sm:$0xff]   ;;  %v1629_v55 = vld [vmem:[%s1977_s1 + $0x130] sm:$0xff]   ;;  %v1614_v59 = vld [vmem:[%s1806_s6 + $0xa8] ss:$20 sps:$4 sm:$0xff]  }
  0x19   : > { %1341 = vmatpush3.bf16.msra.mxu0 %v1567_v18  ;;  %v1609_v54 = vld [vmem:[%s1806_s6 + $0xa4] ss:$20 sps:$4 sm:$0xff]   ;;  %v1613_v58 = vld [vmem:[%s1806_s6 + $0xa0] ss:$20 sps:$4 sm:$0xff]   ;;  %v1620_v62 = vld [vmem:[%s1806_s6 + $0xc8] ss:$20 sps:$4 sm:$0xff]  }
  0x1a   : > { %1405 = vmatpush3.bf16.msra.mxu1 %v1568_v19  ;;  %1342 = vmatprep.subr.bf16.mxu0 %v1569_v20  ;;  %v1636_v57 = vld [vmem:[%s1977_s1 + $0x138] sm:$0xff]   ;;  %v1616_v60 = vld [vmem:[%s1806_s6 + $0xcc] ss:$20 sps:$4 sm:$0xff]   ;;  %v1618_v61 = vld [vmem:[%s1806_s6 + $0xd4] ss:$20 sps:$4 sm:$0xff]  }
  0x1b   : > { %1406 = vmatprep.subr.bf16.mxu1 %v1570_v21  ;;  %v1621_v63 = vld [vmem:[%s1806_s6 + $0xd0] ss:$20 sps:$4 sm:$0xff]   ;;  %v1623_v0 = vld [vmem:[%s1806_s6 + $0xf4] ss:$20 sps:$4 sm:$0xff]   ;;  %v1628_v3 = vld [vmem:[%s1806_s6 + $0xf8] ss:$20 sps:$4 sm:$0xff]  }
  0x1c   : > { %v1625_v1 = vld [vmem:[%s1806_s6 + $0xfc] ss:$20 sps:$4 sm:$0xff]   ;;  %v1632_v5 = vld [vmem:[%s1806_s6 + $0x124] ss:$20 sps:$4 sm:$0xff]   ;;  %v1635_v7 = vld [vmem:[%s1806_s6 + $0x120] ss:$20 sps:$4 sm:$0xff]  }
  0x1d   : > { %1343 = vmatpush3.bf16.msra.mxu0 %v1571_v22  ;;  %v1627_v2 = vld [vmem:[%s1806_s6 + $0xf0] ss:$20 sps:$4 sm:$0xff]   ;;  %v1634_v6 = vld [vmem:[%s1806_s6 + $0x118] ss:$20 sps:$4 sm:$0xff]   ;;  %v1641_v12 = vld [vmem:[%s1806_s6 + $0x60] ss:$20 sps:$4 sm:$0xff]  }
  0x1e   : > { %1407 = vmatpush3.bf16.msra.mxu1 %v1572_v23  ;;  %1344 = vmatprep.subr.bf16.mxu0 %v1573_v24  ;;  %v1630_v4 = vld [vmem:[%s1806_s6 + $0x11c] ss:$20 sps:$4 sm:$0xff]   ;;  %v1639_v10 = vld [vmem:[%s1806_s6 + $0x38] ss:$20 sps:$4 sm:$0xff]   ;;  %v1642_v13 = vld [vmem:[%s1806_s6 + $0x100] ss:$20 sps:$4 sm:$0xff]  }
  0x1f   : > { %1408 = vmatprep.subr.bf16.mxu1 %v1574_v25  ;;  %v1637_v8 = vld [vmem:[%s1806_s6 + $0x10] ss:$20 sps:$4 sm:$0xff]   ;;  %v1640_v11 = vld [vmem:[%s1806_s6 + $0xd8] ss:$20 sps:$4 sm:$0xff]   ;;  %v1643_v14 = vld [vmem:[%s1806_s6 + $0x88] ss:$20 sps:$4 sm:$0xff]  }
  0x20   : > { %v1638_v9 = vld [vmem:[%s1806_s6 + $0xb0] ss:$20 sps:$4 sm:$0xff]   ;;  %v1644_v15 = vld [vmem:[%s1806_s6 + $0x128] ss:$20 sps:$4 sm:$0xff]   ;;  %v1881_v18 = vld [vmem:[%s1978_s2] ss:$0 sm:$0xff] }
  0x21   : > { %1345 = vmatpush3.bf16.msra.mxu0 %v1575_v26  ;;  %s1248_s6 = sshll.u32 %s1985_s23, 3 }
  0x22   : > { %1409 = vmatpush3.bf16.msra.mxu1 %v1576_v27  ;;  %1346 = vmatprep.subr.bf16.mxu0 %v1577_v28  ;;  %s1924_s9 = scalar_lea.vmem %s1979_s3, %s1248_s6 }
  0x23   : > { %1410 = vmatprep.subr.bf16.mxu1 %v1578_v29 }
  0x25   : > { %1347 = vmatpush3.bf16.msra.mxu0 %v1579_v30 }
  0x26   : > { %1411 = vmatpush3.bf16.msra.mxu1 %v1580_v31  ;;  %1476 = vmatprep.subr.bf16.mxu0 %v1587_v36 }
  0x27   : > { %1508 = vmatprep.subr.bf16.mxu1 %v1587_v36 }
  0x28   : > { %845 = vmatmul.mubr.bf16.vlgmr.msra.gmra.mrb[0].mxu0 %v1581_v32 }
  0x29   : > { %942 = vmatmul.mubr.bf16.vlgmr.msra.gmra.mrb[0].mxu1 %v1584_v34  ;;  %1477 = vmatpush3.bf16.msra.mxu0 %v1587_v36 }
  0x2a   : > { %1516 = vmatpush3.bf16.msra.mxu1 %v1587_v36  ;;  %852 = vmatprep.mubr.bf16.mxu0 %v1588_v37 }
  0x2b   : > { %949 = vmatprep.mubr.bf16.mxu1 %v1590_v38  ;;  %1478 = vmatprep.subr.bf16.mxu0 %v1594_v39 }
  0x2c   : > { %1509 = vmatprep.subr.bf16.mxu1 %v1594_v39 }
  0x2d   : > { %1479 = vmatpush3.bf16.msra.mxu0 %v1594_v39 }
  0x2e   : > { %1517 = vmatpush3.bf16.msra.mxu1 %v1594_v39  ;;  %1480 = vmatprep.subr.bf16.mxu0 %v1601_v44 }
  0x2f   : > { %1510 = vmatprep.subr.bf16.mxu1 %v1601_v44 }
  0x30   : > { %853 = vmatmul.mubr.bf16.gmra.mrb[4].mxu0 %v1592_v40 }
  0x31   : > { %950 = vmatmul.mubr.bf16.gmra.mrb[4].mxu1 %v1593_v41  ;;  %860 = vmatprep.mubr.bf16.mxu0 %v1595_v42 }
  0x32   : > { %957 = vmatprep.mubr.bf16.mxu1 %v1597_v43  ;;  %1481 = vmatpush3.bf16.msra.mxu0 %v1601_v44 }
  0x33   : > { %1518 = vmatpush3.bf16.msra.mxu1 %v1601_v44  ;;  %1482 = vmatprep.subr.bf16.mxu0 %v1608_v45 }
  0x34   : > { %1511 = vmatprep.subr.bf16.mxu1 %v1608_v45 }
  0x36   : > { %1483 = vmatpush3.bf16.msra.mxu0 %v1608_v45 }
  0x37   : > { %1519 = vmatpush3.bf16.msra.mxu1 %v1608_v45  ;;  %1484 = vmatprep.subr.bf16.mxu0 %v1615_v50 }
  0x38   : > { %861 = vmatmul.mubr.bf16.gmra.mrb[8].mxu0 %v1599_v46  ;;  %1512 = vmatprep.subr.bf16.mxu1 %v1615_v50 }
  0x39   : > { %958 = vmatmul.mubr.bf16.gmra.mrb[8].mxu1 %v1600_v47  ;;  %868 = vmatprep.mubr.bf16.mxu0 %v1602_v48 }
  0x3a   : > { %965 = vmatprep.mubr.bf16.mxu1 %v1604_v49  ;;  %1485 = vmatpush3.bf16.msra.mxu0 %v1615_v50 }
  0x3b   : > { %1520 = vmatpush3.bf16.msra.mxu1 %v1615_v50  ;;  %1486 = vmatprep.subr.bf16.mxu0 %v1622_v51 }
  0x3c   : > { %1513 = vmatprep.subr.bf16.mxu1 %v1622_v51 }
  0x3e   : > { %1487 = vmatpush3.bf16.msra.mxu0 %v1622_v51 }
  0x3f   : > { %1521 = vmatpush3.bf16.msra.mxu1 %v1622_v51  ;;  %1488 = vmatprep.subr.bf16.mxu0 %v1629_v55 }
  0x40   : > { %869 = vmatmul.mubr.bf16.gmra.mrb[12].mxu0 %v1606_v52  ;;  %1514 = vmatprep.subr.bf16.mxu1 %v1629_v55 }
  0x41   : > { %966 = vmatmul.mubr.bf16.gmra.mrb[12].mxu1 %v1607_v53  ;;  %876 = vmatprep.mubr.bf16.mxu0 %v1609_v54 }
  0x42   : > { %973 = vmatprep.mubr.bf16.mxu1 %v1611_v56  ;;  %1489 = vmatpush3.bf16.msra.mxu0 %v1629_v55 }
  0x43   : > { %1522 = vmatpush3.bf16.msra.mxu1 %v1629_v55  ;;  %1490 = vmatprep.subr.bf16.mxu0 %v1636_v57 }
  0x44   : > { %1515 = vmatprep.subr.bf16.mxu1 %v1636_v57 }
  0x46   : > { %1491 = vmatpush3.bf16.msra.mxu0 %v1636_v57 }
  0x47   : > { %1523 = vmatpush3.bf16.msra.mxu1 %v1636_v57 }
  0x48   : > { %877 = vmatmul.mubr.bf16.gmra.mrb[16].mxu0 %v1613_v58 }
  0x49   : > { %974 = vmatmul.mubr.bf16.gmra.mrb[16].mxu1 %v1614_v59  ;;  %884 = vmatprep.mubr.bf16.mxu0 %v1616_v60 }
  0x4a   : > { %981 = vmatprep.mubr.bf16.mxu1 %v1618_v61 }
  0x50   : > { %885 = vmatmul.mubr.bf16.gmra.mrb[20].mxu0 %v1620_v62 }
  0x51   : > { %982 = vmatmul.mubr.bf16.gmra.mrb[20].mxu1 %v1621_v63  ;;  %892 = vmatprep.mubr.bf16.mxu0 %v1623_v0 }
  0x52   : > { %989 = vmatprep.mubr.bf16.mxu1 %v1625_v1 }
  0x58   : > { %893 = vmatmul.mubr.bf16.gmra.mrb[24].mxu0 %v1627_v2 }
  0x59   : > { %990 = vmatmul.mubr.bf16.gmra.mrb[24].mxu1 %v1628_v3  ;;  %900 = vmatprep.mubr.bf16.mxu0 %v1630_v4 }
  0x5a   : > { %997 = vmatprep.mubr.bf16.mxu1 %v1632_v5 }
  0x60   : > { %901 = vmatmul.mubr.bf16.gmra.mrb[28].mxu0 %v1634_v6 }
  0x61   : > { %998 = vmatmul.mubr.bf16.gmra.mrb[28].mxu1 %v1635_v7  ;;  %1492 = vmatprep.mubr.bf16.mxu0 %v1637_v8 }
  0x62   : > { %1500 = vmatprep.mubr.bf16.mxu1 %v1638_v9 }
  0x68   : > { %1493 = vmatmul.mubr.bf16.vlgmr.msra.gmra.mrb[32].mxu0 %v1639_v10 }
  0x69   : > { %1501 = vmatmul.mubr.bf16.vlgmr.msra.gmra.mrb[32].mxu1 %v1640_v11  ;;  %1496 = vmatprep.mubr.bf16.mxu0 %v1641_v12 }
  0x6a   : > { %1504 = vmatprep.mubr.bf16.mxu1 %v1642_v13 }
  0x70   : > { %1497 = vmatmul.mubr.bf16.gmra.mrb[36].mxu0 %v1643_v14 }
  0x71   : > { %1505 = vmatmul.mubr.bf16.gmra.mrb[36].mxu1 %v1644_v15 }
  0xfb   : > { %v1348_v16 = vpop.f32.mrb[0].mxu0 }
  0xfc   : > { %v1412_v17 = vpop.f32.mrb[0].mxu1  ;;  %v1349_v19 = vpop.f32.mrb[1].mxu0 }
  0xfd   : > { %v1350_v20 = vadd.f32 %v1349_v19, %v1348_v16  ;;  %v1413_v21 = vpop.f32.mrb[1].mxu1  ;;  %v1351_v22 = vpop.f32.mrb[2].mxu0 }
  0xfe   : > { %v1414_v23 = vadd.f32 %v1413_v21, %v1412_v17  ;;  %v1415_v24 = vpop.f32.mrb[2].mxu1  ;;  %v1352_v25 = vpop.f32.mrb[3].mxu0 }
  0xff   : > { %v847_v26 = vadd.f32 %v1350_v20, %v1881_v18  ;;  %v1353_v27 = vadd.f32 %v1352_v25, %v1351_v22  ;;  %v1416_v28 = vpop.f32.mrb[3].mxu1 }
 0x100   : > { %v1417_v29 = vadd.f32 %v1416_v28, %v1415_v24 }
 0x101   : > { %v850_v30 = vadd.f32 %v1353_v27, %v1881_v18  ;;  %v1885_v31 = vadd.f32 %v1414_v23, %v847_v26 }
 0x103   : > { %v1354_v32 = vpop.f32.mrb[4].mxu0  ;;  %v1887_v33 = vadd.f32 %v1417_v29, %v850_v30 }
 0x104   : > { %v1418_v34 = vpop.f32.mrb[4].mxu1  ;;  %v1355_v35 = vpop.f32.mrb[5].mxu0 }
 0x105   : > { %v1356_v36 = vadd.f32 %v1355_v35, %v1354_v32  ;;  %v1419_v37 = vpop.f32.mrb[5].mxu1  ;;  %v1357_v38 = vpop.f32.mrb[6].mxu0 }
 0x106   : > { %v1420_v39 = vadd.f32 %v1419_v37, %v1418_v34  ;;  %v1421_v40 = vpop.f32.mrb[6].mxu1  ;;  %v1358_v41 = vpop.f32.mrb[7].mxu0 }
 0x107   : > { %v855_v42 = vadd.f32 %v1356_v36, %v1881_v18  ;;  %v1359_v43 = vadd.f32 %v1358_v41, %v1357_v38  ;;  %v1422_v44 = vpop.f32.mrb[7].mxu1 }
 0x108   : > { %v1423_v45 = vadd.f32 %v1422_v44, %v1421_v40 }
 0x109   : > { %v858_v46 = vadd.f32 %v1359_v43, %v1881_v18  ;;  %v1891_v47 = vadd.f32 %v1420_v39, %v855_v42 }
 0x10b   : > { %v1360_v48 = vpop.f32.mrb[8].mxu0  ;;  %v1893_v49 = vadd.f32 %v1423_v45, %v858_v46 }
 0x10c   : > { %v1424_v50 = vpop.f32.mrb[8].mxu1  ;;  %v1361_v51 = vpop.f32.mrb[9].mxu0 }
 0x10d   : > { %v1362_v52 = vadd.f32 %v1361_v51, %v1360_v48  ;;  %v1425_v53 = vpop.f32.mrb[9].mxu1  ;;  %v1363_v54 = vpop.f32.mrb[10].mxu0 }
 0x10e   : > { %v1426_v55 = vadd.f32 %v1425_v53, %v1424_v50  ;;  %v1427_v56 = vpop.f32.mrb[10].mxu1  ;;  %v1364_v57 = vpop.f32.mrb[11].mxu0 }
 0x10f   : > { %v863_v58 = vadd.f32 %v1362_v52, %v1881_v18  ;;  %v1365_v59 = vadd.f32 %v1364_v57, %v1363_v54  ;;  %v1428_v60 = vpop.f32.mrb[11].mxu1 }
 0x110   : > { %v1429_v61 = vadd.f32 %v1428_v60, %v1427_v56 }
 0x111   : > { %v866_v62 = vadd.f32 %v1365_v59, %v1881_v18  ;;  %v1897_v63 = vadd.f32 %v1426_v55, %v863_v58 }
 0x113   : > { %v1366_v0 = vpop.f32.mrb[12].mxu0  ;;  %v1899_v1 = vadd.f32 %v1429_v61, %v866_v62 }
 0x114   : > { %v1430_v2 = vpop.f32.mrb[12].mxu1  ;;  %v1367_v3 = vpop.f32.mrb[13].mxu0 }
 0x115   : > { %v1368_v4 = vadd.f32 %v1367_v3, %v1366_v0  ;;  %v1431_v5 = vpop.f32.mrb[13].mxu1  ;;  %v1369_v6 = vpop.f32.mrb[14].mxu0 }
 0x116   : > { %v1432_v7 = vadd.f32 %v1431_v5, %v1430_v2  ;;  %v1433_v8 = vpop.f32.mrb[14].mxu1  ;;  %v1370_v9 = vpop.f32.mrb[15].mxu0 }
 0x117   : > { %v871_v10 = vadd.f32 %v1368_v4, %v1881_v18  ;;  %v1371_v11 = vadd.f32 %v1370_v9, %v1369_v6  ;;  %v1434_v12 = vpop.f32.mrb[15].mxu1 }
 0x118   : > { %v1435_v13 = vadd.f32 %v1434_v12, %v1433_v8 }
 0x119   : > { %v874_v14 = vadd.f32 %v1371_v11, %v1881_v18  ;;  %v1903_v15 = vadd.f32 %v1432_v7, %v871_v10 }
 0x11b   : > { %v1372_v16 = vpop.f32.mrb[16].mxu0  ;;  %v1905_v17 = vadd.f32 %v1435_v13, %v874_v14 }
 0x11c   : > { %v1436_v19 = vpop.f32.mrb[16].mxu1  ;;  %v1373_v20 = vpop.f32.mrb[17].mxu0 }
 0x11d   : > { %v1374_v21 = vadd.f32 %v1373_v20, %v1372_v16  ;;  %v1437_v22 = vpop.f32.mrb[17].mxu1  ;;  %v1375_v23 = vpop.f32.mrb[18].mxu0 }
 0x11e   : > { %v1438_v24 = vadd.f32 %v1437_v22, %v1436_v19  ;;  %v1439_v25 = vpop.f32.mrb[18].mxu1  ;;  %v1376_v26 = vpop.f32.mrb[19].mxu0 }
 0x11f   : > { %v879_v27 = vadd.f32 %v1374_v21, %v1881_v18  ;;  %v1377_v28 = vadd.f32 %v1376_v26, %v1375_v23  ;;  %v1440_v29 = vpop.f32.mrb[19].mxu1 }
 0x120   : > { %v1441_v30 = vadd.f32 %v1440_v29, %v1439_v25 }
 0x121   : > { %v882_v32 = vadd.f32 %v1377_v28, %v1881_v18  ;;  %v976_v34 = vadd.f32 %v1438_v24, %v879_v27 }
 0x123   : > { %v1378_v35 = vpop.f32.mrb[20].mxu0  ;;  %v1909_v36 = vadd.f32 %v1441_v30, %v882_v32 }
 0x124   : > { %v1442_v37 = vpop.f32.mrb[20].mxu1  ;;  %v1379_v38 = vpop.f32.mrb[21].mxu0 }
 0x125   : > { %v1380_v39 = vadd.f32 %v1379_v38, %v1378_v35  ;;  %v1443_v40 = vpop.f32.mrb[21].mxu1  ;;  %v1381_v41 = vpop.f32.mrb[22].mxu0 }
 0x126   : > { %v1444_v42 = vadd.f32 %v1443_v40, %v1442_v37  ;;  %v1445_v43 = vpop.f32.mrb[22].mxu1  ;;  %v1382_v44 = vpop.f32.mrb[23].mxu0 }
 0x127   : > { %v887_v45 = vadd.f32 %v1380_v39, %v1881_v18  ;;  %v1383_v46 = vadd.f32 %v1382_v44, %v1381_v41  ;;  %v1446_v48 = vpop.f32.mrb[23].mxu1 }
 0x128   : > { %v1447_v50 = vadd.f32 %v1446_v48, %v1445_v43 }
 0x129   : > { %v890_v51 = vadd.f32 %v1383_v46, %v1881_v18  ;;  %v984_v52 = vadd.f32 %v1444_v42, %v887_v45 }
 0x12b   : > { %v1384_v53 = vpop.f32.mrb[24].mxu0  ;;  %v987_v54 = vadd.f32 %v1447_v50, %v890_v51 }
 0x12c   : > { %v1448_v55 = vpop.f32.mrb[24].mxu1  ;;  %v1385_v56 = vpop.f32.mrb[25].mxu0 }
 0x12d   : > { %v1386_v57 = vadd.f32 %v1385_v56, %v1384_v53  ;;  %v1449_v58 = vpop.f32.mrb[25].mxu1  ;;  %v1387_v59 = vpop.f32.mrb[26].mxu0 }
 0x12e   : > { %v1450_v60 = vadd.f32 %v1449_v58, %v1448_v55  ;;  %v1451_v61 = vpop.f32.mrb[26].mxu1  ;;  %v1388_v62 = vpop.f32.mrb[27].mxu0 }
 0x12f   : > { %v895_v0 = vadd.f32 %v1386_v57, %v1881_v18  ;;  %v1389_v2 = vadd.f32 %v1388_v62, %v1387_v59  ;;  %v1452_v3 = vpop.f32.mrb[27].mxu1 }
 0x130   : > { %v1453_v4 = vadd.f32 %v1452_v3, %v1451_v61 }
 0x131   : > { %v898_v5 = vadd.f32 %v1389_v2, %v1881_v18  ;;  %v992_v6 = vadd.f32 %v1450_v60, %v895_v0 }
 0x133   : > { %v1390_v7 = vpop.f32.mrb[28].mxu0  ;;  %v1915_v8 = vadd.f32 %v1453_v4, %v898_v5 }
 0x134   : > { %v1454_v9 = vpop.f32.mrb[28].mxu1  ;;  %v1391_v10 = vpop.f32.mrb[29].mxu0 }
 0x135   : > { %v1392_v11 = vadd.f32 %v1391_v10, %v1390_v7  ;;  %v1455_v12 = vpop.f32.mrb[29].mxu1  ;;  %v1393_v13 = vpop.f32.mrb[30].mxu0 }
 0x136   : > { %v1456_v14 = vadd.f32 %v1455_v12, %v1454_v9  ;;  %v1457_v16 = vpop.f32.mrb[30].mxu1  ;;  %v1394_v19 = vpop.f32.mrb[31].mxu0 }
 0x137   : > { %v903_v20 = vadd.f32 %v1392_v11, %v1881_v18  ;;  %v1395_v21 = vadd.f32 %v1394_v19, %v1393_v13  ;;  %v1458_v22 = vpop.f32.mrb[31].mxu1 }
 0x138   : > { %v1459_v23 = vadd.f32 %v1458_v22, %v1457_v16 }
 0x139   : > { %v906_v24 = vadd.f32 %v1395_v21, %v1881_v18  ;;  %v1000_v25 = vadd.f32 %v1456_v14, %v903_v20 }
 0x13b   : > { %v1494_v26 = vpop.f32.mrb[32].mxu0  ;;  %v1003_v27 = vadd.f32 %v1459_v23, %v906_v24 }
 0x13c   : > { %v1049_v28 = vadd.f32 %v1494_v26, %v1891_v47  ;;  %v1502_v29 = vpop.f32.mrb[32].mxu1  ;;  %v1040_v30 = vpop.f32.mrb[33].mxu0 }
 0x13d   : > { %v1081_v32 = vadd.f32 %v1502_v29, %v984_v52  ;;  %v1041_v35 = vadd.f32 %v1040_v30, %v1885_v31  ;;  %v1072_v37 = vpop.f32.mrb[33].mxu1  ;;  %v1495_v18 = vpop.f32.mrb[34].mxu0 }
 0x13e   : > { %v1105_v38 = vmax.f32 %v1049_v28, 0.0  ;;  %v1073_v39 = vadd.f32 %v1072_v37, %v976_v34  ;;  %v1052_v47 = vadd.f32 %v1495_v18, %v1893_v49  ;;  %v1503_v40 = vpop.f32.mrb[34].mxu1  ;;  %v1043_v41 = vpop.f32.mrb[35].mxu0 }
 0x13f   : > { %v1113_v42 = vmax.f32 %v1081_v32, 0.0  ;;  %v1103_v43 = vmax.f32 %v1041_v35, 0.0  ;;  %v1084_v44 = vadd.f32 %v1503_v40, %v987_v54  ;;  %v1044_v45 = vadd.f32 %v1043_v41, %v1887_v33  ;;  %v1075_v31 = vpop.f32.mrb[35].mxu1 }
 0x140   : > { %1122 = vst.msk [vmem:[%s1924_s9 + $0x10] sm:$0xff] %vm1119_vm0, %v1105_v38  ;;  %v1111_v46 = vmax.f32 %v1073_v39, 0.0  ;;  %v1106_v48 = vmax.f32 %v1052_v47, 0.0  ;;  %v1076_v34 = vadd.f32 %v1075_v31, %v1909_v36 }
 0x141   : > { %1130 = vst.msk [vmem:[%s1924_s9 + $0x50] sm:$0xff] %vm1119_vm0, %v1113_v42  ;;  %1120 = vst.msk [vmem:[%s1924_s9] sm:$0xff] %vm1119_vm0, %v1103_v43  ;;  %v1114_v49 = vmax.f32 %v1084_v44, 0.0  ;;  %v1104_v50 = vmax.f32 %v1044_v45, 0.0 }
 0x142   : > { %1128 = vst.msk [vmem:[%s1924_s9 + $0x40] sm:$0xff] %vm1119_vm0, %v1111_v46  ;;  %1123 = vst.msk [vmem:[%s1924_s9 + $0x18] sm:$0xff] %vm1119_vm0, %v1106_v48  ;;  %v1112_v51 = vmax.f32 %v1076_v34, 0.0 }
 0x143   : > { %1131 = vst.msk [vmem:[%s1924_s9 + $0x58] sm:$0xff] %vm1119_vm0, %v1114_v49  ;;  %1121 = vst.msk [vmem:[%s1924_s9 + $0x8] sm:$0xff] %vm1119_vm0, %v1104_v50  ;;  %v1498_v33 = vpop.f32.mrb[36].mxu0 }
 0x144   : > { %1129 = vst.msk [vmem:[%s1924_s9 + $0x48] sm:$0xff] %vm1119_vm0, %v1112_v51  ;;  %v1065_v36 = vadd.f32 %v1498_v33, %v1903_v15  ;;  %v1506_v52 = vpop.f32.mrb[36].mxu1  ;;  %v1056_v53 = vpop.f32.mrb[37].mxu0 }
 0x145   : > { %v1097_v54 = vadd.f32 %v1506_v52, %v1000_v25  ;;  %v1057_v55 = vadd.f32 %v1056_v53, %v1897_v63  ;;  %v1088_v56 = vpop.f32.mrb[37].mxu1  ;;  %v1499_v57 = vpop.f32.mrb[38].mxu0 }
 0x146   : > { %v1109_v58 = vmax.f32 %v1065_v36, 0.0  ;;  %v1089_v59 = vadd.f32 %v1088_v56, %v992_v6  ;;  %v1068_v60 = vadd.f32 %v1499_v57, %v1905_v17  ;;  %v1507_v61 = vpop.f32.mrb[38].mxu1  ;;  %v1059_v62 = vpop.f32.mrb[39].mxu0 }
 0x147   : > { %v1117_v0 = vmax.f32 %v1097_v54, 0.0  ;;  %v1107_v15 = vmax.f32 %v1057_v55, 0.0  ;;  %v1100_v2 = vadd.f32 %v1507_v61, %v1003_v27  ;;  %v1060_v63 = vadd.f32 %v1059_v62, %v1899_v1  ;;  %v1091_v3 = vpop.f32.mrb[39].mxu1 }
 0x148   : > { %1126 = vst.msk [vmem:[%s1924_s9 + $0x30] sm:$0xff] %vm1119_vm0, %v1109_v58  ;;  %v1115_v4 = vmax.f32 %v1089_v59, 0.0  ;;  %v1110_v5 = vmax.f32 %v1068_v60, 0.0  ;;  %v1092_v6 = vadd.f32 %v1091_v3, %v1915_v8 }
 0x149   : > { %1134 = vst.msk [vmem:[%s1924_s9 + $0x70] sm:$0xff] %vm1119_vm0, %v1117_v0  ;;  %1124 = vst.msk [vmem:[%s1924_s9 + $0x20] sm:$0xff] %vm1119_vm0, %v1107_v15  ;;  %v1118_v17 = vmax.f32 %v1100_v2, 0.0  ;;  %v1108_v7 = vmax.f32 %v1060_v63, 0.0 }
 0x14a   : > { %1132 = vst.msk [vmem:[%s1924_s9 + $0x60] sm:$0xff] %vm1119_vm0, %v1115_v4  ;;  %1127 = vst.msk [vmem:[%s1924_s9 + $0x38] sm:$0xff] %vm1119_vm0, %v1110_v5  ;;  %v1116_v9 = vmax.f32 %v1092_v6, 0.0 }
 0x14b   : > { %1135 = vst.msk [vmem:[%s1924_s9 + $0x78] sm:$0xff] %vm1119_vm0, %v1118_v17  ;;  %1125 = vst.msk [vmem:[%s1924_s9 + $0x28] sm:$0xff] %vm1119_vm0, %v1108_v7 }
 0x14c   : > { %1133 = vst.msk [vmem:[%s1924_s9 + $0x68] sm:$0xff] %vm1119_vm0, %v1116_v9 }
 0x14d PF: > { %s13_s14 = sadd.s32 1, %s1667_s14   ;;  %s1980_s12 = smov %s1663_s13 }
 0x14e   : > { %p10_p5 = scmp.ge.s32.totalorder %s13_s14, 6   ;;  %s1981_s13 = smov %s1983_s15 }
 0x150   :  { %12 = sbr.rel (!%p10_p5) target bundleno = 2 (0x2), region = 68 }

// kernel: squeeze.16
= control target key start
LH: loop header
LB: loop body
LE: loop exit
PB: predicated region body
PF: predicated region fallthrough
CT: control target
= control target key end

     0   :  { %s125_s10 = smov 64   ;;  %vm3_vm0 = vcmask 523264   ;;  %vm44_vm1 = vcmask 1048064   ;;  %s256_s0 = inlined_call_operand.vmem [shape: f32[2,8,1,8,1,64], index: 0, kind: input, shape index: {}]   ;;  %s257_s1 = inlined_call_operand.vmem [shape: f32[64,128], index: 1, kind: output, shape index: {}]  }
   0x1   :  { %v112_v0 = vld [vmem:[%s256_s0 + $0x11] ss:$2 sm:$0xff]   ;;  %v109_v1 = vld [vmem:[%s256_s0 + $0x1] ss:$2 sm:$0xff]   ;;  %v95_v4 = vld [vmem:[%s256_s0 + $0x10] ss:$2 sm:$0xff]  }
   0x2   :  { %55 = vrot.lane.b32.xlu1 %v112_v0, %s125_s10  ;;  %42 = vrot.lane.b32.xlu0 %v109_v1, %s125_s10  ;;  %v114_v2 = vld [vmem:[%s256_s0 + $0x51] ss:$2 sm:$0xff]   ;;  %v110_v3 = vld [vmem:[%s256_s0 + $0x41] ss:$2 sm:$0xff]  }
   0x3   :  { %v2_v5 = vld [vmem:[%s256_s0] ss:$2 sm:$0xff]   ;;  %v103_v6 = vld [vmem:[%s256_s0 + $0x50] ss:$2 sm:$0xff]   ;;  %96 = vst.msk [vmem:[%s257_s1 + $0x8] sm:$0xff] %vm3_vm0, %v95_v4  }
   0x4   :  { %4 = vst.msk [vmem:[%s257_s1] sm:$0xff] %vm3_vm0, %v2_v5   ;;  %104 = vst.msk [vmem:[%s257_s1 + $0x28] sm:$0xff] %vm3_vm0, %v103_v6   ;;  %v101_v7 = vld [vmem:[%s256_s0 + $0x40] ss:$2 sm:$0xff]   ;;  %v107_v10 = vld [vmem:[%s256_s0 + $0x70] ss:$2 sm:$0xff]  }
   0x5   :  { %v105_v8 = vld [vmem:[%s256_s0 + $0x60] ss:$2 sm:$0xff]   ;;  %102 = vst.msk [vmem:[%s257_s1 + $0x20] sm:$0xff] %vm3_vm0, %v101_v7   ;;  %v99_v11 = vld [vmem:[%s256_s0 + $0x30] ss:$2 sm:$0xff]   ;;  %108 = vst.msk [vmem:[%s257_s1 + $0x38] sm:$0xff] %vm3_vm0, %v107_v10  }
   0x6   :  { %v97_v9 = vld [vmem:[%s256_s0 + $0x20] ss:$2 sm:$0xff]   ;;  %62 = vrot.lane.b32.xlu1 %v114_v2, %s125_s10  ;;  %48 = vrot.lane.b32.xlu0 %v110_v3, %s125_s10  ;;  %106 = vst.msk [vmem:[%s257_s1 + $0x30] sm:$0xff] %vm3_vm0, %v105_v8  }
   0x7   :  { %98 = vst.msk [vmem:[%s257_s1 + $0x10] sm:$0xff] %vm3_vm0, %v97_v9   ;;  %v118_v12 = vld [vmem:[%s256_s0 + $0x61] ss:$2 sm:$0xff]   ;;  %100 = vst.msk [vmem:[%s257_s1 + $0x18] sm:$0xff] %vm3_vm0, %v99_v11   ;;  %v122_v14 = vld [vmem:[%s256_s0 + $0x71] ss:$2 sm:$0xff]  }
   0x8   :  { %v116_v13 = vld [vmem:[%s256_s0 + $0x21] ss:$2 sm:$0xff]   ;;  %v120_v15 = vld [vmem:[%s256_s0 + $0x31] ss:$2 sm:$0xff]  }
   0xa   :  { %76 = vrot.lane.b32.xlu1 %v118_v12, %s125_s10  ;;  %69 = vrot.lane.b32.xlu0 %v116_v13, %s125_s10 }
   0xe   :  { %90 = vrot.lane.b32.xlu1 %v122_v14, %s125_s10  ;;  %83 = vrot.lane.b32.xlu0 %v120_v15, %s125_s10 }
  0x74   :  { %v56_v16 = vpop.permute.xlu1 %55   ;;  %v43_v17 = vpop.permute.xlu0 %42  }
  0x75   :  { %113 = vst.msk [vmem:[%s257_s1 + $0x8] sm:$0xff] %vm44_vm1, %v56_v16   ;;  %45 = vst.msk [vmem:[%s257_s1] sm:$0xff] %vm44_vm1, %v43_v17  }
  0x78   :  { %v63_v18 = vpop.permute.xlu1 %62   ;;  %v49_v19 = vpop.permute.xlu0 %48  }
  0x79   :  { %115 = vst.msk [vmem:[%s257_s1 + $0x28] sm:$0xff] %vm44_vm1, %v63_v18   ;;  %111 = vst.msk [vmem:[%s257_s1 + $0x20] sm:$0xff] %vm44_vm1, %v49_v19  }
  0x7c   :  { %v77_v20 = vpop.permute.xlu1 %76   ;;  %v70_v21 = vpop.permute.xlu0 %69  }
  0x7d   :  { %119 = vst.msk [vmem:[%s257_s1 + $0x30] sm:$0xff] %vm44_vm1, %v77_v20   ;;  %117 = vst.msk [vmem:[%s257_s1 + $0x10] sm:$0xff] %vm44_vm1, %v70_v21  }
  0x80   :  { %v91_v22 = vpop.permute.xlu1 %90   ;;  %v84_v23 = vpop.permute.xlu0 %83  }
  0x81   :  { %123 = vst.msk [vmem:[%s257_s1 + $0x38] sm:$0xff] %vm44_vm1, %v91_v22   ;;  %121 = vst.msk [vmem:[%s257_s1 + $0x18] sm:$0xff] %vm44_vm1, %v84_v23  }

// kernel: _lambda_.12
= control target key start
LH: loop header
LB: loop body
LE: loop exit
PB: predicated region body
PF: predicated region fallthrough
CT: control target
= control target key end

     0   :  { %s230_s0 = inlined_call_operand.vmem [shape: f32[64,128], index: 0, kind: input, shape index: {}]   ;;  %s231_s1 = inlined_call_operand.vmem [shape: f32[64,128], index: 1, kind: input, shape index: {}]   ;;  %s232_s2 = inlined_call_operand.vmem [shape: f32[64,128], index: 2, kind: input, shape index: {}]   ;;  %s233_s3 = inlined_call_operand.vmem [shape: f32[64,128], index: 3, kind: input, shape index: {}]   ;;  %s234_s4 = inlined_call_operand.vmem [shape: f32[64,128], index: 4, kind: output, shape index: {}]  }
   0x1   :  { %v17_v0 = vld [vmem:[%s230_s0] sm:$0xff]  ;;  %v18_v5 = vld [vmem:[%s230_s0 + $0x8] sm:$0xff]  ;;  %v19_v11 = vld [vmem:[%s230_s0 + $0x10] sm:$0xff] }
   0x2   :  { %v25_v1 = vld [vmem:[%s231_s1] sm:$0xff]  ;;  %v26_v6 = vld [vmem:[%s231_s1 + $0x8] sm:$0xff]  ;;  %v27_v13 = vld [vmem:[%s231_s1 + $0x10] sm:$0xff] }
   0x3   :  { %v41_v2 = vld [vmem:[%s232_s2] sm:$0xff]  ;;  %v33_v3 = vmax.f32 %v17_v0, %v25_v1  ;;  %v34_v8 = vmax.f32 %v18_v5, %v26_v6  ;;  %v42_v9 = vld [vmem:[%s232_s2 + $0x8] sm:$0xff]  ;;  %v43_v14 = vld [vmem:[%s232_s2 + $0x10] sm:$0xff]  ;;  %v35_v17 = vmax.f32 %v19_v11, %v27_v13 }
   0x4   :  { %v49_v4 = vld [vmem:[%s233_s3] sm:$0xff]  ;;  %v50_v10 = vld [vmem:[%s233_s3 + $0x8] sm:$0xff]  ;;  %v51_v15 = vld [vmem:[%s233_s3 + $0x10] sm:$0xff] }
   0x5   :  { %v57_v7 = vmax.f32 %v41_v2, %v49_v4  ;;  %v58_v12 = vmax.f32 %v42_v9, %v50_v10  ;;  %v59_v18 = vmax.f32 %v43_v14, %v51_v15  ;;  %v20_v19 = vld [vmem:[%s230_s0 + $0x18] sm:$0xff]  ;;  %v21_v25 = vld [vmem:[%s230_s0 + $0x20] sm:$0xff]  ;;  %v22_v32 = vld [vmem:[%s230_s0 + $0x28] sm:$0xff] }
   0x6   :  { %v28_v20 = vld [vmem:[%s231_s1 + $0x18] sm:$0xff]  ;;  %v29_v26 = vld [vmem:[%s231_s1 + $0x20] sm:$0xff]  ;;  %v30_v34 = vld [vmem:[%s231_s1 + $0x28] sm:$0xff] }
   0x7   :  { %v65_v16 = vmax.f32 %v33_v3, %v57_v7  ;;  %v44_v21 = vld [vmem:[%s232_s2 + $0x18] sm:$0xff]  ;;  %v66_v22 = vmax.f32 %v34_v8, %v58_v12  ;;  %v36_v23 = vmax.f32 %v20_v19, %v28_v20  ;;  %v67_v27 = vmax.f32 %v35_v17, %v59_v18  ;;  %v45_v30 = vld [vmem:[%s232_s2 + $0x20] sm:$0xff]  ;;  %v46_v35 = vld [vmem:[%s232_s2 + $0x28] sm:$0xff] }
   0x8   :  { %v52_v24 = vld [vmem:[%s233_s3 + $0x18] sm:$0xff]  ;;  %v37_v29 = vmax.f32 %v21_v25, %v29_v26  ;;  %v53_v31 = vld [vmem:[%s233_s3 + $0x20] sm:$0xff]  ;;  %v54_v36 = vld [vmem:[%s233_s3 + $0x28] sm:$0xff]  ;;  %v38_v38 = vmax.f32 %v22_v32, %v30_v34 }
   0x9   :  { %73 = vst [vmem:[%s234_s4] sm:$0xff] %v65_v16  ;;  %v60_v28 = vmax.f32 %v44_v21, %v52_v24  ;;  %74 = vst [vmem:[%s234_s4 + $0x8] sm:$0xff] %v66_v22  ;;  %v61_v33 = vmax.f32 %v45_v30, %v53_v31  ;;  %v62_v39 = vmax.f32 %v46_v35, %v54_v36  ;;  %v23_v40 = vld [vmem:[%s230_s0 + $0x30] sm:$0xff]  ;;  %v24_v46 = vld [vmem:[%s230_s0 + $0x38] sm:$0xff] }
   0xa   :  { %75 = vst [vmem:[%s234_s4 + $0x10] sm:$0xff] %v67_v27  ;;  %v31_v41 = vld [vmem:[%s231_s1 + $0x30] sm:$0xff]  ;;  %v32_v47 = vld [vmem:[%s231_s1 + $0x38] sm:$0xff] }
   0xb   :  { %v68_v37 = vmax.f32 %v36_v23, %v60_v28  ;;  %v47_v42 = vld [vmem:[%s232_s2 + $0x30] sm:$0xff]  ;;  %v69_v43 = vmax.f32 %v37_v29, %v61_v33  ;;  %v39_v44 = vmax.f32 %v23_v40, %v31_v41  ;;  %v70_v48 = vmax.f32 %v38_v38, %v62_v39  ;;  %v48_v51 = vld [vmem:[%s232_s2 + $0x38] sm:$0xff] }
   0xc   :  { %v55_v45 = vld [vmem:[%s233_s3 + $0x30] sm:$0xff]  ;;  %v40_v50 = vmax.f32 %v24_v46, %v32_v47  ;;  %v56_v52 = vld [vmem:[%s233_s3 + $0x38] sm:$0xff] }
   0xd   :  { %76 = vst [vmem:[%s234_s4 + $0x18] sm:$0xff] %v68_v37  ;;  %v63_v49 = vmax.f32 %v47_v42, %v55_v45  ;;  %77 = vst [vmem:[%s234_s4 + $0x20] sm:$0xff] %v69_v43  ;;  %v64_v53 = vmax.f32 %v48_v51, %v56_v52 }
   0xe   :  { %78 = vst [vmem:[%s234_s4 + $0x28] sm:$0xff] %v70_v48 }
   0xf   :  { %v71_v54 = vmax.f32 %v39_v44, %v63_v49  ;;  %v72_v55 = vmax.f32 %v40_v50, %v64_v53 }
  0x11   :  { %79 = vst [vmem:[%s234_s4 + $0x30] sm:$0xff] %v71_v54  ;;  %80 = vst [vmem:[%s234_s4 + $0x38] sm:$0xff] %v72_v55 }

// kernel: _lambda_.13
= control target key start
LH: loop header
LB: loop body
LE: loop exit
PB: predicated region body
PF: predicated region fallthrough
CT: control target
= control target key end

     0   :  { %s1653_s1 = inlined_call_operand.vmem [shape: bf16[640,128], index: 1, kind: input, shape index: {}]   ;;  %s1654_s0 = inlined_call_operand.vmem [shape: bf16[128,640], index: 0, kind: input, shape index: {}]   ;;  %s1655_s2 = inlined_call_operand.vmem [shape: f32[1,128], index: 2, kind: input, shape index: {}]   ;;  %s1656_s3 = inlined_call_operand.vmem [shape: f32[128,128], index: 3, kind: output, shape index: {}]  }
   0x1   :  { %v1198_v0 = vld [vmem:[%s1653_s1 + $0x40] sm:$0xff]   ;;  %v1202_v4 = vld [vmem:[%s1653_s1 + $0x48] sm:$0xff]   ;;  %v1206_v8 = vld [vmem:[%s1653_s1 + $0x50] sm:$0xff]  }
   0x2   :  { %v1199_v1 = vld [vmem:[%s1653_s1 + $0xc0] sm:$0xff]   ;;  %1006 = vmatprep.subr.bf16.mxu0 %v1198_v0  ;;  %v1203_v5 = vld [vmem:[%s1653_s1 + $0xc8] sm:$0xff]   ;;  %v1207_v9 = vld [vmem:[%s1653_s1 + $0xd0] sm:$0xff]  }
   0x3   :  { %v1200_v2 = vld [vmem:[%s1653_s1] sm:$0xff]   ;;  %1070 = vmatprep.subr.bf16.mxu1 %v1199_v1  ;;  %v1204_v6 = vld [vmem:[%s1653_s1 + $0x8] sm:$0xff]   ;;  %v1208_v10 = vld [vmem:[%s1653_s1 + $0x10] sm:$0xff]  }
   0x4   :  { %v1201_v3 = vld [vmem:[%s1653_s1 + $0x80] sm:$0xff]   ;;  %1007 = vmatpush3.bf16.msra.mxu0 %v1200_v2  ;;  %v1205_v7 = vld [vmem:[%s1653_s1 + $0x88] sm:$0xff]   ;;  %v1209_v11 = vld [vmem:[%s1653_s1 + $0x90] sm:$0xff]  }
   0x5   :  { %1071 = vmatpush3.bf16.msra.mxu1 %v1201_v3  ;;  %1008 = vmatprep.subr.bf16.mxu0 %v1202_v4  ;;  %v1210_v12 = vld [vmem:[%s1653_s1 + $0x58] sm:$0xff]   ;;  %v1214_v16 = vld [vmem:[%s1653_s1 + $0x60] sm:$0xff]   ;;  %v1218_v20 = vld [vmem:[%s1653_s1 + $0x68] sm:$0xff]  }
   0x6   :  { %1072 = vmatprep.subr.bf16.mxu1 %v1203_v5  ;;  %v1211_v13 = vld [vmem:[%s1653_s1 + $0xd8] sm:$0xff]   ;;  %v1215_v17 = vld [vmem:[%s1653_s1 + $0xe0] sm:$0xff]   ;;  %v1219_v21 = vld [vmem:[%s1653_s1 + $0xe8] sm:$0xff]  }
   0x7   :  { %v1212_v14 = vld [vmem:[%s1653_s1 + $0x18] sm:$0xff]   ;;  %v1216_v18 = vld [vmem:[%s1653_s1 + $0x20] sm:$0xff]   ;;  %v1220_v22 = vld [vmem:[%s1653_s1 + $0x28] sm:$0xff]  }
   0x8   :  { %1009 = vmatpush3.bf16.msra.mxu0 %v1204_v6  ;;  %v1213_v15 = vld [vmem:[%s1653_s1 + $0x98] sm:$0xff]   ;;  %v1217_v19 = vld [vmem:[%s1653_s1 + $0xa0] sm:$0xff]   ;;  %v1221_v23 = vld [vmem:[%s1653_s1 + $0xa8] sm:$0xff]  }
   0x9   :  { %1073 = vmatpush3.bf16.msra.mxu1 %v1205_v7  ;;  %1010 = vmatprep.subr.bf16.mxu0 %v1206_v8  ;;  %v1222_v24 = vld [vmem:[%s1653_s1 + $0x70] sm:$0xff]   ;;  %v1226_v28 = vld [vmem:[%s1653_s1 + $0x78] sm:$0xff]   ;;  %v1235_v35 = vld [vmem:[%s1654_s0 + $0xc] ss:$20 sps:$4 sm:$0xff]  }
   0xa   :  { %1074 = vmatprep.subr.bf16.mxu1 %v1207_v9  ;;  %v1223_v25 = vld [vmem:[%s1653_s1 + $0xf0] sm:$0xff]   ;;  %v1227_v29 = vld [vmem:[%s1653_s1 + $0xf8] sm:$0xff]   ;;  %v1236_v36 = vld [vmem:[%s1653_s1 + $0x100] sm:$0xff]   ;;  %727 = vmatprep.mubr.bf16.mxu1 %v1235_v35 }
   0xb   :  { %v1224_v26 = vld [vmem:[%s1653_s1 + $0x30] sm:$0xff]   ;;  %v1228_v30 = vld [vmem:[%s1653_s1 + $0x38] sm:$0xff]   ;;  %v1237_v37 = vld [vmem:[%s1654_s0 + $0x2c] ss:$20 sps:$4 sm:$0xff]  }
   0xc   :  { %1011 = vmatpush3.bf16.msra.mxu0 %v1208_v10  ;;  %v1225_v27 = vld [vmem:[%s1653_s1 + $0xb0] sm:$0xff]   ;;  %v1229_v31 = vld [vmem:[%s1653_s1 + $0xb8] sm:$0xff]   ;;  %v1243_v39 = vld [vmem:[%s1653_s1 + $0x108] sm:$0xff]  }
   0xd   :  { %1075 = vmatpush3.bf16.msra.mxu1 %v1209_v11  ;;  %1012 = vmatprep.subr.bf16.mxu0 %v1210_v12  ;;  %v1230_v32 = vld [vmem:[%s1654_s0] ss:$20 sps:$4 sm:$0xff]   ;;  %v1232_v33 = vld [vmem:[%s1654_s0 + $0x4] ss:$20 sps:$4 sm:$0xff]   ;;  %v1233_v34 = vld [vmem:[%s1654_s0 + $0x8] ss:$20 sps:$4 sm:$0xff]  }
   0xe   :  { %1076 = vmatprep.subr.bf16.mxu1 %v1211_v13  ;;  %630 = vmatprep.mubr.bf16.mxu0 %v1232_v33  ;;  %v1239_v38 = vld [vmem:[%s1654_s0 + $0x34] ss:$20 sps:$4 sm:$0xff]   ;;  %v1242_v41 = vld [vmem:[%s1654_s0 + $0x30] ss:$20 sps:$4 sm:$0xff]   ;;  %v1257_v45 = vld [vmem:[%s1653_s1 + $0x118] sm:$0xff]  }
   0xf   :  { %v1241_v40 = vld [vmem:[%s1654_s0 + $0x28] ss:$20 sps:$4 sm:$0xff]   ;;  %v1250_v44 = vld [vmem:[%s1653_s1 + $0x110] sm:$0xff]   ;;  %v1249_v47 = vld [vmem:[%s1654_s0 + $0x58] ss:$20 sps:$4 sm:$0xff]  }
  0x10   :  { %1013 = vmatpush3.bf16.msra.mxu0 %v1212_v14  ;;  %v1244_v42 = vld [vmem:[%s1654_s0 + $0x54] ss:$20 sps:$4 sm:$0xff]   ;;  %v1246_v43 = vld [vmem:[%s1654_s0 + $0x5c] ss:$20 sps:$4 sm:$0xff]   ;;  %v1253_v49 = vld [vmem:[%s1654_s0 + $0x84] ss:$20 sps:$4 sm:$0xff]  }
  0x11   :  { %1077 = vmatpush3.bf16.msra.mxu1 %v1213_v15  ;;  %1014 = vmatprep.subr.bf16.mxu0 %v1214_v16  ;;  %v1248_v46 = vld [vmem:[%s1654_s0 + $0x50] ss:$20 sps:$4 sm:$0xff]   ;;  %v1271_v51 = vld [vmem:[%s1653_s1 + $0x128] sm:$0xff]   ;;  %v1256_v53 = vld [vmem:[%s1654_s0 + $0x80] ss:$20 sps:$4 sm:$0xff]  }
  0x12   :  { %1078 = vmatprep.subr.bf16.mxu1 %v1215_v17  ;;  %v1251_v48 = vld [vmem:[%s1654_s0 + $0x7c] ss:$20 sps:$4 sm:$0xff]   ;;  %v1264_v50 = vld [vmem:[%s1653_s1 + $0x120] sm:$0xff]   ;;  %v1255_v52 = vld [vmem:[%s1654_s0 + $0x78] ss:$20 sps:$4 sm:$0xff]  }
  0x13   :  { %v1258_v54 = vld [vmem:[%s1654_s0 + $0xa4] ss:$20 sps:$4 sm:$0xff]   ;;  %v1278_v55 = vld [vmem:[%s1653_s1 + $0x130] sm:$0xff]   ;;  %v1260_v56 = vld [vmem:[%s1654_s0 + $0xac] ss:$20 sps:$4 sm:$0xff]  }
  0x14   :  { %1015 = vmatpush3.bf16.msra.mxu0 %v1216_v18  ;;  %v1285_v57 = vld [vmem:[%s1653_s1 + $0x138] sm:$0xff]   ;;  %v1262_v58 = vld [vmem:[%s1654_s0 + $0xa0] ss:$20 sps:$4 sm:$0xff]   ;;  %v1270_v63 = vld [vmem:[%s1654_s0 + $0xd0] ss:$20 sps:$4 sm:$0xff]  }
  0x15   :  { %1079 = vmatpush3.bf16.msra.mxu1 %v1217_v19  ;;  %1016 = vmatprep.subr.bf16.mxu0 %v1218_v20  ;;  %v1263_v59 = vld [vmem:[%s1654_s0 + $0xa8] ss:$20 sps:$4 sm:$0xff]   ;;  %v1265_v60 = vld [vmem:[%s1654_s0 + $0xcc] ss:$20 sps:$4 sm:$0xff]   ;;  %v1276_v2 = vld [vmem:[%s1654_s0 + $0xf0] ss:$20 sps:$4 sm:$0xff]  }
  0x16   :  { %1080 = vmatprep.subr.bf16.mxu1 %v1219_v21  ;;  %v1267_v61 = vld [vmem:[%s1654_s0 + $0xd4] ss:$20 sps:$4 sm:$0xff]   ;;  %v1274_v1 = vld [vmem:[%s1654_s0 + $0xfc] ss:$20 sps:$4 sm:$0xff]   ;;  %v1277_v3 = vld [vmem:[%s1654_s0 + $0xf8] ss:$20 sps:$4 sm:$0xff]  }
  0x17   :  { %v1269_v62 = vld [vmem:[%s1654_s0 + $0xc8] ss:$20 sps:$4 sm:$0xff]   ;;  %v1281_v5 = vld [vmem:[%s1654_s0 + $0x124] ss:$20 sps:$4 sm:$0xff]   ;;  %v1284_v7 = vld [vmem:[%s1654_s0 + $0x120] ss:$20 sps:$4 sm:$0xff]  }
  0x18   :  { %1017 = vmatpush3.bf16.msra.mxu0 %v1220_v22  ;;  %v1272_v0 = vld [vmem:[%s1654_s0 + $0xf4] ss:$20 sps:$4 sm:$0xff]   ;;  %v1279_v4 = vld [vmem:[%s1654_s0 + $0x11c] ss:$20 sps:$4 sm:$0xff]   ;;  %v1283_v6 = vld [vmem:[%s1654_s0 + $0x118] ss:$20 sps:$4 sm:$0xff]  }
  0x19   :  { %1081 = vmatpush3.bf16.msra.mxu1 %v1221_v23  ;;  %1018 = vmatprep.subr.bf16.mxu0 %v1222_v24  ;;  %v1286_v8 = vld [vmem:[%s1654_s0 + $0x10] ss:$20 sps:$4 sm:$0xff]   ;;  %v1288_v10 = vld [vmem:[%s1654_s0 + $0x38] ss:$20 sps:$4 sm:$0xff]   ;;  %v1290_v12 = vld [vmem:[%s1654_s0 + $0x60] ss:$20 sps:$4 sm:$0xff]  }
  0x1a   :  { %1082 = vmatprep.subr.bf16.mxu1 %v1223_v25  ;;  %v1287_v9 = vld [vmem:[%s1654_s0 + $0xb0] ss:$20 sps:$4 sm:$0xff]   ;;  %v1289_v11 = vld [vmem:[%s1654_s0 + $0xd8] ss:$20 sps:$4 sm:$0xff]   ;;  %v1291_v13 = vld [vmem:[%s1654_s0 + $0x100] ss:$20 sps:$4 sm:$0xff]  }
  0x1b   :  { %v1292_v14 = vld [vmem:[%s1654_s0 + $0x88] ss:$20 sps:$4 sm:$0xff]   ;;  %v1557_v18 = vld [vmem:[%s1655_s2] ss:$0 sm:$0xff] }
  0x1c   :  { %1019 = vmatpush3.bf16.msra.mxu0 %v1224_v26  ;;  %v1293_v15 = vld [vmem:[%s1654_s0 + $0x128] ss:$20 sps:$4 sm:$0xff]  }
  0x1d   :  { %1083 = vmatpush3.bf16.msra.mxu1 %v1225_v27  ;;  %1020 = vmatprep.subr.bf16.mxu0 %v1226_v28 }
  0x1e   :  { %1084 = vmatprep.subr.bf16.mxu1 %v1227_v29 }
  0x20   :  { %1021 = vmatpush3.bf16.msra.mxu0 %v1228_v30 }
  0x21   :  { %1085 = vmatpush3.bf16.msra.mxu1 %v1229_v31  ;;  %1150 = vmatprep.subr.bf16.mxu0 %v1236_v36 }
  0x22   :  { %1182 = vmatprep.subr.bf16.mxu1 %v1236_v36 }
  0x23   :  { %631 = vmatmul.mubr.bf16.vlgmr.msra.gmra.mrb[0].mxu0 %v1230_v32 }
  0x24   :  { %728 = vmatmul.mubr.bf16.vlgmr.msra.gmra.mrb[0].mxu1 %v1233_v34  ;;  %1151 = vmatpush3.bf16.msra.mxu0 %v1236_v36 }
  0x25   :  { %1190 = vmatpush3.bf16.msra.mxu1 %v1236_v36  ;;  %638 = vmatprep.mubr.bf16.mxu0 %v1237_v37 }
  0x26   :  { %735 = vmatprep.mubr.bf16.mxu1 %v1239_v38  ;;  %1152 = vmatprep.subr.bf16.mxu0 %v1243_v39 }
  0x27   :  { %1183 = vmatprep.subr.bf16.mxu1 %v1243_v39 }
  0x28   :  { %1153 = vmatpush3.bf16.msra.mxu0 %v1243_v39 }
  0x29   :  { %1191 = vmatpush3.bf16.msra.mxu1 %v1243_v39  ;;  %1154 = vmatprep.subr.bf16.mxu0 %v1250_v44 }
  0x2a   :  { %1184 = vmatprep.subr.bf16.mxu1 %v1250_v44 }
  0x2b   :  { %639 = vmatmul.mubr.bf16.gmra.mrb[4].mxu0 %v1241_v40 }
  0x2c   :  { %736 = vmatmul.mubr.bf16.gmra.mrb[4].mxu1 %v1242_v41  ;;  %646 = vmatprep.mubr.bf16.mxu0 %v1244_v42 }
  0x2d   :  { %743 = vmatprep.mubr.bf16.mxu1 %v1246_v43  ;;  %1155 = vmatpush3.bf16.msra.mxu0 %v1250_v44 }
  0x2e   :  { %1192 = vmatpush3.bf16.msra.mxu1 %v1250_v44  ;;  %1156 = vmatprep.subr.bf16.mxu0 %v1257_v45 }
  0x2f   :  { %1185 = vmatprep.subr.bf16.mxu1 %v1257_v45 }
  0x31   :  { %1157 = vmatpush3.bf16.msra.mxu0 %v1257_v45 }
  0x32   :  { %1193 = vmatpush3.bf16.msra.mxu1 %v1257_v45  ;;  %1158 = vmatprep.subr.bf16.mxu0 %v1264_v50 }
  0x33   :  { %647 = vmatmul.mubr.bf16.gmra.mrb[8].mxu0 %v1248_v46  ;;  %1186 = vmatprep.subr.bf16.mxu1 %v1264_v50 }
  0x34   :  { %744 = vmatmul.mubr.bf16.gmra.mrb[8].mxu1 %v1249_v47  ;;  %654 = vmatprep.mubr.bf16.mxu0 %v1251_v48 }
  0x35   :  { %751 = vmatprep.mubr.bf16.mxu1 %v1253_v49  ;;  %1159 = vmatpush3.bf16.msra.mxu0 %v1264_v50 }
  0x36   :  { %1194 = vmatpush3.bf16.msra.mxu1 %v1264_v50  ;;  %1160 = vmatprep.subr.bf16.mxu0 %v1271_v51 }
  0x37   :  { %1187 = vmatprep.subr.bf16.mxu1 %v1271_v51 }
  0x39   :  { %1161 = vmatpush3.bf16.msra.mxu0 %v1271_v51 }
  0x3a   :  { %1195 = vmatpush3.bf16.msra.mxu1 %v1271_v51  ;;  %1162 = vmatprep.subr.bf16.mxu0 %v1278_v55 }
  0x3b   :  { %655 = vmatmul.mubr.bf16.gmra.mrb[12].mxu0 %v1255_v52  ;;  %1188 = vmatprep.subr.bf16.mxu1 %v1278_v55 }
  0x3c   :  { %752 = vmatmul.mubr.bf16.gmra.mrb[12].mxu1 %v1256_v53  ;;  %662 = vmatprep.mubr.bf16.mxu0 %v1258_v54 }
  0x3d   :  { %759 = vmatprep.mubr.bf16.mxu1 %v1260_v56  ;;  %1163 = vmatpush3.bf16.msra.mxu0 %v1278_v55 }
  0x3e   :  { %1196 = vmatpush3.bf16.msra.mxu1 %v1278_v55  ;;  %1164 = vmatprep.subr.bf16.mxu0 %v1285_v57 }
  0x3f   :  { %1189 = vmatprep.subr.bf16.mxu1 %v1285_v57 }
  0x41   :  { %1165 = vmatpush3.bf16.msra.mxu0 %v1285_v57 }
  0x42   :  { %1197 = vmatpush3.bf16.msra.mxu1 %v1285_v57 }
  0x43   :  { %663 = vmatmul.mubr.bf16.gmra.mrb[16].mxu0 %v1262_v58 }
  0x44   :  { %760 = vmatmul.mubr.bf16.gmra.mrb[16].mxu1 %v1263_v59  ;;  %670 = vmatprep.mubr.bf16.mxu0 %v1265_v60 }
  0x45   :  { %767 = vmatprep.mubr.bf16.mxu1 %v1267_v61 }
  0x4b   :  { %671 = vmatmul.mubr.bf16.gmra.mrb[20].mxu0 %v1269_v62 }
  0x4c   :  { %768 = vmatmul.mubr.bf16.gmra.mrb[20].mxu1 %v1270_v63  ;;  %678 = vmatprep.mubr.bf16.mxu0 %v1272_v0 }
  0x4d   :  { %775 = vmatprep.mubr.bf16.mxu1 %v1274_v1 }
  0x53   :  { %679 = vmatmul.mubr.bf16.gmra.mrb[24].mxu0 %v1276_v2 }
  0x54   :  { %776 = vmatmul.mubr.bf16.gmra.mrb[24].mxu1 %v1277_v3  ;;  %686 = vmatprep.mubr.bf16.mxu0 %v1279_v4 }
  0x55   :  { %783 = vmatprep.mubr.bf16.mxu1 %v1281_v5 }
  0x5b   :  { %687 = vmatmul.mubr.bf16.gmra.mrb[28].mxu0 %v1283_v6 }
  0x5c   :  { %784 = vmatmul.mubr.bf16.gmra.mrb[28].mxu1 %v1284_v7  ;;  %1166 = vmatprep.mubr.bf16.mxu0 %v1286_v8 }
  0x5d   :  { %1174 = vmatprep.mubr.bf16.mxu1 %v1287_v9 }
  0x63   :  { %1167 = vmatmul.mubr.bf16.vlgmr.msra.gmra.mrb[32].mxu0 %v1288_v10 }
  0x64   :  { %1175 = vmatmul.mubr.bf16.vlgmr.msra.gmra.mrb[32].mxu1 %v1289_v11  ;;  %1170 = vmatprep.mubr.bf16.mxu0 %v1290_v12 }
  0x65   :  { %1178 = vmatprep.mubr.bf16.mxu1 %v1291_v13 }
  0x6b   :  { %1171 = vmatmul.mubr.bf16.gmra.mrb[36].mxu0 %v1292_v14 }
  0x6c   :  { %1179 = vmatmul.mubr.bf16.gmra.mrb[36].mxu1 %v1293_v15 }
  0xf6   :  { %v1022_v16 = vpop.f32.mrb[0].mxu0 }
  0xf7   :  { %v1086_v17 = vpop.f32.mrb[0].mxu1  ;;  %v1023_v19 = vpop.f32.mrb[1].mxu0 }
  0xf8   :  { %v1024_v20 = vadd.f32 %v1023_v19, %v1022_v16  ;;  %v1087_v21 = vpop.f32.mrb[1].mxu1  ;;  %v1025_v22 = vpop.f32.mrb[2].mxu0 }
  0xf9   :  { %v1088_v23 = vadd.f32 %v1087_v21, %v1086_v17  ;;  %v1089_v24 = vpop.f32.mrb[2].mxu1  ;;  %v1026_v25 = vpop.f32.mrb[3].mxu0 }
  0xfa   :  { %v633_v26 = vadd.f32 %v1024_v20, %v1557_v18  ;;  %v1027_v27 = vadd.f32 %v1026_v25, %v1025_v22  ;;  %v1090_v28 = vpop.f32.mrb[3].mxu1 }
  0xfb   :  { %v1091_v29 = vadd.f32 %v1090_v28, %v1089_v24 }
  0xfc   :  { %v636_v30 = vadd.f32 %v1027_v27, %v1557_v18  ;;  %v1561_v31 = vadd.f32 %v1088_v23, %v633_v26 }
  0xfe   :  { %v1028_v32 = vpop.f32.mrb[4].mxu0  ;;  %v1563_v33 = vadd.f32 %v1091_v29, %v636_v30 }
  0xff   :  { %v1092_v34 = vpop.f32.mrb[4].mxu1  ;;  %v1029_v35 = vpop.f32.mrb[5].mxu0 }
 0x100   :  { %v1030_v36 = vadd.f32 %v1029_v35, %v1028_v32  ;;  %v1093_v37 = vpop.f32.mrb[5].mxu1  ;;  %v1031_v38 = vpop.f32.mrb[6].mxu0 }
 0x101   :  { %v1094_v39 = vadd.f32 %v1093_v37, %v1092_v34  ;;  %v1095_v40 = vpop.f32.mrb[6].mxu1  ;;  %v1032_v41 = vpop.f32.mrb[7].mxu0 }
 0x102   :  { %v641_v42 = vadd.f32 %v1030_v36, %v1557_v18  ;;  %v1033_v43 = vadd.f32 %v1032_v41, %v1031_v38  ;;  %v1096_v44 = vpop.f32.mrb[7].mxu1 }
 0x103   :  { %v1097_v45 = vadd.f32 %v1096_v44, %v1095_v40 }
 0x104   :  { %v644_v46 = vadd.f32 %v1033_v43, %v1557_v18  ;;  %v1567_v47 = vadd.f32 %v1094_v39, %v641_v42 }
 0x106   :  { %v1034_v48 = vpop.f32.mrb[8].mxu0  ;;  %v1569_v49 = vadd.f32 %v1097_v45, %v644_v46 }
 0x107   :  { %v1098_v50 = vpop.f32.mrb[8].mxu1  ;;  %v1035_v51 = vpop.f32.mrb[9].mxu0 }
 0x108   :  { %v1036_v52 = vadd.f32 %v1035_v51, %v1034_v48  ;;  %v1099_v53 = vpop.f32.mrb[9].mxu1  ;;  %v1037_v54 = vpop.f32.mrb[10].mxu0 }
 0x109   :  { %v1100_v55 = vadd.f32 %v1099_v53, %v1098_v50  ;;  %v1101_v56 = vpop.f32.mrb[10].mxu1  ;;  %v1038_v57 = vpop.f32.mrb[11].mxu0 }
 0x10a   :  { %v649_v58 = vadd.f32 %v1036_v52, %v1557_v18  ;;  %v1039_v59 = vadd.f32 %v1038_v57, %v1037_v54  ;;  %v1102_v60 = vpop.f32.mrb[11].mxu1 }
 0x10b   :  { %v1103_v61 = vadd.f32 %v1102_v60, %v1101_v56 }
 0x10c   :  { %v652_v62 = vadd.f32 %v1039_v59, %v1557_v18  ;;  %v1573_v63 = vadd.f32 %v1100_v55, %v649_v58 }
 0x10e   :  { %v1040_v0 = vpop.f32.mrb[12].mxu0  ;;  %v1575_v1 = vadd.f32 %v1103_v61, %v652_v62 }
 0x10f   :  { %v1104_v2 = vpop.f32.mrb[12].mxu1  ;;  %v1041_v3 = vpop.f32.mrb[13].mxu0 }
 0x110   :  { %v1042_v4 = vadd.f32 %v1041_v3, %v1040_v0  ;;  %v1105_v5 = vpop.f32.mrb[13].mxu1  ;;  %v1043_v6 = vpop.f32.mrb[14].mxu0 }
 0x111   :  { %v1106_v7 = vadd.f32 %v1105_v5, %v1104_v2  ;;  %v1107_v8 = vpop.f32.mrb[14].mxu1  ;;  %v1044_v9 = vpop.f32.mrb[15].mxu0 }
 0x112   :  { %v657_v10 = vadd.f32 %v1042_v4, %v1557_v18  ;;  %v1045_v11 = vadd.f32 %v1044_v9, %v1043_v6  ;;  %v1108_v12 = vpop.f32.mrb[15].mxu1 }
 0x113   :  { %v1109_v13 = vadd.f32 %v1108_v12, %v1107_v8 }
 0x114   :  { %v660_v14 = vadd.f32 %v1045_v11, %v1557_v18  ;;  %v1579_v15 = vadd.f32 %v1106_v7, %v657_v10 }
 0x116   :  { %v1046_v16 = vpop.f32.mrb[16].mxu0  ;;  %v1581_v17 = vadd.f32 %v1109_v13, %v660_v14 }
 0x117   :  { %v1110_v19 = vpop.f32.mrb[16].mxu1  ;;  %v1047_v20 = vpop.f32.mrb[17].mxu0 }
 0x118   :  { %v1048_v21 = vadd.f32 %v1047_v20, %v1046_v16  ;;  %v1111_v22 = vpop.f32.mrb[17].mxu1  ;;  %v1049_v23 = vpop.f32.mrb[18].mxu0 }
 0x119   :  { %v1112_v24 = vadd.f32 %v1111_v22, %v1110_v19  ;;  %v1113_v25 = vpop.f32.mrb[18].mxu1  ;;  %v1050_v26 = vpop.f32.mrb[19].mxu0 }
 0x11a   :  { %v665_v27 = vadd.f32 %v1048_v21, %v1557_v18  ;;  %v1051_v28 = vadd.f32 %v1050_v26, %v1049_v23  ;;  %v1114_v29 = vpop.f32.mrb[19].mxu1 }
 0x11b   :  { %v1115_v30 = vadd.f32 %v1114_v29, %v1113_v25 }
 0x11c   :  { %v668_v32 = vadd.f32 %v1051_v28, %v1557_v18  ;;  %v762_v34 = vadd.f32 %v1112_v24, %v665_v27 }
 0x11e   :  { %v1052_v35 = vpop.f32.mrb[20].mxu0  ;;  %v1585_v36 = vadd.f32 %v1115_v30, %v668_v32 }
 0x11f   :  { %v1116_v37 = vpop.f32.mrb[20].mxu1  ;;  %v1053_v38 = vpop.f32.mrb[21].mxu0 }
 0x120   :  { %v1054_v39 = vadd.f32 %v1053_v38, %v1052_v35  ;;  %v1117_v40 = vpop.f32.mrb[21].mxu1  ;;  %v1055_v41 = vpop.f32.mrb[22].mxu0 }
 0x121   :  { %v1118_v42 = vadd.f32 %v1117_v40, %v1116_v37  ;;  %v1119_v43 = vpop.f32.mrb[22].mxu1  ;;  %v1056_v44 = vpop.f32.mrb[23].mxu0 }
 0x122   :  { %v673_v45 = vadd.f32 %v1054_v39, %v1557_v18  ;;  %v1057_v46 = vadd.f32 %v1056_v44, %v1055_v41  ;;  %v1120_v48 = vpop.f32.mrb[23].mxu1 }
 0x123   :  { %v1121_v50 = vadd.f32 %v1120_v48, %v1119_v43 }
 0x124   :  { %v676_v51 = vadd.f32 %v1057_v46, %v1557_v18  ;;  %v770_v52 = vadd.f32 %v1118_v42, %v673_v45 }
 0x126   :  { %v1058_v53 = vpop.f32.mrb[24].mxu0  ;;  %v773_v54 = vadd.f32 %v1121_v50, %v676_v51 }
 0x127   :  { %v1122_v55 = vpop.f32.mrb[24].mxu1  ;;  %v1059_v56 = vpop.f32.mrb[25].mxu0 }
 0x128   :  { %v1060_v57 = vadd.f32 %v1059_v56, %v1058_v53  ;;  %v1123_v58 = vpop.f32.mrb[25].mxu1  ;;  %v1061_v59 = vpop.f32.mrb[26].mxu0 }
 0x129   :  { %v1124_v60 = vadd.f32 %v1123_v58, %v1122_v55  ;;  %v1125_v61 = vpop.f32.mrb[26].mxu1  ;;  %v1062_v62 = vpop.f32.mrb[27].mxu0 }
 0x12a   :  { %v681_v0 = vadd.f32 %v1060_v57, %v1557_v18  ;;  %v1063_v2 = vadd.f32 %v1062_v62, %v1061_v59  ;;  %v1126_v3 = vpop.f32.mrb[27].mxu1 }
 0x12b   :  { %v1127_v4 = vadd.f32 %v1126_v3, %v1125_v61 }
 0x12c   :  { %v684_v5 = vadd.f32 %v1063_v2, %v1557_v18  ;;  %v778_v6 = vadd.f32 %v1124_v60, %v681_v0 }
 0x12e   :  { %v1064_v7 = vpop.f32.mrb[28].mxu0  ;;  %v1591_v8 = vadd.f32 %v1127_v4, %v684_v5 }
 0x12f   :  { %v1128_v9 = vpop.f32.mrb[28].mxu1  ;;  %v1065_v10 = vpop.f32.mrb[29].mxu0 }
 0x130   :  { %v1066_v11 = vadd.f32 %v1065_v10, %v1064_v7  ;;  %v1129_v12 = vpop.f32.mrb[29].mxu1  ;;  %v1067_v13 = vpop.f32.mrb[30].mxu0 }
 0x131   :  { %v1130_v14 = vadd.f32 %v1129_v12, %v1128_v9  ;;  %v1131_v16 = vpop.f32.mrb[30].mxu1  ;;  %v1068_v19 = vpop.f32.mrb[31].mxu0 }
 0x132   :  { %v689_v20 = vadd.f32 %v1066_v11, %v1557_v18  ;;  %v1069_v21 = vadd.f32 %v1068_v19, %v1067_v13  ;;  %v1132_v22 = vpop.f32.mrb[31].mxu1 }
 0x133   :  { %v1133_v23 = vadd.f32 %v1132_v22, %v1131_v16 }
 0x134   :  { %v692_v24 = vadd.f32 %v1069_v21, %v1557_v18  ;;  %v786_v25 = vadd.f32 %v1130_v14, %v689_v20 }
 0x136   :  { %v1168_v26 = vpop.f32.mrb[32].mxu0  ;;  %v789_v27 = vadd.f32 %v1133_v23, %v692_v24 }
 0x137   :  { %v835_v28 = vadd.f32 %v1168_v26, %v1567_v47  ;;  %v1176_v29 = vpop.f32.mrb[32].mxu1  ;;  %v826_v30 = vpop.f32.mrb[33].mxu0 }
 0x138   :  { %v867_v32 = vadd.f32 %v1176_v29, %v770_v52  ;;  %v827_v35 = vadd.f32 %v826_v30, %v1561_v31  ;;  %v858_v37 = vpop.f32.mrb[33].mxu1  ;;  %v1169_v38 = vpop.f32.mrb[34].mxu0 }
 0x139   :  { %v891_v39 = vmax.f32 %v835_v28, 0.0  ;;  %v859_v40 = vadd.f32 %v858_v37, %v762_v34  ;;  %v838_v41 = vadd.f32 %v1169_v38, %v1569_v49  ;;  %v1177_v42 = vpop.f32.mrb[34].mxu1  ;;  %v829_v43 = vpop.f32.mrb[35].mxu0 }
 0x13a   :  { %v899_v44 = vmax.f32 %v867_v32, 0.0  ;;  %v889_v18 = vmax.f32 %v827_v35, 0.0  ;;  %v870_v45 = vadd.f32 %v1177_v42, %v773_v54  ;;  %v830_v46 = vadd.f32 %v829_v43, %v1563_v33  ;;  %v861_v48 = vpop.f32.mrb[35].mxu1 }
 0x13b   :  { %907 = vst [vmem:[%s1656_s3 + $0x10] sm:$0xff] %v891_v39  ;;  %v897_v47 = vmax.f32 %v859_v40, 0.0  ;;  %v892_v31 = vmax.f32 %v838_v41, 0.0  ;;  %v862_v50 = vadd.f32 %v861_v48, %v1585_v36 }
 0x13c   :  { %915 = vst [vmem:[%s1656_s3 + $0x50] sm:$0xff] %v899_v44  ;;  %905 = vst [vmem:[%s1656_s3] sm:$0xff] %v889_v18  ;;  %v900_v49 = vmax.f32 %v870_v45, 0.0  ;;  %v890_v34 = vmax.f32 %v830_v46, 0.0 }
 0x13d   :  { %913 = vst [vmem:[%s1656_s3 + $0x40] sm:$0xff] %v897_v47  ;;  %908 = vst [vmem:[%s1656_s3 + $0x18] sm:$0xff] %v892_v31  ;;  %v898_v33 = vmax.f32 %v862_v50, 0.0 }
 0x13e   :  { %916 = vst [vmem:[%s1656_s3 + $0x58] sm:$0xff] %v900_v49  ;;  %906 = vst [vmem:[%s1656_s3 + $0x8] sm:$0xff] %v890_v34  ;;  %v1172_v36 = vpop.f32.mrb[36].mxu0 }
 0x13f   :  { %914 = vst [vmem:[%s1656_s3 + $0x48] sm:$0xff] %v898_v33  ;;  %v851_v51 = vadd.f32 %v1172_v36, %v1579_v15  ;;  %v1180_v52 = vpop.f32.mrb[36].mxu1  ;;  %v842_v53 = vpop.f32.mrb[37].mxu0 }
 0x140   :  { %v883_v54 = vadd.f32 %v1180_v52, %v786_v25  ;;  %v843_v55 = vadd.f32 %v842_v53, %v1573_v63  ;;  %v874_v56 = vpop.f32.mrb[37].mxu1  ;;  %v1173_v57 = vpop.f32.mrb[38].mxu0 }
 0x141   :  { %v895_v58 = vmax.f32 %v851_v51, 0.0  ;;  %v875_v59 = vadd.f32 %v874_v56, %v778_v6  ;;  %v854_v60 = vadd.f32 %v1173_v57, %v1581_v17  ;;  %v1181_v61 = vpop.f32.mrb[38].mxu1  ;;  %v845_v62 = vpop.f32.mrb[39].mxu0 }
 0x142   :  { %v903_v0 = vmax.f32 %v883_v54, 0.0  ;;  %v893_v2 = vmax.f32 %v843_v55, 0.0  ;;  %v886_v3 = vadd.f32 %v1181_v61, %v789_v27  ;;  %v846_v4 = vadd.f32 %v845_v62, %v1575_v1  ;;  %v877_v5 = vpop.f32.mrb[39].mxu1 }
 0x143   :  { %911 = vst [vmem:[%s1656_s3 + $0x30] sm:$0xff] %v895_v58  ;;  %v901_v15 = vmax.f32 %v875_v59, 0.0  ;;  %v896_v63 = vmax.f32 %v854_v60, 0.0  ;;  %v878_v7 = vadd.f32 %v877_v5, %v1591_v8 }
 0x144   :  { %919 = vst [vmem:[%s1656_s3 + $0x70] sm:$0xff] %v903_v0  ;;  %909 = vst [vmem:[%s1656_s3 + $0x20] sm:$0xff] %v893_v2  ;;  %v904_v17 = vmax.f32 %v886_v3, 0.0  ;;  %v894_v6 = vmax.f32 %v846_v4, 0.0 }
 0x145   :  { %917 = vst [vmem:[%s1656_s3 + $0x60] sm:$0xff] %v901_v15  ;;  %912 = vst [vmem:[%s1656_s3 + $0x38] sm:$0xff] %v896_v63  ;;  %v902_v1 = vmax.f32 %v878_v7, 0.0 }
 0x146   :  { %920 = vst [vmem:[%s1656_s3 + $0x78] sm:$0xff] %v904_v17  ;;  %910 = vst [vmem:[%s1656_s3 + $0x28] sm:$0xff] %v894_v6 }
 0x147   :  { %918 = vst [vmem:[%s1656_s3 + $0x68] sm:$0xff] %v902_v1 }

// kernel: _lambda_.14
= control target key start
LH: loop header
LB: loop body
LE: loop exit
PB: predicated region body
PF: predicated region fallthrough
CT: control target
= control target key end

     0   :  { %s138_s0 = inlined_call_operand.vmem [shape: f32[32,128], index: 0, kind: input, shape index: {}]   ;;  %s139_s1 = inlined_call_operand.vmem [shape: f32[32,128], index: 1, kind: input, shape index: {}]   ;;  %s140_s2 = inlined_call_operand.vmem [shape: f32[32,128], index: 2, kind: input, shape index: {}]   ;;  %s141_s3 = inlined_call_operand.vmem [shape: f32[32,128], index: 3, kind: input, shape index: {}]   ;;  %s142_s4 = inlined_call_operand.vmem [shape: f32[32,128], index: 4, kind: output, shape index: {}]  }
   0x1   :  { %v17_v0 = vld [vmem:[%s138_s0] sm:$0xff]  ;;  %v18_v5 = vld [vmem:[%s138_s0 + $0x8] sm:$0xff]  ;;  %v19_v11 = vld [vmem:[%s138_s0 + $0x10] sm:$0xff] }
   0x2   :  { %v21_v1 = vld [vmem:[%s139_s1] sm:$0xff]  ;;  %v22_v6 = vld [vmem:[%s139_s1 + $0x8] sm:$0xff]  ;;  %v23_v13 = vld [vmem:[%s139_s1 + $0x10] sm:$0xff] }
   0x3   :  { %v29_v2 = vld [vmem:[%s140_s2] sm:$0xff]  ;;  %v25_v3 = vmax.f32 %v17_v0, %v21_v1  ;;  %v26_v8 = vmax.f32 %v18_v5, %v22_v6  ;;  %v30_v9 = vld [vmem:[%s140_s2 + $0x8] sm:$0xff]  ;;  %v31_v14 = vld [vmem:[%s140_s2 + $0x10] sm:$0xff]  ;;  %v27_v17 = vmax.f32 %v19_v11, %v23_v13 }
   0x4   :  { %v33_v4 = vld [vmem:[%s141_s3] sm:$0xff]  ;;  %v34_v10 = vld [vmem:[%s141_s3 + $0x8] sm:$0xff]  ;;  %v35_v15 = vld [vmem:[%s141_s3 + $0x10] sm:$0xff] }
   0x5   :  { %v37_v7 = vmax.f32 %v29_v2, %v33_v4  ;;  %v38_v12 = vmax.f32 %v30_v9, %v34_v10  ;;  %v39_v18 = vmax.f32 %v31_v14, %v35_v15  ;;  %v20_v19 = vld [vmem:[%s138_s0 + $0x18] sm:$0xff] }
   0x6   :  { %v24_v20 = vld [vmem:[%s139_s1 + $0x18] sm:$0xff] }
   0x7   :  { %v41_v16 = vmax.f32 %v25_v3, %v37_v7  ;;  %v32_v21 = vld [vmem:[%s140_s2 + $0x18] sm:$0xff]  ;;  %v42_v22 = vmax.f32 %v26_v8, %v38_v12  ;;  %v28_v23 = vmax.f32 %v20_v19, %v24_v20  ;;  %v43_v25 = vmax.f32 %v27_v17, %v39_v18 }
   0x8   :  { %v36_v24 = vld [vmem:[%s141_s3 + $0x18] sm:$0xff] }
   0x9   :  { %45 = vst [vmem:[%s142_s4] sm:$0xff] %v41_v16  ;;  %v40_v26 = vmax.f32 %v32_v21, %v36_v24  ;;  %46 = vst [vmem:[%s142_s4 + $0x8] sm:$0xff] %v42_v22 }
   0xa   :  { %47 = vst [vmem:[%s142_s4 + $0x10] sm:$0xff] %v43_v25 }
   0xb   :  { %v44_v27 = vmax.f32 %v28_v23, %v40_v26 }
   0xd   :  { %48 = vst [vmem:[%s142_s4 + $0x18] sm:$0xff] %v44_v27 }

// kernel: _lambda_.15
= control target key start
LH: loop header
LB: loop body
LE: loop exit
PB: predicated region body
PF: predicated region fallthrough
CT: control target
= control target key end

     0   :  { %s2373_s12 = smov 0   ;;  %s2375_s13 = smov 0   ;;  %s2874_s0 = inlined_call_operand.vmem [shape: bf16[32,1152], index: 0, kind: input, shape index: {}]   ;;  %s2875_s1 = inlined_call_operand.vmem [shape: bf16[1152,256], index: 1, kind: input, shape index: {}]   ;;  %s2876_s2 = inlined_call_operand.vmem [shape: f32[1,256], index: 2, kind: input, shape index: {}]   ;;  %s2877_s3 = inlined_call_operand.vmem [shape: f32[32,256], index: 3, kind: output, shape index: {}]  }
   0x1   :  { %s2377_s14 = smov 0   ;;  %s2379_s15 = smov 0  }
   0x2   :  { %s2381_s16 = smov 0  }
   0x3 LB: > { %s22_s17 = sadd.s32 1, %s2347_s15  ;;  %s1928_s18 = sadd.s32 4294967295, %s2351_s16   ;;  %s2351_s16 = sphi %s2381_s16, %s13_s16   ;;  %s2347_s15 = sphi %s2379_s15, %s2882_s15   ;;  %s2343_s14 = sphi %s2377_s14, %s2881_s14   ;;  %s2339_s13 = sphi %s2375_s13, %s2880_s13   ;;  %s2335_s12 = sphi %s2373_s12, %s2879_s12  }
   0x4   : > { %p23_p0 = scmp.ge.s32.totalorder %s22_s17, 2  ;;  %p65_p1 = scmp.ne.s32.totalorder %s2339_s13, %s2335_s12 }
   0x5   : > { %p66_p2 = scmp.eq.s32.totalorder %s2351_s16, 0  ;;  %p123_p4 = scmp.eq.s32.totalorder %s1928_s18, 1 }
   0x6   : > { %s2884_s17 = smov (%p23_p0, %s22_s17), 0  ;;  %s58_s20 = sadd.s32 1, %s2339_s13 }
   0x7   : > { %p67_p3 = por %p66_p2, %p65_p1  ;;  %s55_s19 = ssub.s32 %s2347_s15, %s2884_s17 }
   0x8   : > { %p56_p5 = scmp.eq.s32.totalorder %s55_s19, 0  ;;  %p2408_p6 = por %p123_p4, %p65_p1 }
   0x9   : > { %p1932_p7 = scmp.ge.s32.totalorder %s2351_s16, 2 }
   0xa   : > { %s2413_s22 = scalar_select %p56_p5, %s2339_s13, %s58_s20  }
   0xb   : > { %155 = sbr.rel (%p1932_p7) target bundleno = 118 (0x76), region = 20 }
  0x12   : > { %158 = sbr.rel (!%p67_p3) target bundleno = 118 (0x76), region = 24  ;;  %s160_s23 = sand.u32 (%p67_p3), 1, %s2339_s13  }
  0x13   : > { %s1933_s24 = sshll.u32 (%p67_p3), %s2347_s15, 2  ;;  %s2173_s25 = smul.u32 (%p67_p3), 576, %s160_s23 }
  0x14   : > { %s2421_s28 = scalar_lea.vmem (%p67_p3), %s2875_s1, %s1933_s24 }
  0x15   : > { %v180_v0 = vld [vmem:[%s2421_s28] sm:$0xf] (%p67_p3)  ;;  %v182_v1 = vld [vmem:[%s2421_s28 + $0x8] sm:$0xf] (%p67_p3)  ;;  %v184_v2 = vld [vmem:[%s2421_s28 + $0x10] sm:$0xf] (%p67_p3) }
  0x16   : > { %v186_v3 = vld [vmem:[%s2421_s28 + $0x18] sm:$0xf] (%p67_p3)  ;;  %v188_v4 = vld [vmem:[%s2421_s28 + $0x20] sm:$0xf] (%p67_p3)  ;;  %s2428_s29 = scalar_lea.vmem (%p67_p3), [#allocation2], %s2173_s25 }
  0x17   : > { %181 = vst [vmem:[%s2428_s29] sm:$0xf] (%p67_p3), %v180_v0  ;;  %183 = vst [vmem:[%s2428_s29 + $0x4] sm:$0xf] (%p67_p3), %v182_v1  ;;  %v190_v5 = vld [vmem:[%s2421_s28 + $0x28] sm:$0xf] (%p67_p3) }
  0x18   : > { %185 = vst [vmem:[%s2428_s29 + $0x8] sm:$0xf] (%p67_p3), %v184_v2  ;;  %187 = vst [vmem:[%s2428_s29 + $0xc] sm:$0xf] (%p67_p3), %v186_v3  ;;  %v192_v6 = vld [vmem:[%s2421_s28 + $0x30] sm:$0xf] (%p67_p3) }
  0x19   : > { %189 = vst [vmem:[%s2428_s29 + $0x10] sm:$0xf] %v188_v4  ;;  %v194_v7 = vld [vmem:[%s2421_s28 + $0x38] sm:$0xf]  ;;  %191 = vst [vmem:[%s2428_s29 + $0x14] sm:$0xf] %v190_v5 }
  0x1a   : > { %193 = vst [vmem:[%s2428_s29 + $0x18] sm:$0xf] %v192_v6  ;;  %195 = vst [vmem:[%s2428_s29 + $0x1c] sm:$0xf] %v194_v7  ;;  %v196_v8 = vld [vmem:[%s2421_s28 + $0x40] sm:$0xf] }
  0x1b   : > { %v198_v9 = vld [vmem:[%s2421_s28 + $0x48] sm:$0xf]  ;;  %v200_v10 = vld [vmem:[%s2421_s28 + $0x50] sm:$0xf]  ;;  %197 = vst [vmem:[%s2428_s29 + $0x20] sm:$0xf] %v196_v8 }
  0x1c   : > { %199 = vst [vmem:[%s2428_s29 + $0x24] sm:$0xf] %v198_v9  ;;  %201 = vst [vmem:[%s2428_s29 + $0x28] sm:$0xf] %v200_v10  ;;  %v202_v11 = vld [vmem:[%s2421_s28 + $0x58] sm:$0xf] }
  0x1d   : > { %v204_v12 = vld [vmem:[%s2421_s28 + $0x60] sm:$0xf]  ;;  %v206_v13 = vld [vmem:[%s2421_s28 + $0x68] sm:$0xf]  ;;  %203 = vst [vmem:[%s2428_s29 + $0x2c] sm:$0xf] %v202_v11 }
  0x1e   : > { %205 = vst [vmem:[%s2428_s29 + $0x30] sm:$0xf] %v204_v12  ;;  %207 = vst [vmem:[%s2428_s29 + $0x34] sm:$0xf] %v206_v13  ;;  %v208_v14 = vld [vmem:[%s2421_s28 + $0x70] sm:$0xf] }
  0x1f   : > { %v210_v15 = vld [vmem:[%s2421_s28 + $0x78] sm:$0xf]  ;;  %v212_v16 = vld [vmem:[%s2421_s28 + $0x80] sm:$0xf]  ;;  %209 = vst [vmem:[%s2428_s29 + $0x38] sm:$0xf] %v208_v14 }
  0x20   : > { %211 = vst [vmem:[%s2428_s29 + $0x3c] sm:$0xf] %v210_v15  ;;  %213 = vst [vmem:[%s2428_s29 + $0x40] sm:$0xf] %v212_v16  ;;  %v214_v17 = vld [vmem:[%s2421_s28 + $0x88] sm:$0xf] }
  0x21   : > { %v216_v18 = vld [vmem:[%s2421_s28 + $0x90] sm:$0xf]  ;;  %v218_v19 = vld [vmem:[%s2421_s28 + $0x98] sm:$0xf]  ;;  %215 = vst [vmem:[%s2428_s29 + $0x44] sm:$0xf] %v214_v17 }
  0x22   : > { %217 = vst [vmem:[%s2428_s29 + $0x48] sm:$0xf] %v216_v18  ;;  %219 = vst [vmem:[%s2428_s29 + $0x4c] sm:$0xf] %v218_v19  ;;  %v220_v20 = vld [vmem:[%s2421_s28 + $0xa0] sm:$0xf] }
  0x23   : > { %v222_v21 = vld [vmem:[%s2421_s28 + $0xa8] sm:$0xf]  ;;  %v224_v22 = vld [vmem:[%s2421_s28 + $0xb0] sm:$0xf]  ;;  %221 = vst [vmem:[%s2428_s29 + $0x50] sm:$0xf] %v220_v20 }
  0x24   : > { %223 = vst [vmem:[%s2428_s29 + $0x54] sm:$0xf] %v222_v21  ;;  %225 = vst [vmem:[%s2428_s29 + $0x58] sm:$0xf] %v224_v22  ;;  %v226_v23 = vld [vmem:[%s2421_s28 + $0xb8] sm:$0xf] }
  0x25   : > { %v228_v24 = vld [vmem:[%s2421_s28 + $0xc0] sm:$0xf]  ;;  %v230_v25 = vld [vmem:[%s2421_s28 + $0xc8] sm:$0xf]  ;;  %227 = vst [vmem:[%s2428_s29 + $0x5c] sm:$0xf] %v226_v23 }
  0x26   : > { %229 = vst [vmem:[%s2428_s29 + $0x60] sm:$0xf] %v228_v24  ;;  %231 = vst [vmem:[%s2428_s29 + $0x64] sm:$0xf] %v230_v25  ;;  %v232_v26 = vld [vmem:[%s2421_s28 + $0xd0] sm:$0xf] }
  0x27   : > { %v234_v27 = vld [vmem:[%s2421_s28 + $0xd8] sm:$0xf]  ;;  %v236_v28 = vld [vmem:[%s2421_s28 + $0xe0] sm:$0xf]  ;;  %233 = vst [vmem:[%s2428_s29 + $0x68] sm:$0xf] %v232_v26 }
  0x28   : > { %235 = vst [vmem:[%s2428_s29 + $0x6c] sm:$0xf] %v234_v27  ;;  %237 = vst [vmem:[%s2428_s29 + $0x70] sm:$0xf] %v236_v28  ;;  %v238_v29 = vld [vmem:[%s2421_s28 + $0xe8] sm:$0xf] }
  0x29   : > { %v240_v30 = vld [vmem:[%s2421_s28 + $0xf0] sm:$0xf]  ;;  %v242_v31 = vld [vmem:[%s2421_s28 + $0xf8] sm:$0xf]  ;;  %239 = vst [vmem:[%s2428_s29 + $0x74] sm:$0xf] %v238_v29 }
  0x2a   : > { %241 = vst [vmem:[%s2428_s29 + $0x78] sm:$0xf] %v240_v30  ;;  %243 = vst [vmem:[%s2428_s29 + $0x7c] sm:$0xf] %v242_v31  ;;  %v244_v32 = vld [vmem:[%s2421_s28 + $0x100] sm:$0xf] }
  0x2b   : > { %v246_v33 = vld [vmem:[%s2421_s28 + $0x108] sm:$0xf]  ;;  %v248_v34 = vld [vmem:[%s2421_s28 + $0x110] sm:$0xf]  ;;  %245 = vst [vmem:[%s2428_s29 + $0x80] sm:$0xf] %v244_v32 }
  0x2c   : > { %247 = vst [vmem:[%s2428_s29 + $0x84] sm:$0xf] %v246_v33  ;;  %249 = vst [vmem:[%s2428_s29 + $0x88] sm:$0xf] %v248_v34  ;;  %v250_v35 = vld [vmem:[%s2421_s28 + $0x118] sm:$0xf] }
  0x2d   : > { %v252_v36 = vld [vmem:[%s2421_s28 + $0x120] sm:$0xf]  ;;  %v254_v37 = vld [vmem:[%s2421_s28 + $0x128] sm:$0xf]  ;;  %251 = vst [vmem:[%s2428_s29 + $0x8c] sm:$0xf] %v250_v35 }
  0x2e   : > { %253 = vst [vmem:[%s2428_s29 + $0x90] sm:$0xf] %v252_v36  ;;  %255 = vst [vmem:[%s2428_s29 + $0x94] sm:$0xf] %v254_v37  ;;  %v256_v38 = vld [vmem:[%s2421_s28 + $0x130] sm:$0xf] }
  0x2f   : > { %v258_v39 = vld [vmem:[%s2421_s28 + $0x138] sm:$0xf]  ;;  %v260_v40 = vld [vmem:[%s2421_s28 + $0x140] sm:$0xf]  ;;  %257 = vst [vmem:[%s2428_s29 + $0x98] sm:$0xf] %v256_v38 }
  0x30   : > { %259 = vst [vmem:[%s2428_s29 + $0x9c] sm:$0xf] %v258_v39  ;;  %261 = vst [vmem:[%s2428_s29 + $0xa0] sm:$0xf] %v260_v40  ;;  %v262_v41 = vld [vmem:[%s2421_s28 + $0x148] sm:$0xf] }
  0x31   : > { %v264_v42 = vld [vmem:[%s2421_s28 + $0x150] sm:$0xf]  ;;  %v266_v43 = vld [vmem:[%s2421_s28 + $0x158] sm:$0xf]  ;;  %263 = vst [vmem:[%s2428_s29 + $0xa4] sm:$0xf] %v262_v41 }
  0x32   : > { %265 = vst [vmem:[%s2428_s29 + $0xa8] sm:$0xf] %v264_v42  ;;  %267 = vst [vmem:[%s2428_s29 + $0xac] sm:$0xf] %v266_v43  ;;  %v268_v44 = vld [vmem:[%s2421_s28 + $0x160] sm:$0xf] }
  0x33   : > { %v270_v45 = vld [vmem:[%s2421_s28 + $0x168] sm:$0xf]  ;;  %v272_v46 = vld [vmem:[%s2421_s28 + $0x170] sm:$0xf]  ;;  %269 = vst [vmem:[%s2428_s29 + $0xb0] sm:$0xf] %v268_v44 }
  0x34   : > { %271 = vst [vmem:[%s2428_s29 + $0xb4] sm:$0xf] %v270_v45  ;;  %273 = vst [vmem:[%s2428_s29 + $0xb8] sm:$0xf] %v272_v46  ;;  %v274_v47 = vld [vmem:[%s2421_s28 + $0x178] sm:$0xf] }
  0x35   : > { %v276_v48 = vld [vmem:[%s2421_s28 + $0x180] sm:$0xf]  ;;  %v278_v49 = vld [vmem:[%s2421_s28 + $0x188] sm:$0xf]  ;;  %275 = vst [vmem:[%s2428_s29 + $0xbc] sm:$0xf] %v274_v47 }
  0x36   : > { %277 = vst [vmem:[%s2428_s29 + $0xc0] sm:$0xf] %v276_v48  ;;  %279 = vst [vmem:[%s2428_s29 + $0xc4] sm:$0xf] %v278_v49  ;;  %v280_v50 = vld [vmem:[%s2421_s28 + $0x190] sm:$0xf] }
  0x37   : > { %v282_v51 = vld [vmem:[%s2421_s28 + $0x198] sm:$0xf]  ;;  %v284_v52 = vld [vmem:[%s2421_s28 + $0x1a0] sm:$0xf]  ;;  %281 = vst [vmem:[%s2428_s29 + $0xc8] sm:$0xf] %v280_v50 }
  0x38   : > { %283 = vst [vmem:[%s2428_s29 + $0xcc] sm:$0xf] %v282_v51  ;;  %285 = vst [vmem:[%s2428_s29 + $0xd0] sm:$0xf] %v284_v52  ;;  %v286_v53 = vld [vmem:[%s2421_s28 + $0x1a8] sm:$0xf] }
  0x39   : > { %v288_v54 = vld [vmem:[%s2421_s28 + $0x1b0] sm:$0xf]  ;;  %v290_v55 = vld [vmem:[%s2421_s28 + $0x1b8] sm:$0xf]  ;;  %287 = vst [vmem:[%s2428_s29 + $0xd4] sm:$0xf] %v286_v53 }
  0x3a   : > { %289 = vst [vmem:[%s2428_s29 + $0xd8] sm:$0xf] %v288_v54  ;;  %291 = vst [vmem:[%s2428_s29 + $0xdc] sm:$0xf] %v290_v55  ;;  %v292_v56 = vld [vmem:[%s2421_s28 + $0x1c0] sm:$0xf] }
  0x3b   : > { %v294_v57 = vld [vmem:[%s2421_s28 + $0x1c8] sm:$0xf]  ;;  %v296_v58 = vld [vmem:[%s2421_s28 + $0x1d0] sm:$0xf]  ;;  %293 = vst [vmem:[%s2428_s29 + $0xe0] sm:$0xf] %v292_v56 }
  0x3c   : > { %295 = vst [vmem:[%s2428_s29 + $0xe4] sm:$0xf] %v294_v57  ;;  %297 = vst [vmem:[%s2428_s29 + $0xe8] sm:$0xf] %v296_v58  ;;  %v298_v59 = vld [vmem:[%s2421_s28 + $0x1d8] sm:$0xf] }
  0x3d   : > { %v300_v60 = vld [vmem:[%s2421_s28 + $0x1e0] sm:$0xf]  ;;  %v302_v61 = vld [vmem:[%s2421_s28 + $0x1e8] sm:$0xf]  ;;  %299 = vst [vmem:[%s2428_s29 + $0xec] sm:$0xf] %v298_v59 }
  0x3e   : > { %301 = vst [vmem:[%s2428_s29 + $0xf0] sm:$0xf] %v300_v60  ;;  %303 = vst [vmem:[%s2428_s29 + $0xf4] sm:$0xf] %v302_v61  ;;  %v304_v62 = vld [vmem:[%s2421_s28 + $0x1f0] sm:$0xf] }
  0x3f   : > { %v306_v63 = vld [vmem:[%s2421_s28 + $0x1f8] sm:$0xf]  ;;  %v308_v0 = vld [vmem:[%s2421_s28 + $0x200] sm:$0xf]  ;;  %305 = vst [vmem:[%s2428_s29 + $0xf8] sm:$0xf] %v304_v62 }
  0x40   : > { %307 = vst [vmem:[%s2428_s29 + $0xfc] sm:$0xf] %v306_v63  ;;  %309 = vst [vmem:[%s2428_s29 + $0x100] sm:$0xf] %v308_v0  ;;  %v310_v1 = vld [vmem:[%s2421_s28 + $0x208] sm:$0xf] }
  0x41   : > { %v312_v2 = vld [vmem:[%s2421_s28 + $0x210] sm:$0xf]  ;;  %v314_v3 = vld [vmem:[%s2421_s28 + $0x218] sm:$0xf]  ;;  %311 = vst [vmem:[%s2428_s29 + $0x104] sm:$0xf] %v310_v1 }
  0x42   : > { %313 = vst [vmem:[%s2428_s29 + $0x108] sm:$0xf] %v312_v2  ;;  %315 = vst [vmem:[%s2428_s29 + $0x10c] sm:$0xf] %v314_v3  ;;  %v316_v4 = vld [vmem:[%s2421_s28 + $0x220] sm:$0xf] }
  0x43   : > { %v318_v5 = vld [vmem:[%s2421_s28 + $0x228] sm:$0xf]  ;;  %v320_v6 = vld [vmem:[%s2421_s28 + $0x230] sm:$0xf]  ;;  %317 = vst [vmem:[%s2428_s29 + $0x110] sm:$0xf] %v316_v4 }
  0x44   : > { %319 = vst [vmem:[%s2428_s29 + $0x114] sm:$0xf] %v318_v5  ;;  %321 = vst [vmem:[%s2428_s29 + $0x118] sm:$0xf] %v320_v6  ;;  %v322_v7 = vld [vmem:[%s2421_s28 + $0x238] sm:$0xf] }
  0x45   : > { %v324_v8 = vld [vmem:[%s2421_s28 + $0x240] sm:$0xf]  ;;  %v326_v9 = vld [vmem:[%s2421_s28 + $0x248] sm:$0xf]  ;;  %323 = vst [vmem:[%s2428_s29 + $0x11c] sm:$0xf] %v322_v7 }
  0x46   : > { %325 = vst [vmem:[%s2428_s29 + $0x120] sm:$0xf] %v324_v8  ;;  %327 = vst [vmem:[%s2428_s29 + $0x124] sm:$0xf] %v326_v9  ;;  %v328_v10 = vld [vmem:[%s2421_s28 + $0x250] sm:$0xf] }
  0x47   : > { %v330_v11 = vld [vmem:[%s2421_s28 + $0x258] sm:$0xf]  ;;  %v332_v12 = vld [vmem:[%s2421_s28 + $0x260] sm:$0xf]  ;;  %329 = vst [vmem:[%s2428_s29 + $0x128] sm:$0xf] %v328_v10 }
  0x48   : > { %331 = vst [vmem:[%s2428_s29 + $0x12c] sm:$0xf] %v330_v11  ;;  %333 = vst [vmem:[%s2428_s29 + $0x130] sm:$0xf] %v332_v12  ;;  %v334_v13 = vld [vmem:[%s2421_s28 + $0x268] sm:$0xf] }
  0x49   : > { %v336_v14 = vld [vmem:[%s2421_s28 + $0x270] sm:$0xf]  ;;  %v338_v15 = vld [vmem:[%s2421_s28 + $0x278] sm:$0xf]  ;;  %335 = vst [vmem:[%s2428_s29 + $0x134] sm:$0xf] %v334_v13 }
  0x4a   : > { %337 = vst [vmem:[%s2428_s29 + $0x138] sm:$0xf] %v336_v14  ;;  %339 = vst [vmem:[%s2428_s29 + $0x13c] sm:$0xf] %v338_v15  ;;  %v340_v16 = vld [vmem:[%s2421_s28 + $0x280] sm:$0xf] }
  0x4b   : > { %v342_v17 = vld [vmem:[%s2421_s28 + $0x288] sm:$0xf]  ;;  %v344_v18 = vld [vmem:[%s2421_s28 + $0x290] sm:$0xf]  ;;  %341 = vst [vmem:[%s2428_s29 + $0x140] sm:$0xf] %v340_v16 }
  0x4c   : > { %343 = vst [vmem:[%s2428_s29 + $0x144] sm:$0xf] %v342_v17  ;;  %345 = vst [vmem:[%s2428_s29 + $0x148] sm:$0xf] %v344_v18  ;;  %v346_v19 = vld [vmem:[%s2421_s28 + $0x298] sm:$0xf] }
  0x4d   : > { %v348_v20 = vld [vmem:[%s2421_s28 + $0x2a0] sm:$0xf]  ;;  %v350_v21 = vld [vmem:[%s2421_s28 + $0x2a8] sm:$0xf]  ;;  %347 = vst [vmem:[%s2428_s29 + $0x14c] sm:$0xf] %v346_v19 }
  0x4e   : > { %349 = vst [vmem:[%s2428_s29 + $0x150] sm:$0xf] %v348_v20  ;;  %351 = vst [vmem:[%s2428_s29 + $0x154] sm:$0xf] %v350_v21  ;;  %v352_v22 = vld [vmem:[%s2421_s28 + $0x2b0] sm:$0xf] }
  0x4f   : > { %v354_v23 = vld [vmem:[%s2421_s28 + $0x2b8] sm:$0xf]  ;;  %v356_v24 = vld [vmem:[%s2421_s28 + $0x2c0] sm:$0xf]  ;;  %353 = vst [vmem:[%s2428_s29 + $0x158] sm:$0xf] %v352_v22 }
  0x50   : > { %355 = vst [vmem:[%s2428_s29 + $0x15c] sm:$0xf] %v354_v23  ;;  %357 = vst [vmem:[%s2428_s29 + $0x160] sm:$0xf] %v356_v24  ;;  %v358_v25 = vld [vmem:[%s2421_s28 + $0x2c8] sm:$0xf] }
  0x51   : > { %v360_v26 = vld [vmem:[%s2421_s28 + $0x2d0] sm:$0xf]  ;;  %v362_v27 = vld [vmem:[%s2421_s28 + $0x2d8] sm:$0xf]  ;;  %359 = vst [vmem:[%s2428_s29 + $0x164] sm:$0xf] %v358_v25 }
  0x52   : > { %361 = vst [vmem:[%s2428_s29 + $0x168] sm:$0xf] %v360_v26  ;;  %363 = vst [vmem:[%s2428_s29 + $0x16c] sm:$0xf] %v362_v27  ;;  %v364_v28 = vld [vmem:[%s2421_s28 + $0x2e0] sm:$0xf] }
  0x53   : > { %v366_v29 = vld [vmem:[%s2421_s28 + $0x2e8] sm:$0xf]  ;;  %v368_v30 = vld [vmem:[%s2421_s28 + $0x2f0] sm:$0xf]  ;;  %365 = vst [vmem:[%s2428_s29 + $0x170] sm:$0xf] %v364_v28 }
  0x54   : > { %367 = vst [vmem:[%s2428_s29 + $0x174] sm:$0xf] %v366_v29  ;;  %369 = vst [vmem:[%s2428_s29 + $0x178] sm:$0xf] %v368_v30  ;;  %v370_v31 = vld [vmem:[%s2421_s28 + $0x2f8] sm:$0xf] }
  0x55   : > { %v372_v32 = vld [vmem:[%s2421_s28 + $0x300] sm:$0xf]  ;;  %v374_v33 = vld [vmem:[%s2421_s28 + $0x308] sm:$0xf]  ;;  %371 = vst [vmem:[%s2428_s29 + $0x17c] sm:$0xf] %v370_v31 }
  0x56   : > { %373 = vst [vmem:[%s2428_s29 + $0x180] sm:$0xf] %v372_v32  ;;  %375 = vst [vmem:[%s2428_s29 + $0x184] sm:$0xf] %v374_v33  ;;  %v376_v34 = vld [vmem:[%s2421_s28 + $0x310] sm:$0xf] }
  0x57   : > { %v378_v35 = vld [vmem:[%s2421_s28 + $0x318] sm:$0xf]  ;;  %v380_v36 = vld [vmem:[%s2421_s28 + $0x320] sm:$0xf]  ;;  %377 = vst [vmem:[%s2428_s29 + $0x188] sm:$0xf] %v376_v34 }
  0x58   : > { %379 = vst [vmem:[%s2428_s29 + $0x18c] sm:$0xf] %v378_v35  ;;  %381 = vst [vmem:[%s2428_s29 + $0x190] sm:$0xf] %v380_v36  ;;  %v382_v37 = vld [vmem:[%s2421_s28 + $0x328] sm:$0xf] }
  0x59   : > { %v384_v38 = vld [vmem:[%s2421_s28 + $0x330] sm:$0xf]  ;;  %v386_v39 = vld [vmem:[%s2421_s28 + $0x338] sm:$0xf]  ;;  %383 = vst [vmem:[%s2428_s29 + $0x194] sm:$0xf] %v382_v37 }
  0x5a   : > { %385 = vst [vmem:[%s2428_s29 + $0x198] sm:$0xf] %v384_v38  ;;  %387 = vst [vmem:[%s2428_s29 + $0x19c] sm:$0xf] %v386_v39  ;;  %v388_v40 = vld [vmem:[%s2421_s28 + $0x340] sm:$0xf] }
  0x5b   : > { %v390_v41 = vld [vmem:[%s2421_s28 + $0x348] sm:$0xf]  ;;  %v392_v42 = vld [vmem:[%s2421_s28 + $0x350] sm:$0xf]  ;;  %389 = vst [vmem:[%s2428_s29 + $0x1a0] sm:$0xf] %v388_v40 }
  0x5c   : > { %391 = vst [vmem:[%s2428_s29 + $0x1a4] sm:$0xf] %v390_v41  ;;  %393 = vst [vmem:[%s2428_s29 + $0x1a8] sm:$0xf] %v392_v42  ;;  %v394_v43 = vld [vmem:[%s2421_s28 + $0x358] sm:$0xf] }
  0x5d   : > { %v396_v44 = vld [vmem:[%s2421_s28 + $0x360] sm:$0xf]  ;;  %v398_v45 = vld [vmem:[%s2421_s28 + $0x368] sm:$0xf]  ;;  %395 = vst [vmem:[%s2428_s29 + $0x1ac] sm:$0xf] %v394_v43 }
  0x5e   : > { %397 = vst [vmem:[%s2428_s29 + $0x1b0] sm:$0xf] %v396_v44  ;;  %399 = vst [vmem:[%s2428_s29 + $0x1b4] sm:$0xf] %v398_v45  ;;  %v400_v46 = vld [vmem:[%s2421_s28 + $0x370] sm:$0xf] }
  0x5f   : > { %v402_v47 = vld [vmem:[%s2421_s28 + $0x378] sm:$0xf]  ;;  %v404_v48 = vld [vmem:[%s2421_s28 + $0x380] sm:$0xf]  ;;  %401 = vst [vmem:[%s2428_s29 + $0x1b8] sm:$0xf] %v400_v46 }
  0x60   : > { %403 = vst [vmem:[%s2428_s29 + $0x1bc] sm:$0xf] %v402_v47  ;;  %405 = vst [vmem:[%s2428_s29 + $0x1c0] sm:$0xf] %v404_v48  ;;  %v406_v49 = vld [vmem:[%s2421_s28 + $0x388] sm:$0xf] }
  0x61   : > { %v408_v50 = vld [vmem:[%s2421_s28 + $0x390] sm:$0xf]  ;;  %v410_v51 = vld [vmem:[%s2421_s28 + $0x398] sm:$0xf]  ;;  %407 = vst [vmem:[%s2428_s29 + $0x1c4] sm:$0xf] %v406_v49 }
  0x62   : > { %409 = vst [vmem:[%s2428_s29 + $0x1c8] sm:$0xf] %v408_v50  ;;  %411 = vst [vmem:[%s2428_s29 + $0x1cc] sm:$0xf] %v410_v51  ;;  %v412_v52 = vld [vmem:[%s2421_s28 + $0x3a0] sm:$0xf] }
  0x63   : > { %v414_v53 = vld [vmem:[%s2421_s28 + $0x3a8] sm:$0xf]  ;;  %v416_v54 = vld [vmem:[%s2421_s28 + $0x3b0] sm:$0xf]  ;;  %413 = vst [vmem:[%s2428_s29 + $0x1d0] sm:$0xf] %v412_v52 }
  0x64   : > { %415 = vst [vmem:[%s2428_s29 + $0x1d4] sm:$0xf] %v414_v53  ;;  %417 = vst [vmem:[%s2428_s29 + $0x1d8] sm:$0xf] %v416_v54  ;;  %v418_v55 = vld [vmem:[%s2421_s28 + $0x3b8] sm:$0xf] }
  0x65   : > { %v420_v56 = vld [vmem:[%s2421_s28 + $0x3c0] sm:$0xf]  ;;  %v422_v57 = vld [vmem:[%s2421_s28 + $0x3c8] sm:$0xf]  ;;  %419 = vst [vmem:[%s2428_s29 + $0x1dc] sm:$0xf] %v418_v55 }
  0x66   : > { %421 = vst [vmem:[%s2428_s29 + $0x1e0] sm:$0xf] %v420_v56  ;;  %423 = vst [vmem:[%s2428_s29 + $0x1e4] sm:$0xf] %v422_v57  ;;  %v424_v58 = vld [vmem:[%s2421_s28 + $0x3d0] sm:$0xf] }
  0x67   : > { %v426_v59 = vld [vmem:[%s2421_s28 + $0x3d8] sm:$0xf]  ;;  %v428_v60 = vld [vmem:[%s2421_s28 + $0x3e0] sm:$0xf]  ;;  %425 = vst [vmem:[%s2428_s29 + $0x1e8] sm:$0xf] %v424_v58 }
  0x68   : > { %427 = vst [vmem:[%s2428_s29 + $0x1ec] sm:$0xf] %v426_v59  ;;  %429 = vst [vmem:[%s2428_s29 + $0x1f0] sm:$0xf] %v428_v60  ;;  %v430_v61 = vld [vmem:[%s2421_s28 + $0x3e8] sm:$0xf] }
  0x69   : > { %v432_v62 = vld [vmem:[%s2421_s28 + $0x3f0] sm:$0xf]  ;;  %v434_v63 = vld [vmem:[%s2421_s28 + $0x3f8] sm:$0xf]  ;;  %431 = vst [vmem:[%s2428_s29 + $0x1f4] sm:$0xf] %v430_v61 }
  0x6a   : > { %433 = vst [vmem:[%s2428_s29 + $0x1f8] sm:$0xf] %v432_v62  ;;  %435 = vst [vmem:[%s2428_s29 + $0x1fc] sm:$0xf] %v434_v63  ;;  %v436_v0 = vld [vmem:[%s2421_s28 + $0x400] sm:$0xf] }
  0x6b   : > { %v438_v1 = vld [vmem:[%s2421_s28 + $0x408] sm:$0xf]  ;;  %v440_v2 = vld [vmem:[%s2421_s28 + $0x410] sm:$0xf]  ;;  %437 = vst [vmem:[%s2428_s29 + $0x200] sm:$0xf] %v436_v0 }
  0x6c   : > { %439 = vst [vmem:[%s2428_s29 + $0x204] sm:$0xf] %v438_v1  ;;  %441 = vst [vmem:[%s2428_s29 + $0x208] sm:$0xf] %v440_v2  ;;  %v442_v3 = vld [vmem:[%s2421_s28 + $0x418] sm:$0xf] }
  0x6d   : > { %v444_v4 = vld [vmem:[%s2421_s28 + $0x420] sm:$0xf]  ;;  %v446_v5 = vld [vmem:[%s2421_s28 + $0x428] sm:$0xf]  ;;  %443 = vst [vmem:[%s2428_s29 + $0x20c] sm:$0xf] %v442_v3 }
  0x6e   : > { %445 = vst [vmem:[%s2428_s29 + $0x210] sm:$0xf] %v444_v4  ;;  %447 = vst [vmem:[%s2428_s29 + $0x214] sm:$0xf] %v446_v5  ;;  %v448_v6 = vld [vmem:[%s2421_s28 + $0x430] sm:$0xf] }
  0x6f   : > { %v450_v7 = vld [vmem:[%s2421_s28 + $0x438] sm:$0xf]  ;;  %v452_v8 = vld [vmem:[%s2421_s28 + $0x440] sm:$0xf]  ;;  %449 = vst [vmem:[%s2428_s29 + $0x218] sm:$0xf] %v448_v6 }
  0x70   : > { %451 = vst [vmem:[%s2428_s29 + $0x21c] sm:$0xf] %v450_v7  ;;  %453 = vst [vmem:[%s2428_s29 + $0x220] sm:$0xf] %v452_v8  ;;  %v454_v9 = vld [vmem:[%s2421_s28 + $0x448] sm:$0xf] }
  0x71   : > { %v456_v10 = vld [vmem:[%s2421_s28 + $0x450] sm:$0xf]  ;;  %v458_v11 = vld [vmem:[%s2421_s28 + $0x458] sm:$0xf]  ;;  %455 = vst [vmem:[%s2428_s29 + $0x224] sm:$0xf] %v454_v9 }
  0x72   : > { %457 = vst [vmem:[%s2428_s29 + $0x228] sm:$0xf] %v456_v10  ;;  %459 = vst [vmem:[%s2428_s29 + $0x22c] sm:$0xf] %v458_v11  ;;  %v460_v12 = vld [vmem:[%s2421_s28 + $0x460] sm:$0xf] }
  0x73   : > { %v462_v13 = vld [vmem:[%s2421_s28 + $0x468] sm:$0xf]  ;;  %v464_v14 = vld [vmem:[%s2421_s28 + $0x470] sm:$0xf]  ;;  %461 = vst [vmem:[%s2428_s29 + $0x230] sm:$0xf] %v460_v12 }
  0x74   : > { %463 = vst [vmem:[%s2428_s29 + $0x234] sm:$0xf] %v462_v13  ;;  %465 = vst [vmem:[%s2428_s29 + $0x238] sm:$0xf] %v464_v14  ;;  %v466_v15 = vld [vmem:[%s2421_s28 + $0x478] sm:$0xf] }
  0x75   : > { %467 = vst [vmem:[%s2428_s29 + $0x23c] sm:$0xf] %v466_v15 }
  0x76 PF: > { %p1934_p8 = scmp.ge.s32.totalorder %s2351_s16, 1  ;;  %p783_p9 = scmp.lt.s32.totalorder %s2351_s16, 3 }
  0x78   : > { %p784_p10 = pnand %p1934_p8, %p783_p9 }
  0x79   : > { %s790_s30 = sand.u32 (!%p784_p10), 1, %s2335_s12   ;;  %v2248_v16 = vld [vmem:[%s2874_s0 + $0x4] ss:$36 sps:$4 sm:$0xff] (!%p784_p10)   ;;  %v2253_v17 = vld [vmem:[%s2874_s0 + $0xc] ss:$36 sps:$4 sm:$0xff] (!%p784_p10)   ;;  %p828_p11 = scmp.lt.s32.totalorder (!%p784_p10), %s2343_s14, 1 }
  0x7a   : > { %787 = sbr.rel (%p784_p10) target bundleno = 451 (0x1c3), region = 69  ;;  %1560 = vmatprep.mubr.bf16.mxu0 (!%p784_p10), %v2248_v16  ;;  %1609 = vmatprep.mubr.bf16.mxu1 (!%p784_p10), %v2253_v17  ;;  %v2246_v47 = vld [vmem:[%s2874_s0] ss:$36 sps:$4 sm:$0xff] (!%p784_p10)   ;;  %v2274_v49 = vld [vmem:[%s2874_s0 + $0x4c] ss:$36 sps:$4 sm:$0xff] (!%p784_p10)  }
  0x7b   : > { %s2174_s4 = smul.u32 (!%p784_p10), 576, %s790_s30  ;;  %v2251_v51 = vld [vmem:[%s2874_s0 + $0x8] ss:$36 sps:$4 sm:$0xff] (!%p784_p10)   ;;  %v2279_v13 = vld [vmem:[%s2874_s0 + $0x54] ss:$36 sps:$4 sm:$0xff] (!%p784_p10)  }
  0x7c   : > { %v2277_v58 = vld [vmem:[%s2874_s0 + $0x48] ss:$36 sps:$4 sm:$0xff] (!%p784_p10)   ;;  %v2282_v15 = vld [vmem:[%s2874_s0 + $0x50] ss:$36 sps:$4 sm:$0xff] (!%p784_p10)  }
  0x7d   : > { %s2724_s9 = scalar_lea.vmem (!%p784_p10), [#allocation2], %s2174_s4 }
  0x7e   : > { %v2215_v18 = vld [vmem:[%s2724_s9 + $0x40] sm:$0xff] (!%p784_p10)   ;;  %v2219_v22 = vld [vmem:[%s2724_s9 + $0x48] sm:$0xff] (!%p784_p10)   ;;  %v2223_v26 = vld [vmem:[%s2724_s9 + $0x50] sm:$0xff] (!%p784_p10)  }
  0x7f   : > { %v2216_v19 = vld [vmem:[%s2724_s9] sm:$0xff] (!%p784_p10)   ;;  %2031 = vmatprep.subr.bf16.mxu0 (!%p784_p10), %v2215_v18  ;;  %v2220_v23 = vld [vmem:[%s2724_s9 + $0x8] sm:$0xff] (!%p784_p10)   ;;  %v2224_v27 = vld [vmem:[%s2724_s9 + $0x10] sm:$0xff] (!%p784_p10)  }
  0x80   : > { %v2217_v20 = vld [vmem:[%s2724_s9 + $0xc0] sm:$0xff] (!%p784_p10)   ;;  %2032 = vmatpush3.bf16.msra.mxu0 (!%p784_p10), %v2216_v19  ;;  %v2221_v24 = vld [vmem:[%s2724_s9 + $0xc8] sm:$0xff] (!%p784_p10)   ;;  %v2225_v28 = vld [vmem:[%s2724_s9 + $0xd0] sm:$0xff] (!%p784_p10)  }
  0x81   : > { %v2218_v21 = vld [vmem:[%s2724_s9 + $0x80] sm:$0xff]   ;;  %2059 = vmatprep.subr.bf16.mxu1 %v2217_v20  ;;  %2033 = vmatprep.subr.bf16.mxu0 %v2219_v22  ;;  %v2222_v25 = vld [vmem:[%s2724_s9 + $0x88] sm:$0xff]   ;;  %v2226_v29 = vld [vmem:[%s2724_s9 + $0x90] sm:$0xff]   ;;  %s829_s7 = scalar_select %p828_p11, %s2343_s14, 1 }
  0x82   : > { %2060 = vmatpush3.bf16.msra.mxu1 %v2218_v21  ;;  %v2227_v30 = vld [vmem:[%s2724_s9 + $0x58] sm:$0xff]   ;;  %v2231_v34 = vld [vmem:[%s2724_s9 + $0x60] sm:$0xff]   ;;  %v2235_v38 = vld [vmem:[%s2724_s9 + $0x68] sm:$0xff]   ;;  %s2028_s12 = sshll.u32 (%p2408_p6), %s2343_s14, 3 }
  0x83   : > { %2061 = vmatprep.subr.bf16.mxu1 %v2221_v24  ;;  %v2228_v31 = vld [vmem:[%s2724_s9 + $0x18] sm:$0xff]   ;;  %v2232_v35 = vld [vmem:[%s2724_s9 + $0x20] sm:$0xff]   ;;  %v2236_v39 = vld [vmem:[%s2724_s9 + $0x28] sm:$0xff]   ;;  %s830_s11 = scalar_lea.vmem %s2876_s2, %s829_s7  ;;  %s1792_s20 = scalar_lea.vmem (%p2408_p6), %s2877_s3, %s2028_s12 }
  0x84   : > { %2034 = vmatpush3.bf16.msra.mxu0 %v2220_v23  ;;  %v2229_v32 = vld [vmem:[%s2724_s9 + $0xd8] sm:$0xff]   ;;  %v2233_v36 = vld [vmem:[%s2724_s9 + $0xe0] sm:$0xff]   ;;  %v2237_v40 = vld [vmem:[%s2724_s9 + $0xe8] sm:$0xff]  }
  0x85   : > { %2035 = vmatprep.subr.bf16.mxu0 %v2223_v26  ;;  %v2230_v33 = vld [vmem:[%s2724_s9 + $0x98] sm:$0xff]   ;;  %v2234_v37 = vld [vmem:[%s2724_s9 + $0xa0] sm:$0xff]   ;;  %v2238_v41 = vld [vmem:[%s2724_s9 + $0xa8] sm:$0xff]  }
  0x86   : > { %2062 = vmatpush3.bf16.msra.mxu1 %v2222_v25  ;;  %v2239_v42 = vld [vmem:[%s2724_s9 + $0x70] sm:$0xff]   ;;  %v2243_v46 = vld [vmem:[%s2724_s9 + $0x78] sm:$0xff]   ;;  %v2250_v53 = vld [vmem:[%s2724_s9 + $0x140] sm:$0xff]  }
  0x87   : > { %2063 = vmatprep.subr.bf16.mxu1 %v2225_v28  ;;  %v2240_v43 = vld [vmem:[%s2724_s9 + $0x30] sm:$0xff]   ;;  %v2244_v48 = vld [vmem:[%s2724_s9 + $0x38] sm:$0xff]   ;;  %v2254_v54 = vld [vmem:[%s2724_s9 + $0x100] sm:$0xff]  }
  0x88   : > { %2036 = vmatpush3.bf16.msra.mxu0 %v2224_v27  ;;  %v2241_v44 = vld [vmem:[%s2724_s9 + $0xf0] sm:$0xff]   ;;  %v2245_v50 = vld [vmem:[%s2724_s9 + $0xf8] sm:$0xff]   ;;  %v2255_v55 = vld [vmem:[%s2724_s9 + $0x1c0] sm:$0xff]  }
  0x89   : > { %2037 = vmatprep.subr.bf16.mxu0 %v2227_v30  ;;  %v2242_v45 = vld [vmem:[%s2724_s9 + $0xb0] sm:$0xff]   ;;  %v2249_v52 = vld [vmem:[%s2724_s9 + $0xb8] sm:$0xff]   ;;  %v2256_v56 = vld [vmem:[%s2724_s9 + $0x180] sm:$0xff]  }
  0x8a   : > { %2064 = vmatpush3.bf16.msra.mxu1 %v2226_v29  ;;  %v2257_v57 = vld [vmem:[%s2724_s9 + $0x148] sm:$0xff]   ;;  %v2261_v62 = vld [vmem:[%s2724_s9 + $0x150] sm:$0xff]   ;;  %v2265_v2 = vld [vmem:[%s2724_s9 + $0x158] sm:$0xff]  }
  0x8b   : > { %2065 = vmatprep.subr.bf16.mxu1 %v2229_v32  ;;  %v2258_v59 = vld [vmem:[%s2724_s9 + $0x108] sm:$0xff]   ;;  %v2262_v63 = vld [vmem:[%s2724_s9 + $0x110] sm:$0xff]   ;;  %v2266_v3 = vld [vmem:[%s2724_s9 + $0x118] sm:$0xff]  }
  0x8c   : > { %2038 = vmatpush3.bf16.msra.mxu0 %v2228_v31  ;;  %v2259_v60 = vld [vmem:[%s2724_s9 + $0x1c8] sm:$0xff]   ;;  %v2263_v0 = vld [vmem:[%s2724_s9 + $0x1d0] sm:$0xff]   ;;  %v2267_v4 = vld [vmem:[%s2724_s9 + $0x1d8] sm:$0xff]  }
  0x8d   : > { %2039 = vmatprep.subr.bf16.mxu0 %v2231_v34  ;;  %v2260_v61 = vld [vmem:[%s2724_s9 + $0x188] sm:$0xff]   ;;  %v2264_v1 = vld [vmem:[%s2724_s9 + $0x190] sm:$0xff]   ;;  %v2268_v5 = vld [vmem:[%s2724_s9 + $0x198] sm:$0xff]  }
  0x8e   : > { %2066 = vmatpush3.bf16.msra.mxu1 %v2230_v33  ;;  %v2269_v6 = vld [vmem:[%s2724_s9 + $0x160] sm:$0xff]   ;;  %v2273_v10 = vld [vmem:[%s2724_s9 + $0x168] sm:$0xff]   ;;  %v2283_v16 = vld [vmem:[%s2724_s9 + $0x170] sm:$0xff]  }
  0x8f   : > { %2067 = vmatprep.subr.bf16.mxu1 %v2233_v36  ;;  %v2270_v7 = vld [vmem:[%s2724_s9 + $0x120] sm:$0xff]   ;;  %v2276_v11 = vld [vmem:[%s2724_s9 + $0x128] sm:$0xff]   ;;  %v2284_v17 = vld [vmem:[%s2724_s9 + $0x130] sm:$0xff]  }
  0x90   : > { %2040 = vmatpush3.bf16.msra.mxu0 %v2232_v35  ;;  %v2271_v8 = vld [vmem:[%s2724_s9 + $0x1e0] sm:$0xff]   ;;  %v2278_v12 = vld [vmem:[%s2724_s9 + $0x1e8] sm:$0xff]   ;;  %v2285_v18 = vld [vmem:[%s2724_s9 + $0x1f0] sm:$0xff]  }
  0x91   : > { %2041 = vmatprep.subr.bf16.mxu0 %v2235_v38  ;;  %v2272_v9 = vld [vmem:[%s2724_s9 + $0x1a0] sm:$0xff]   ;;  %v2281_v14 = vld [vmem:[%s2724_s9 + $0x1a8] sm:$0xff]   ;;  %v2286_v19 = vld [vmem:[%s2724_s9 + $0x1b0] sm:$0xff]  }
  0x92   : > { %2068 = vmatpush3.bf16.msra.mxu1 %v2234_v37  ;;  %v2287_v20 = vld [vmem:[%s2724_s9 + $0x178] sm:$0xff]   ;;  %v2290_v23 = vld [vmem:[%s2874_s0 + $0x10] ss:$36 sps:$4 sm:$0xff]   ;;  %v2294_v26 = vld [vmem:[%s2724_s9 + $0x200] sm:$0xff]  }
  0x93   : > { %2069 = vmatprep.subr.bf16.mxu1 %v2237_v40  ;;  %v2288_v21 = vld [vmem:[%s2724_s9 + $0x138] sm:$0xff]   ;;  %v2298_v29 = vld [vmem:[%s2724_s9 + $0x208] sm:$0xff]   ;;  %v2302_v32 = vld [vmem:[%s2724_s9 + $0x210] sm:$0xff]  }
  0x94   : > { %2042 = vmatpush3.bf16.msra.mxu0 %v2236_v39  ;;  %v2289_v22 = vld [vmem:[%s2724_s9 + $0x1f8] sm:$0xff]   ;;  %v2303_v33 = vld [vmem:[%s2874_s0 + $0x64] ss:$36 sps:$4 sm:$0xff]   ;;  %v2309_v39 = vld [vmem:[%s2724_s9 + $0x230] sm:$0xff]  }
  0x95   : > { %2043 = vmatprep.subr.bf16.mxu0 %v2239_v42  ;;  %v2292_v24 = vld [vmem:[%s2874_s0 + $0x14] ss:$36 sps:$4 sm:$0xff]   ;;  %v2297_v28 = vld [vmem:[%s2874_s0 + $0x1c] ss:$36 sps:$4 sm:$0xff]   ;;  %v2308_v38 = vld [vmem:[%s2724_s9 + $0x228] sm:$0xff]  }
  0x96   : > { %2070 = vmatpush3.bf16.msra.mxu1 %v2238_v41  ;;  %v2293_v25 = vld [vmem:[%s2724_s9 + $0x1b8] sm:$0xff]   ;;  %v2305_v34 = vld [vmem:[%s2874_s0 + $0x60] ss:$36 sps:$4 sm:$0xff]   ;;  %v2312_v41 = vld [vmem:[%s2874_s0 + $0x68] ss:$36 sps:$4 sm:$0xff]  }
  0x97   : > { %2071 = vmatprep.subr.bf16.mxu1 %v2241_v44  ;;  %v2295_v27 = vld [vmem:[%s2874_s0 + $0x18] ss:$36 sps:$4 sm:$0xff]   ;;  %v2307_v36 = vld [vmem:[%s2724_s9 + $0x220] sm:$0xff]  }
  0x98   : > { %2044 = vmatpush3.bf16.msra.mxu0 %v2240_v43  ;;  %v2299_v30 = vld [vmem:[%s2874_s0 + $0x5c] ss:$36 sps:$4 sm:$0xff]  }
  0x99   : > { %2045 = vmatprep.subr.bf16.mxu0 %v2243_v46  ;;  %v2301_v31 = vld [vmem:[%s2874_s0 + $0x58] ss:$36 sps:$4 sm:$0xff]   ;;  %v2311_v37 = vld [vmem:[%s2874_s0 + $0x20] ss:$36 sps:$4 sm:$0xff]  }
  0x9a   : > { %2072 = vmatpush3.bf16.msra.mxu1 %v2242_v45  ;;  %v2306_v35 = vld [vmem:[%s2724_s9 + $0x218] sm:$0xff]   ;;  %v1936_v43 = vld [vmem:[%s830_s11] ss:$0 sm:$0xff] }
  0x9b   : > { %2073 = vmatprep.subr.bf16.mxu1 %v2245_v50  ;;  %v2310_v40 = vld [vmem:[%s2724_s9 + $0x238] sm:$0xff]   ;;  %s1935_s9 = sshll.u32 %s790_s30, 5 }
  0x9c   : > { %2046 = vmatpush3.bf16.msra.mxu0 %v2244_v48  ;;  %s820_s18 = scalar_lea.vmem [#allocation3], %s1935_s9 }
  0x9d   : > { %2087 = vmatprep.subr.bf16.mxu0 %v2250_v53 }
  0x9e   : > { %2074 = vmatpush3.bf16.msra.mxu1 %v2249_v52 }
  0x9f   : > { %1561 = vmatmul.mubr.bf16.vlgmr.msra.gmra.mrb[0].mxu0 %v2246_v47  ;;  %2115 = vmatprep.subr.bf16.mxu1 %v2255_v55 }
  0xa0   : > { %2088 = vmatpush3.bf16.msra.mxu0 %v2254_v54  ;;  %1568 = vmatprep.mubr.bf16.mxu0 %v2274_v49 }
  0xa1   : > { %1610 = vmatmul.mubr.bf16.vlgmr.msra.gmra.mrb[0].mxu1 %v2251_v51  ;;  %2089 = vmatprep.subr.bf16.mxu0 %v2257_v57 }
  0xa2   : > { %2116 = vmatpush3.bf16.msra.mxu1 %v2256_v56  ;;  %1617 = vmatprep.mubr.bf16.mxu1 %v2279_v13 }
  0xa3   : > { %2117 = vmatprep.subr.bf16.mxu1 %v2259_v60 }
  0xa4   : > { %2090 = vmatpush3.bf16.msra.mxu0 %v2258_v59 }
  0xa5   : > { %2091 = vmatprep.subr.bf16.mxu0 %v2261_v62 }
  0xa6   : > { %2118 = vmatpush3.bf16.msra.mxu1 %v2260_v61 }
  0xa7   : > { %1569 = vmatmul.mubr.bf16.gmra.mrb[4].mxu0 %v2277_v58  ;;  %2119 = vmatprep.subr.bf16.mxu1 %v2263_v0 }
  0xa8   : > { %2092 = vmatpush3.bf16.msra.mxu0 %v2262_v63  ;;  %1658 = vmatprep.mubr.bf16.mxu0 %v2292_v24 }
  0xa9   : > { %2093 = vmatprep.subr.bf16.mxu0 %v2265_v2  ;;  %1618 = vmatmul.mubr.bf16.gmra.mrb[4].mxu1 %v2282_v15 }
  0xaa   : > { %2120 = vmatpush3.bf16.msra.mxu1 %v2264_v1  ;;  %1707 = vmatprep.mubr.bf16.mxu1 %v2297_v28 }
  0xab   : > { %2121 = vmatprep.subr.bf16.mxu1 %v2267_v4 }
  0xac   : > { %2094 = vmatpush3.bf16.msra.mxu0 %v2266_v3 }
  0xad   : > { %2095 = vmatprep.subr.bf16.mxu0 %v2269_v6 }
  0xae   : > { %2122 = vmatpush3.bf16.msra.mxu1 %v2268_v5 }
  0xaf   : > { %2123 = vmatprep.subr.bf16.mxu1 %v2271_v8 }
  0xb0   : > { %2096 = vmatpush3.bf16.msra.mxu0 %v2270_v7 }
  0xb1   : > { %2097 = vmatprep.subr.bf16.mxu0 %v2273_v10 }
  0xb2   : > { %2124 = vmatpush3.bf16.msra.mxu1 %v2272_v9 }
  0xb3   : > { %2125 = vmatprep.subr.bf16.mxu1 %v2278_v12 }
  0xb4   : > { %2098 = vmatpush3.bf16.msra.mxu0 %v2276_v11 }
  0xb5   : > { %2099 = vmatprep.subr.bf16.mxu0 %v2283_v16 }
  0xb6   : > { %2126 = vmatpush3.bf16.msra.mxu1 %v2281_v14 }
  0xb7   : > { %2127 = vmatprep.subr.bf16.mxu1 %v2285_v18 }
  0xb8   : > { %2100 = vmatpush3.bf16.msra.mxu0 %v2284_v17 }
  0xb9   : > { %2101 = vmatprep.subr.bf16.mxu0 %v2287_v20 }
  0xba   : > { %2128 = vmatpush3.bf16.msra.mxu1 %v2286_v19 }
  0xbb   : > { %2129 = vmatprep.subr.bf16.mxu1 %v2289_v22 }
  0xbc   : > { %2102 = vmatpush3.bf16.msra.mxu0 %v2288_v21 }
  0xbd   : > { %2153 = vmatprep.subr.bf16.mxu0 %v2294_v26 }
  0xbe   : > { %2130 = vmatpush3.bf16.msra.mxu1 %v2293_v25 }
  0xbf   : > { %1659 = vmatmul.mubr.bf16.vlgmr.msra.gmra.mrb[8].mxu0 %v2290_v23 }
  0xc0   : > { %2154 = vmatpush3.bf16.msra.mxu0 %v2294_v26  ;;  %1666 = vmatprep.mubr.bf16.mxu0 %v2299_v30 }
  0xc1   : > { %1708 = vmatmul.mubr.bf16.vlgmr.msra.gmra.mrb[8].mxu1 %v2295_v27  ;;  %2155 = vmatprep.subr.bf16.mxu0 %v2298_v29 }
  0xc2   : > { %1715 = vmatprep.mubr.bf16.mxu1 %v2303_v33 }
  0xc4   : > { %2156 = vmatpush3.bf16.msra.mxu0 %v2298_v29 }
  0xc5   : > { %2157 = vmatprep.subr.bf16.mxu0 %v2302_v32 }
  0xc7   : > { %1667 = vmatmul.mubr.bf16.gmra.mrb[12].mxu0 %v2301_v31 }
  0xc8   : > { %2158 = vmatpush3.bf16.msra.mxu0 %v2302_v32  ;;  %2169 = vmatprep.mubr.bf16.mxu0 %v2311_v37 }
  0xc9   : > { %1716 = vmatmul.mubr.bf16.gmra.mrb[12].mxu1 %v2305_v34  ;;  %2159 = vmatprep.subr.bf16.mxu0 %v2306_v35 }
  0xcc   : > { %2160 = vmatpush3.bf16.msra.mxu0 %v2306_v35 }
  0xcd   : > { %2161 = vmatprep.subr.bf16.mxu0 %v2307_v36 }
  0xd0   : > { %2162 = vmatpush3.bf16.msra.mxu0 %v2307_v36 }
  0xd1   : > { %2163 = vmatprep.subr.bf16.mxu0 %v2308_v38 }
  0xd4   : > { %2164 = vmatpush3.bf16.msra.mxu0 %v2308_v38 }
  0xd5   : > { %2165 = vmatprep.subr.bf16.mxu0 %v2309_v39 }
  0xd8   : > { %2166 = vmatpush3.bf16.msra.mxu0 %v2309_v39 }
  0xd9   : > { %2167 = vmatprep.subr.bf16.mxu0 %v2310_v40 }
  0xdc   : > { %2168 = vmatpush3.bf16.msra.mxu0 %v2310_v40 }
  0xdf   : > { %2170 = vmatmul.mubr.bf16.vlgmr.msra.gmra.mrb[16].mxu0 %v2312_v41 }
 0x172   : > { %v2047_v42 = vpop.f32.mrb[0].mxu0 }
 0x173   : > { %v2048_v44 = vpop.f32.mrb[1].mxu0 }
 0x174   : > { %v2049_v45 = vadd.f32 %v2048_v44, %v2047_v42  ;;  %v2050_v46 = vpop.f32.mrb[2].mxu0  ;;  %v2075_v47 = vpop.f32.mrb[0].mxu1 }
 0x175   : > { %v2051_v48 = vpop.f32.mrb[3].mxu0  ;;  %v2076_v49 = vpop.f32.mrb[1].mxu1 }
 0x176   : > { %v1563_v50 = vadd.f32 %v2049_v45, %v1936_v43  ;;  %v2052_v51 = vadd.f32 %v2051_v48, %v2050_v46  ;;  %v2077_v52 = vadd.f32 %v2076_v49, %v2075_v47  ;;  %v2078_v53 = vpop.f32.mrb[2].mxu1 }
 0x177   : > { %v2079_v54 = vpop.f32.mrb[3].mxu1 }
 0x178   : > { %v1566_v55 = vadd.f32 %v2052_v51, %v1936_v43  ;;  %v1612_v56 = vadd.f32 %v2077_v52, %v1563_v50  ;;  %v2080_v57 = vadd.f32 %v2079_v54, %v2078_v53 }
 0x17a   : > { %v1615_v58 = vadd.f32 %v2080_v57, %v1566_v55  ;;  %v2053_v59 = vpop.f32.mrb[4].mxu0 }
 0x17b   : > { %v2054_v60 = vpop.f32.mrb[5].mxu0 }
 0x17c   : > { %v2055_v61 = vadd.f32 %v2054_v60, %v2053_v59  ;;  %v2056_v62 = vpop.f32.mrb[6].mxu0  ;;  %v2081_v2 = vpop.f32.mrb[4].mxu1 }
 0x17d   : > { %v2057_v63 = vpop.f32.mrb[7].mxu0  ;;  %v2082_v3 = vpop.f32.mrb[5].mxu1 }
 0x17e   : > { %v2058_v0 = vadd.f32 %v2057_v63, %v2056_v62  ;;  %v1571_v1 = vadd.f32 %v2055_v61, %v1936_v43  ;;  %v2083_v5 = vadd.f32 %v2082_v3, %v2081_v2  ;;  %v2084_v6 = vpop.f32.mrb[6].mxu1 }
 0x17f   : > { %v2085_v7 = vpop.f32.mrb[7].mxu1 }
 0x180   : > { %v1574_v4 = vadd.f32 %v2058_v0, %v1936_v43  ;;  %v1620_v8 = vadd.f32 %v2083_v5, %v1571_v1  ;;  %v2086_v9 = vadd.f32 %v2085_v7, %v2084_v6 }
 0x182   : > { %v1623_v10 = vadd.f32 %v2086_v9, %v1574_v4 }
 0x192   : > { %v2103_v11 = vpop.f32.mrb[8].mxu0 }
 0x193   : > { %v2104_v12 = vpop.f32.mrb[9].mxu0 }
 0x194   : > { %v2105_v13 = vadd.f32 %v2104_v12, %v2103_v11  ;;  %v2106_v14 = vpop.f32.mrb[10].mxu0  ;;  %v2131_v15 = vpop.f32.mrb[8].mxu1 }
 0x195   : > { %v2107_v16 = vpop.f32.mrb[11].mxu0  ;;  %v2132_v19 = vpop.f32.mrb[9].mxu1 }
 0x196   : > { %v1661_v17 = vadd.f32 %v2105_v13, %v1612_v56  ;;  %v2108_v18 = vadd.f32 %v2107_v16, %v2106_v14  ;;  %v2133_v20 = vadd.f32 %v2132_v19, %v2131_v15  ;;  %v2134_v21 = vpop.f32.mrb[10].mxu1 }
 0x197   : > { %v2135_v23 = vpop.f32.mrb[11].mxu1 }
 0x198   : > { %v1664_v22 = vadd.f32 %v2108_v18, %v1615_v58  ;;  %v2136_v24 = vadd.f32 %v2135_v23, %v2134_v21  ;;  %v1710_v25 = vadd.f32 %v2133_v20, %v1661_v17 }
 0x19a   : > { %v2109_v26 = vpop.f32.mrb[12].mxu0  ;;  %v1713_v28 = vadd.f32 %v2136_v24, %v1664_v22 }
 0x19b   : > { %v2110_v27 = vpop.f32.mrb[13].mxu0 }
 0x19c   : > { %v2111_v29 = vadd.f32 %v2110_v27, %v2109_v26  ;;  %v2112_v30 = vpop.f32.mrb[14].mxu0  ;;  %v2137_v31 = vpop.f32.mrb[12].mxu1 }
 0x19d   : > { %v2113_v32 = vpop.f32.mrb[15].mxu0  ;;  %v2138_v35 = vpop.f32.mrb[13].mxu1 }
 0x19e   : > { %v1669_v33 = vadd.f32 %v2111_v29, %v1620_v8  ;;  %v2114_v34 = vadd.f32 %v2113_v32, %v2112_v30  ;;  %v2139_v36 = vadd.f32 %v2138_v35, %v2137_v31  ;;  %v2140_v37 = vpop.f32.mrb[14].mxu1 }
 0x19f   : > { %v2141_v39 = vpop.f32.mrb[15].mxu1 }
 0x1a0   : > { %v1672_v38 = vadd.f32 %v2114_v34, %v1623_v10  ;;  %v2142_v40 = vadd.f32 %v2141_v39, %v2140_v37  ;;  %v1718_v41 = vadd.f32 %v2139_v36, %v1669_v33 }
 0x1a2   : > { %v1721_v42 = vadd.f32 %v2142_v40, %v1672_v38 }
 0x1b2   : > { %v2171_v43 = vpop.f32.mrb[16].mxu0 }
 0x1b3   : > { %v1767_v44 = vadd.f32 %v2171_v43, %v1718_v41  ;;  %v1758_v45 = vpop.f32.mrb[17].mxu0 }
 0x1b4   : > { %v1759_v46 = vadd.f32 %v1758_v45, %v1710_v25  ;;  %v2172_v47 = vpop.f32.mrb[18].mxu0  ;;  %1787 = sbr.rel (!%p2408_p6) target bundleno = 451 (0x1c3), region = 77 }
 0x1b5   : > { %v1775_v48 = vmax.f32 %v1767_v44, 0.0  ;;  %v1770_v49 = vadd.f32 %v2172_v47, %v1721_v42  ;;  %v1761_v50 = vpop.f32.mrb[19].mxu0 }
 0x1b6   : > { %v1773_v51 = vmax.f32 %v1759_v46, 0.0  ;;  %v1762_v52 = vadd.f32 %v1761_v50, %v1713_v28 }
 0x1b7   : > { %1779 = vst [vmem:[%s820_s18 + $0x10] sm:$0xff] %v1775_v48  ;;  %v1776_v53 = vmax.f32 %v1770_v49, 0.0 }
 0x1b8   : > { %1777 = vst [vmem:[%s820_s18] sm:$0xff] %v1773_v51  ;;  %v1774_v54 = vmax.f32 %v1762_v52, 0.0 }
 0x1b9   : > { %1780 = vst [vmem:[%s820_s18 + $0x18] sm:$0xff] %v1776_v53 }
 0x1ba   : > { %1778 = vst [vmem:[%s820_s18 + $0x8] sm:$0xff] %v1774_v54 }
 0x1be   : > { %v1830_v57 = vld [vmem:[%s820_s18 + $0x10] sm:$0xff] }
 0x1bf   : > { %v1826_v55 = vld [vmem:[%s820_s18] sm:$0xff]  ;;  %1831 = vst [vmem:[%s1792_s20 + $0x20] sm:$0xff] %v1830_v57 }
 0x1c0   : > { %v1832_v58 = vld [vmem:[%s820_s18 + $0x18] sm:$0xff]  ;;  %1827 = vst [vmem:[%s1792_s20] sm:$0xff] %v1826_v55 }
 0x1c1   : > { %v1828_v56 = vld [vmem:[%s820_s18 + $0x8] sm:$0xff]  ;;  %1833 = vst [vmem:[%s1792_s20 + $0x30] sm:$0xff] %v1832_v58 }
 0x1c2   : > { %1829 = vst [vmem:[%s1792_s20 + $0x10] sm:$0xff] %v1828_v56 }
 0x1c3 PF: > { %s13_s16 = sadd.s32 1, %s2351_s16   ;;  %s2879_s12 = smov %s2339_s13 }
 0x1c4   : > { %p10_p12 = scmp.ge.s32.totalorder %s13_s16, 4   ;;  %s2880_s13 = smov %s2413_s22 }
 0x1c5   : > { %s2881_s14 = smov %s2347_s15  ;;  %s2882_s15 = smov %s2884_s17 }
 0x1c6   :  { %12 = sbr.rel (!%p10_p12) target bundleno = 3 (0x3), region = 152 }

// kernel: _lambda_.16
= control target key start
LH: loop header
LB: loop body
LE: loop exit
PB: predicated region body
PF: predicated region fallthrough
CT: control target
= control target key end

     0   :  { %s92_s0 = inlined_call_operand.vmem [shape: f32[16,128], index: 0, kind: input, shape index: {}]   ;;  %s93_s1 = inlined_call_operand.vmem [shape: f32[16,128], index: 1, kind: input, shape index: {}]   ;;  %s94_s2 = inlined_call_operand.vmem [shape: f32[16,128], index: 2, kind: input, shape index: {}]   ;;  %s95_s3 = inlined_call_operand.vmem [shape: f32[16,128], index: 3, kind: input, shape index: {}]   ;;  %s96_s4 = inlined_call_operand.vmem [shape: f32[16,128], index: 4, kind: output, shape index: {}]  }
   0x1   :  { %v17_v0 = vld [vmem:[%s92_s0] sm:$0xff]  ;;  %v18_v5 = vld [vmem:[%s92_s0 + $0x8] sm:$0xff] }
   0x2   :  { %v19_v1 = vld [vmem:[%s93_s1] sm:$0xff]  ;;  %v20_v6 = vld [vmem:[%s93_s1 + $0x8] sm:$0xff] }
   0x3   :  { %v23_v2 = vld [vmem:[%s94_s2] sm:$0xff]  ;;  %v21_v3 = vmax.f32 %v17_v0, %v19_v1  ;;  %v22_v8 = vmax.f32 %v18_v5, %v20_v6  ;;  %v24_v9 = vld [vmem:[%s94_s2 + $0x8] sm:$0xff] }
   0x4   :  { %v25_v4 = vld [vmem:[%s95_s3] sm:$0xff]  ;;  %v26_v10 = vld [vmem:[%s95_s3 + $0x8] sm:$0xff] }
   0x5   :  { %v27_v7 = vmax.f32 %v23_v2, %v25_v4  ;;  %v28_v11 = vmax.f32 %v24_v9, %v26_v10 }
   0x7   :  { %v29_v12 = vmax.f32 %v21_v3, %v27_v7  ;;  %v30_v13 = vmax.f32 %v22_v8, %v28_v11 }
   0x9   :  { %31 = vst [vmem:[%s96_s4] sm:$0xff] %v29_v12  ;;  %32 = vst [vmem:[%s96_s4 + $0x8] sm:$0xff] %v30_v13 }

// kernel: _lambda_.17
= control target key start
LH: loop header
LB: loop body
LE: loop exit
PB: predicated region body
PF: predicated region fallthrough
CT: control target
= control target key end

     0   :  { %s3751_s12 = smov 0   ;;  %s3753_s13 = smov 0   ;;  %s4619_s0 = inlined_call_operand.vmem [shape: bf16[8,2304], index: 0, kind: input, shape index: {}]   ;;  %s4620_s1 = inlined_call_operand.vmem [shape: bf16[2304,512], index: 1, kind: input, shape index: {}]   ;;  %s4621_s2 = inlined_call_operand.vmem [shape: f32[1,512], index: 2, kind: input, shape index: {}]   ;;  %s4622_s3 = inlined_call_operand.vmem [shape: f32[8,512], index: 3, kind: output, shape index: {}]  }
   0x1   :  { %s3755_s14 = smov 0   ;;  %s3757_s15 = smov 0  }
   0x2   :  { %s3759_s16 = smov 0  }
   0x3 LB: > { %s22_s17 = sadd.s32 1, %s3725_s15  ;;  %p65_p1 = scmp.ne.s32.totalorder %s3717_s13, %s3713_s12  ;;  %s3729_s16 = sphi %s3759_s16, %s13_s16   ;;  %s3725_s15 = sphi %s3757_s15, %s4626_s15   ;;  %s3721_s14 = sphi %s3755_s14, %s4625_s14   ;;  %s3717_s13 = sphi %s3753_s13, %s4624_s13   ;;  %s3713_s12 = sphi %s3751_s12, %s4623_s12  }
   0x4   : > { %p23_p0 = scmp.ge.s32.totalorder %s22_s17, 4  ;;  %p66_p2 = scmp.eq.s32.totalorder %s3729_s16, 0 }
   0x5   : > { %s58_s19 = sadd.s32 1, %s3717_s13  ;;  %p3120_p5 = scmp.ge.s32.totalorder %s3729_s16, 4 }
   0x6   : > { %s4628_s17 = smov (%p23_p0, %s22_s17), 0  ;;  %p67_p3 = por %p66_p2, %p65_p1 }
   0x7   : > { %s55_s18 = ssub.s32 %s3725_s15, %s4628_s17  ;;  %153 = sbr.rel (%p3120_p5) target bundleno = 210 (0xd2), region = 20 }
   0x8   : > { %p56_p4 = scmp.eq.s32.totalorder %s55_s18, 0 }
   0xa   : > { %s3786_s20 = scalar_select %p56_p4, %s3717_s13, %s58_s19  }
   0xe   : > { %156 = sbr.rel (!%p67_p3) target bundleno = 210 (0xd2), region = 24  ;;  %s158_s21 = sand.u32 (%p67_p3), 1, %s3717_s13  }
   0xf   : > { %s3121_s22 = sshll.u32 (%p67_p3), %s3725_s15, 2  ;;  %s3487_s23 = smul.u32 (%p67_p3), 1152, %s158_s21 }
  0x10   : > { %s3794_s26 = scalar_lea.vmem (%p67_p3), %s4620_s1, %s3121_s22 }
  0x11   : > { %v178_v0 = vld [vmem:[%s3794_s26] sm:$0xf] (%p67_p3)  ;;  %v180_v1 = vld [vmem:[%s3794_s26 + $0x10] sm:$0xf] (%p67_p3)  ;;  %s3801_s27 = scalar_lea.vmem (%p67_p3), [#allocation2], %s3487_s23 }
  0x12   : > { %v182_v2 = vld [vmem:[%s3794_s26 + $0x20] sm:$0xf] (%p67_p3)  ;;  %v184_v3 = vld [vmem:[%s3794_s26 + $0x30] sm:$0xf] (%p67_p3)  ;;  %179 = vst [vmem:[%s3801_s27] sm:$0xf] (%p67_p3), %v178_v0 }
  0x13   : > { %v186_v4 = vld [vmem:[%s3794_s26 + $0x40] sm:$0xf] (%p67_p3)  ;;  %181 = vst [vmem:[%s3801_s27 + $0x4] sm:$0xf] (%p67_p3), %v180_v1  ;;  %183 = vst [vmem:[%s3801_s27 + $0x8] sm:$0xf] (%p67_p3), %v182_v2 }
  0x14   : > { %185 = vst [vmem:[%s3801_s27 + $0xc] sm:$0xf] (%p67_p3), %v184_v3  ;;  %187 = vst [vmem:[%s3801_s27 + $0x10] sm:$0xf] (%p67_p3), %v186_v4  ;;  %v188_v5 = vld [vmem:[%s3794_s26 + $0x50] sm:$0xf] (%p67_p3) }
  0x15   : > { %v190_v6 = vld [vmem:[%s3794_s26 + $0x60] sm:$0xf]  ;;  %v192_v7 = vld [vmem:[%s3794_s26 + $0x70] sm:$0xf]  ;;  %189 = vst [vmem:[%s3801_s27 + $0x14] sm:$0xf] %v188_v5 }
  0x16   : > { %191 = vst [vmem:[%s3801_s27 + $0x18] sm:$0xf] %v190_v6  ;;  %193 = vst [vmem:[%s3801_s27 + $0x1c] sm:$0xf] %v192_v7  ;;  %v194_v8 = vld [vmem:[%s3794_s26 + $0x80] sm:$0xf] }
  0x17   : > { %v196_v9 = vld [vmem:[%s3794_s26 + $0x90] sm:$0xf]  ;;  %v198_v10 = vld [vmem:[%s3794_s26 + $0xa0] sm:$0xf]  ;;  %195 = vst [vmem:[%s3801_s27 + $0x20] sm:$0xf] %v194_v8 }
  0x18   : > { %197 = vst [vmem:[%s3801_s27 + $0x24] sm:$0xf] %v196_v9  ;;  %199 = vst [vmem:[%s3801_s27 + $0x28] sm:$0xf] %v198_v10  ;;  %v200_v11 = vld [vmem:[%s3794_s26 + $0xb0] sm:$0xf] }
  0x19   : > { %v202_v12 = vld [vmem:[%s3794_s26 + $0xc0] sm:$0xf]  ;;  %v204_v13 = vld [vmem:[%s3794_s26 + $0xd0] sm:$0xf]  ;;  %201 = vst [vmem:[%s3801_s27 + $0x2c] sm:$0xf] %v200_v11 }
  0x1a   : > { %203 = vst [vmem:[%s3801_s27 + $0x30] sm:$0xf] %v202_v12  ;;  %205 = vst [vmem:[%s3801_s27 + $0x34] sm:$0xf] %v204_v13  ;;  %v206_v14 = vld [vmem:[%s3794_s26 + $0xe0] sm:$0xf] }
  0x1b   : > { %v208_v15 = vld [vmem:[%s3794_s26 + $0xf0] sm:$0xf]  ;;  %v210_v16 = vld [vmem:[%s3794_s26 + $0x100] sm:$0xf]  ;;  %207 = vst [vmem:[%s3801_s27 + $0x38] sm:$0xf] %v206_v14 }
  0x1c   : > { %209 = vst [vmem:[%s3801_s27 + $0x3c] sm:$0xf] %v208_v15  ;;  %211 = vst [vmem:[%s3801_s27 + $0x40] sm:$0xf] %v210_v16  ;;  %v212_v17 = vld [vmem:[%s3794_s26 + $0x110] sm:$0xf] }
  0x1d   : > { %v214_v18 = vld [vmem:[%s3794_s26 + $0x120] sm:$0xf]  ;;  %v216_v19 = vld [vmem:[%s3794_s26 + $0x130] sm:$0xf]  ;;  %213 = vst [vmem:[%s3801_s27 + $0x44] sm:$0xf] %v212_v17 }
  0x1e   : > { %215 = vst [vmem:[%s3801_s27 + $0x48] sm:$0xf] %v214_v18  ;;  %217 = vst [vmem:[%s3801_s27 + $0x4c] sm:$0xf] %v216_v19  ;;  %v218_v20 = vld [vmem:[%s3794_s26 + $0x140] sm:$0xf] }
  0x1f   : > { %v220_v21 = vld [vmem:[%s3794_s26 + $0x150] sm:$0xf]  ;;  %v222_v22 = vld [vmem:[%s3794_s26 + $0x160] sm:$0xf]  ;;  %219 = vst [vmem:[%s3801_s27 + $0x50] sm:$0xf] %v218_v20 }
  0x20   : > { %221 = vst [vmem:[%s3801_s27 + $0x54] sm:$0xf] %v220_v21  ;;  %223 = vst [vmem:[%s3801_s27 + $0x58] sm:$0xf] %v222_v22  ;;  %v224_v23 = vld [vmem:[%s3794_s26 + $0x170] sm:$0xf] }
  0x21   : > { %v226_v24 = vld [vmem:[%s3794_s26 + $0x180] sm:$0xf]  ;;  %v228_v25 = vld [vmem:[%s3794_s26 + $0x190] sm:$0xf]  ;;  %225 = vst [vmem:[%s3801_s27 + $0x5c] sm:$0xf] %v224_v23 }
  0x22   : > { %227 = vst [vmem:[%s3801_s27 + $0x60] sm:$0xf] %v226_v24  ;;  %229 = vst [vmem:[%s3801_s27 + $0x64] sm:$0xf] %v228_v25  ;;  %v230_v26 = vld [vmem:[%s3794_s26 + $0x1a0] sm:$0xf] }
  0x23   : > { %v232_v27 = vld [vmem:[%s3794_s26 + $0x1b0] sm:$0xf]  ;;  %v234_v28 = vld [vmem:[%s3794_s26 + $0x1c0] sm:$0xf]  ;;  %231 = vst [vmem:[%s3801_s27 + $0x68] sm:$0xf] %v230_v26 }
  0x24   : > { %233 = vst [vmem:[%s3801_s27 + $0x6c] sm:$0xf] %v232_v27  ;;  %235 = vst [vmem:[%s3801_s27 + $0x70] sm:$0xf] %v234_v28  ;;  %v236_v29 = vld [vmem:[%s3794_s26 + $0x1d0] sm:$0xf] }
  0x25   : > { %v238_v30 = vld [vmem:[%s3794_s26 + $0x1e0] sm:$0xf]  ;;  %v240_v31 = vld [vmem:[%s3794_s26 + $0x1f0] sm:$0xf]  ;;  %237 = vst [vmem:[%s3801_s27 + $0x74] sm:$0xf] %v236_v29 }
  0x26   : > { %239 = vst [vmem:[%s3801_s27 + $0x78] sm:$0xf] %v238_v30  ;;  %241 = vst [vmem:[%s3801_s27 + $0x7c] sm:$0xf] %v240_v31  ;;  %v242_v32 = vld [vmem:[%s3794_s26 + $0x200] sm:$0xf] }
  0x27   : > { %v244_v33 = vld [vmem:[%s3794_s26 + $0x210] sm:$0xf]  ;;  %v246_v34 = vld [vmem:[%s3794_s26 + $0x220] sm:$0xf]  ;;  %243 = vst [vmem:[%s3801_s27 + $0x80] sm:$0xf] %v242_v32 }
  0x28   : > { %245 = vst [vmem:[%s3801_s27 + $0x84] sm:$0xf] %v244_v33  ;;  %247 = vst [vmem:[%s3801_s27 + $0x88] sm:$0xf] %v246_v34  ;;  %v248_v35 = vld [vmem:[%s3794_s26 + $0x230] sm:$0xf] }
  0x29   : > { %v250_v36 = vld [vmem:[%s3794_s26 + $0x240] sm:$0xf]  ;;  %v252_v37 = vld [vmem:[%s3794_s26 + $0x250] sm:$0xf]  ;;  %249 = vst [vmem:[%s3801_s27 + $0x8c] sm:$0xf] %v248_v35 }
  0x2a   : > { %251 = vst [vmem:[%s3801_s27 + $0x90] sm:$0xf] %v250_v36  ;;  %253 = vst [vmem:[%s3801_s27 + $0x94] sm:$0xf] %v252_v37  ;;  %v254_v38 = vld [vmem:[%s3794_s26 + $0x260] sm:$0xf] }
  0x2b   : > { %v256_v39 = vld [vmem:[%s3794_s26 + $0x270] sm:$0xf]  ;;  %v258_v40 = vld [vmem:[%s3794_s26 + $0x280] sm:$0xf]  ;;  %255 = vst [vmem:[%s3801_s27 + $0x98] sm:$0xf] %v254_v38 }
  0x2c   : > { %257 = vst [vmem:[%s3801_s27 + $0x9c] sm:$0xf] %v256_v39  ;;  %259 = vst [vmem:[%s3801_s27 + $0xa0] sm:$0xf] %v258_v40  ;;  %v260_v41 = vld [vmem:[%s3794_s26 + $0x290] sm:$0xf] }
  0x2d   : > { %v262_v42 = vld [vmem:[%s3794_s26 + $0x2a0] sm:$0xf]  ;;  %v264_v43 = vld [vmem:[%s3794_s26 + $0x2b0] sm:$0xf]  ;;  %261 = vst [vmem:[%s3801_s27 + $0xa4] sm:$0xf] %v260_v41 }
  0x2e   : > { %263 = vst [vmem:[%s3801_s27 + $0xa8] sm:$0xf] %v262_v42  ;;  %265 = vst [vmem:[%s3801_s27 + $0xac] sm:$0xf] %v264_v43  ;;  %v266_v44 = vld [vmem:[%s3794_s26 + $0x2c0] sm:$0xf] }
  0x2f   : > { %v268_v45 = vld [vmem:[%s3794_s26 + $0x2d0] sm:$0xf]  ;;  %v270_v46 = vld [vmem:[%s3794_s26 + $0x2e0] sm:$0xf]  ;;  %267 = vst [vmem:[%s3801_s27 + $0xb0] sm:$0xf] %v266_v44 }
  0x30   : > { %269 = vst [vmem:[%s3801_s27 + $0xb4] sm:$0xf] %v268_v45  ;;  %271 = vst [vmem:[%s3801_s27 + $0xb8] sm:$0xf] %v270_v46  ;;  %v272_v47 = vld [vmem:[%s3794_s26 + $0x2f0] sm:$0xf] }
  0x31   : > { %v274_v48 = vld [vmem:[%s3794_s26 + $0x300] sm:$0xf]  ;;  %v276_v49 = vld [vmem:[%s3794_s26 + $0x310] sm:$0xf]  ;;  %273 = vst [vmem:[%s3801_s27 + $0xbc] sm:$0xf] %v272_v47 }
  0x32   : > { %275 = vst [vmem:[%s3801_s27 + $0xc0] sm:$0xf] %v274_v48  ;;  %277 = vst [vmem:[%s3801_s27 + $0xc4] sm:$0xf] %v276_v49  ;;  %v278_v50 = vld [vmem:[%s3794_s26 + $0x320] sm:$0xf] }
  0x33   : > { %v280_v51 = vld [vmem:[%s3794_s26 + $0x330] sm:$0xf]  ;;  %v282_v52 = vld [vmem:[%s3794_s26 + $0x340] sm:$0xf]  ;;  %279 = vst [vmem:[%s3801_s27 + $0xc8] sm:$0xf] %v278_v50 }
  0x34   : > { %281 = vst [vmem:[%s3801_s27 + $0xcc] sm:$0xf] %v280_v51  ;;  %283 = vst [vmem:[%s3801_s27 + $0xd0] sm:$0xf] %v282_v52  ;;  %v284_v53 = vld [vmem:[%s3794_s26 + $0x350] sm:$0xf] }
  0x35   : > { %v286_v54 = vld [vmem:[%s3794_s26 + $0x360] sm:$0xf]  ;;  %v288_v55 = vld [vmem:[%s3794_s26 + $0x370] sm:$0xf]  ;;  %285 = vst [vmem:[%s3801_s27 + $0xd4] sm:$0xf] %v284_v53 }
  0x36   : > { %287 = vst [vmem:[%s3801_s27 + $0xd8] sm:$0xf] %v286_v54  ;;  %289 = vst [vmem:[%s3801_s27 + $0xdc] sm:$0xf] %v288_v55  ;;  %v290_v56 = vld [vmem:[%s3794_s26 + $0x380] sm:$0xf] }
  0x37   : > { %v292_v57 = vld [vmem:[%s3794_s26 + $0x390] sm:$0xf]  ;;  %v294_v58 = vld [vmem:[%s3794_s26 + $0x3a0] sm:$0xf]  ;;  %291 = vst [vmem:[%s3801_s27 + $0xe0] sm:$0xf] %v290_v56 }
  0x38   : > { %293 = vst [vmem:[%s3801_s27 + $0xe4] sm:$0xf] %v292_v57  ;;  %295 = vst [vmem:[%s3801_s27 + $0xe8] sm:$0xf] %v294_v58  ;;  %v296_v59 = vld [vmem:[%s3794_s26 + $0x3b0] sm:$0xf] }
  0x39   : > { %v298_v60 = vld [vmem:[%s3794_s26 + $0x3c0] sm:$0xf]  ;;  %v300_v61 = vld [vmem:[%s3794_s26 + $0x3d0] sm:$0xf]  ;;  %297 = vst [vmem:[%s3801_s27 + $0xec] sm:$0xf] %v296_v59 }
  0x3a   : > { %299 = vst [vmem:[%s3801_s27 + $0xf0] sm:$0xf] %v298_v60  ;;  %301 = vst [vmem:[%s3801_s27 + $0xf4] sm:$0xf] %v300_v61  ;;  %v302_v62 = vld [vmem:[%s3794_s26 + $0x3e0] sm:$0xf] }
  0x3b   : > { %v304_v63 = vld [vmem:[%s3794_s26 + $0x3f0] sm:$0xf]  ;;  %v306_v0 = vld [vmem:[%s3794_s26 + $0x400] sm:$0xf]  ;;  %303 = vst [vmem:[%s3801_s27 + $0xf8] sm:$0xf] %v302_v62 }
  0x3c   : > { %305 = vst [vmem:[%s3801_s27 + $0xfc] sm:$0xf] %v304_v63  ;;  %307 = vst [vmem:[%s3801_s27 + $0x100] sm:$0xf] %v306_v0  ;;  %v308_v1 = vld [vmem:[%s3794_s26 + $0x410] sm:$0xf] }
  0x3d   : > { %v310_v2 = vld [vmem:[%s3794_s26 + $0x420] sm:$0xf]  ;;  %v312_v3 = vld [vmem:[%s3794_s26 + $0x430] sm:$0xf]  ;;  %309 = vst [vmem:[%s3801_s27 + $0x104] sm:$0xf] %v308_v1 }
  0x3e   : > { %311 = vst [vmem:[%s3801_s27 + $0x108] sm:$0xf] %v310_v2  ;;  %313 = vst [vmem:[%s3801_s27 + $0x10c] sm:$0xf] %v312_v3  ;;  %v314_v4 = vld [vmem:[%s3794_s26 + $0x440] sm:$0xf] }
  0x3f   : > { %v316_v5 = vld [vmem:[%s3794_s26 + $0x450] sm:$0xf]  ;;  %v318_v6 = vld [vmem:[%s3794_s26 + $0x460] sm:$0xf]  ;;  %315 = vst [vmem:[%s3801_s27 + $0x110] sm:$0xf] %v314_v4 }
  0x40   : > { %317 = vst [vmem:[%s3801_s27 + $0x114] sm:$0xf] %v316_v5  ;;  %319 = vst [vmem:[%s3801_s27 + $0x118] sm:$0xf] %v318_v6  ;;  %v320_v7 = vld [vmem:[%s3794_s26 + $0x470] sm:$0xf] }
  0x41   : > { %v322_v8 = vld [vmem:[%s3794_s26 + $0x480] sm:$0xf]  ;;  %v324_v9 = vld [vmem:[%s3794_s26 + $0x490] sm:$0xf]  ;;  %321 = vst [vmem:[%s3801_s27 + $0x11c] sm:$0xf] %v320_v7 }
  0x42   : > { %323 = vst [vmem:[%s3801_s27 + $0x120] sm:$0xf] %v322_v8  ;;  %325 = vst [vmem:[%s3801_s27 + $0x124] sm:$0xf] %v324_v9  ;;  %v326_v10 = vld [vmem:[%s3794_s26 + $0x4a0] sm:$0xf] }
  0x43   : > { %v328_v11 = vld [vmem:[%s3794_s26 + $0x4b0] sm:$0xf]  ;;  %v330_v12 = vld [vmem:[%s3794_s26 + $0x4c0] sm:$0xf]  ;;  %327 = vst [vmem:[%s3801_s27 + $0x128] sm:$0xf] %v326_v10 }
  0x44   : > { %329 = vst [vmem:[%s3801_s27 + $0x12c] sm:$0xf] %v328_v11  ;;  %331 = vst [vmem:[%s3801_s27 + $0x130] sm:$0xf] %v330_v12  ;;  %v332_v13 = vld [vmem:[%s3794_s26 + $0x4d0] sm:$0xf] }
  0x45   : > { %v334_v14 = vld [vmem:[%s3794_s26 + $0x4e0] sm:$0xf]  ;;  %v336_v15 = vld [vmem:[%s3794_s26 + $0x4f0] sm:$0xf]  ;;  %333 = vst [vmem:[%s3801_s27 + $0x134] sm:$0xf] %v332_v13 }
  0x46   : > { %335 = vst [vmem:[%s3801_s27 + $0x138] sm:$0xf] %v334_v14  ;;  %337 = vst [vmem:[%s3801_s27 + $0x13c] sm:$0xf] %v336_v15  ;;  %v338_v16 = vld [vmem:[%s3794_s26 + $0x500] sm:$0xf] }
  0x47   : > { %v340_v17 = vld [vmem:[%s3794_s26 + $0x510] sm:$0xf]  ;;  %v342_v18 = vld [vmem:[%s3794_s26 + $0x520] sm:$0xf]  ;;  %339 = vst [vmem:[%s3801_s27 + $0x140] sm:$0xf] %v338_v16 }
  0x48   : > { %341 = vst [vmem:[%s3801_s27 + $0x144] sm:$0xf] %v340_v17  ;;  %343 = vst [vmem:[%s3801_s27 + $0x148] sm:$0xf] %v342_v18  ;;  %v344_v19 = vld [vmem:[%s3794_s26 + $0x530] sm:$0xf] }
  0x49   : > { %v346_v20 = vld [vmem:[%s3794_s26 + $0x540] sm:$0xf]  ;;  %v348_v21 = vld [vmem:[%s3794_s26 + $0x550] sm:$0xf]  ;;  %345 = vst [vmem:[%s3801_s27 + $0x14c] sm:$0xf] %v344_v19 }
  0x4a   : > { %347 = vst [vmem:[%s3801_s27 + $0x150] sm:$0xf] %v346_v20  ;;  %349 = vst [vmem:[%s3801_s27 + $0x154] sm:$0xf] %v348_v21  ;;  %v350_v22 = vld [vmem:[%s3794_s26 + $0x560] sm:$0xf] }
  0x4b   : > { %v352_v23 = vld [vmem:[%s3794_s26 + $0x570] sm:$0xf]  ;;  %v354_v24 = vld [vmem:[%s3794_s26 + $0x580] sm:$0xf]  ;;  %351 = vst [vmem:[%s3801_s27 + $0x158] sm:$0xf] %v350_v22 }
  0x4c   : > { %353 = vst [vmem:[%s3801_s27 + $0x15c] sm:$0xf] %v352_v23  ;;  %355 = vst [vmem:[%s3801_s27 + $0x160] sm:$0xf] %v354_v24  ;;  %v356_v25 = vld [vmem:[%s3794_s26 + $0x590] sm:$0xf] }
  0x4d   : > { %v358_v26 = vld [vmem:[%s3794_s26 + $0x5a0] sm:$0xf]  ;;  %v360_v27 = vld [vmem:[%s3794_s26 + $0x5b0] sm:$0xf]  ;;  %357 = vst [vmem:[%s3801_s27 + $0x164] sm:$0xf] %v356_v25 }
  0x4e   : > { %359 = vst [vmem:[%s3801_s27 + $0x168] sm:$0xf] %v358_v26  ;;  %361 = vst [vmem:[%s3801_s27 + $0x16c] sm:$0xf] %v360_v27  ;;  %v362_v28 = vld [vmem:[%s3794_s26 + $0x5c0] sm:$0xf] }
  0x4f   : > { %v364_v29 = vld [vmem:[%s3794_s26 + $0x5d0] sm:$0xf]  ;;  %v366_v30 = vld [vmem:[%s3794_s26 + $0x5e0] sm:$0xf]  ;;  %363 = vst [vmem:[%s3801_s27 + $0x170] sm:$0xf] %v362_v28 }
  0x50   : > { %365 = vst [vmem:[%s3801_s27 + $0x174] sm:$0xf] %v364_v29  ;;  %367 = vst [vmem:[%s3801_s27 + $0x178] sm:$0xf] %v366_v30  ;;  %v368_v31 = vld [vmem:[%s3794_s26 + $0x5f0] sm:$0xf] }
  0x51   : > { %v370_v32 = vld [vmem:[%s3794_s26 + $0x600] sm:$0xf]  ;;  %v372_v33 = vld [vmem:[%s3794_s26 + $0x610] sm:$0xf]  ;;  %369 = vst [vmem:[%s3801_s27 + $0x17c] sm:$0xf] %v368_v31 }
  0x52   : > { %371 = vst [vmem:[%s3801_s27 + $0x180] sm:$0xf] %v370_v32  ;;  %373 = vst [vmem:[%s3801_s27 + $0x184] sm:$0xf] %v372_v33  ;;  %v374_v34 = vld [vmem:[%s3794_s26 + $0x620] sm:$0xf] }
  0x53   : > { %v376_v35 = vld [vmem:[%s3794_s26 + $0x630] sm:$0xf]  ;;  %v378_v36 = vld [vmem:[%s3794_s26 + $0x640] sm:$0xf]  ;;  %375 = vst [vmem:[%s3801_s27 + $0x188] sm:$0xf] %v374_v34 }
  0x54   : > { %377 = vst [vmem:[%s3801_s27 + $0x18c] sm:$0xf] %v376_v35  ;;  %379 = vst [vmem:[%s3801_s27 + $0x190] sm:$0xf] %v378_v36  ;;  %v380_v37 = vld [vmem:[%s3794_s26 + $0x650] sm:$0xf] }
  0x55   : > { %v382_v38 = vld [vmem:[%s3794_s26 + $0x660] sm:$0xf]  ;;  %v384_v39 = vld [vmem:[%s3794_s26 + $0x670] sm:$0xf]  ;;  %381 = vst [vmem:[%s3801_s27 + $0x194] sm:$0xf] %v380_v37 }
  0x56   : > { %383 = vst [vmem:[%s3801_s27 + $0x198] sm:$0xf] %v382_v38  ;;  %385 = vst [vmem:[%s3801_s27 + $0x19c] sm:$0xf] %v384_v39  ;;  %v386_v40 = vld [vmem:[%s3794_s26 + $0x680] sm:$0xf] }
  0x57   : > { %v388_v41 = vld [vmem:[%s3794_s26 + $0x690] sm:$0xf]  ;;  %v390_v42 = vld [vmem:[%s3794_s26 + $0x6a0] sm:$0xf]  ;;  %387 = vst [vmem:[%s3801_s27 + $0x1a0] sm:$0xf] %v386_v40 }
  0x58   : > { %389 = vst [vmem:[%s3801_s27 + $0x1a4] sm:$0xf] %v388_v41  ;;  %391 = vst [vmem:[%s3801_s27 + $0x1a8] sm:$0xf] %v390_v42  ;;  %v392_v43 = vld [vmem:[%s3794_s26 + $0x6b0] sm:$0xf] }
  0x59   : > { %v394_v44 = vld [vmem:[%s3794_s26 + $0x6c0] sm:$0xf]  ;;  %v396_v45 = vld [vmem:[%s3794_s26 + $0x6d0] sm:$0xf]  ;;  %393 = vst [vmem:[%s3801_s27 + $0x1ac] sm:$0xf] %v392_v43 }
  0x5a   : > { %395 = vst [vmem:[%s3801_s27 + $0x1b0] sm:$0xf] %v394_v44  ;;  %397 = vst [vmem:[%s3801_s27 + $0x1b4] sm:$0xf] %v396_v45  ;;  %v398_v46 = vld [vmem:[%s3794_s26 + $0x6e0] sm:$0xf] }
  0x5b   : > { %v400_v47 = vld [vmem:[%s3794_s26 + $0x6f0] sm:$0xf]  ;;  %v402_v48 = vld [vmem:[%s3794_s26 + $0x700] sm:$0xf]  ;;  %399 = vst [vmem:[%s3801_s27 + $0x1b8] sm:$0xf] %v398_v46 }
  0x5c   : > { %401 = vst [vmem:[%s3801_s27 + $0x1bc] sm:$0xf] %v400_v47  ;;  %403 = vst [vmem:[%s3801_s27 + $0x1c0] sm:$0xf] %v402_v48  ;;  %v404_v49 = vld [vmem:[%s3794_s26 + $0x710] sm:$0xf] }
  0x5d   : > { %v406_v50 = vld [vmem:[%s3794_s26 + $0x720] sm:$0xf]  ;;  %v408_v51 = vld [vmem:[%s3794_s26 + $0x730] sm:$0xf]  ;;  %405 = vst [vmem:[%s3801_s27 + $0x1c4] sm:$0xf] %v404_v49 }
  0x5e   : > { %407 = vst [vmem:[%s3801_s27 + $0x1c8] sm:$0xf] %v406_v50  ;;  %409 = vst [vmem:[%s3801_s27 + $0x1cc] sm:$0xf] %v408_v51  ;;  %v410_v52 = vld [vmem:[%s3794_s26 + $0x740] sm:$0xf] }
  0x5f   : > { %v412_v53 = vld [vmem:[%s3794_s26 + $0x750] sm:$0xf]  ;;  %v414_v54 = vld [vmem:[%s3794_s26 + $0x760] sm:$0xf]  ;;  %411 = vst [vmem:[%s3801_s27 + $0x1d0] sm:$0xf] %v410_v52 }
  0x60   : > { %413 = vst [vmem:[%s3801_s27 + $0x1d4] sm:$0xf] %v412_v53  ;;  %415 = vst [vmem:[%s3801_s27 + $0x1d8] sm:$0xf] %v414_v54  ;;  %v416_v55 = vld [vmem:[%s3794_s26 + $0x770] sm:$0xf] }
  0x61   : > { %v418_v56 = vld [vmem:[%s3794_s26 + $0x780] sm:$0xf]  ;;  %v420_v57 = vld [vmem:[%s3794_s26 + $0x790] sm:$0xf]  ;;  %417 = vst [vmem:[%s3801_s27 + $0x1dc] sm:$0xf] %v416_v55 }
  0x62   : > { %419 = vst [vmem:[%s3801_s27 + $0x1e0] sm:$0xf] %v418_v56  ;;  %421 = vst [vmem:[%s3801_s27 + $0x1e4] sm:$0xf] %v420_v57  ;;  %v422_v58 = vld [vmem:[%s3794_s26 + $0x7a0] sm:$0xf] }
  0x63   : > { %v424_v59 = vld [vmem:[%s3794_s26 + $0x7b0] sm:$0xf]  ;;  %v426_v60 = vld [vmem:[%s3794_s26 + $0x7c0] sm:$0xf]  ;;  %423 = vst [vmem:[%s3801_s27 + $0x1e8] sm:$0xf] %v422_v58 }
  0x64   : > { %425 = vst [vmem:[%s3801_s27 + $0x1ec] sm:$0xf] %v424_v59  ;;  %427 = vst [vmem:[%s3801_s27 + $0x1f0] sm:$0xf] %v426_v60  ;;  %v428_v61 = vld [vmem:[%s3794_s26 + $0x7d0] sm:$0xf] }
  0x65   : > { %v430_v62 = vld [vmem:[%s3794_s26 + $0x7e0] sm:$0xf]  ;;  %v432_v63 = vld [vmem:[%s3794_s26 + $0x7f0] sm:$0xf]  ;;  %429 = vst [vmem:[%s3801_s27 + $0x1f4] sm:$0xf] %v428_v61 }
  0x66   : > { %431 = vst [vmem:[%s3801_s27 + $0x1f8] sm:$0xf] %v430_v62  ;;  %433 = vst [vmem:[%s3801_s27 + $0x1fc] sm:$0xf] %v432_v63  ;;  %v434_v0 = vld [vmem:[%s3794_s26 + $0x800] sm:$0xf] }
  0x67   : > { %v436_v1 = vld [vmem:[%s3794_s26 + $0x810] sm:$0xf]  ;;  %v438_v2 = vld [vmem:[%s3794_s26 + $0x820] sm:$0xf]  ;;  %435 = vst [vmem:[%s3801_s27 + $0x200] sm:$0xf] %v434_v0 }
  0x68   : > { %437 = vst [vmem:[%s3801_s27 + $0x204] sm:$0xf] %v436_v1  ;;  %439 = vst [vmem:[%s3801_s27 + $0x208] sm:$0xf] %v438_v2  ;;  %v440_v3 = vld [vmem:[%s3794_s26 + $0x830] sm:$0xf] }
  0x69   : > { %v442_v4 = vld [vmem:[%s3794_s26 + $0x840] sm:$0xf]  ;;  %v444_v5 = vld [vmem:[%s3794_s26 + $0x850] sm:$0xf]  ;;  %441 = vst [vmem:[%s3801_s27 + $0x20c] sm:$0xf] %v440_v3 }
  0x6a   : > { %443 = vst [vmem:[%s3801_s27 + $0x210] sm:$0xf] %v442_v4  ;;  %445 = vst [vmem:[%s3801_s27 + $0x214] sm:$0xf] %v444_v5  ;;  %v446_v6 = vld [vmem:[%s3794_s26 + $0x860] sm:$0xf] }
  0x6b   : > { %v448_v7 = vld [vmem:[%s3794_s26 + $0x870] sm:$0xf]  ;;  %v450_v8 = vld [vmem:[%s3794_s26 + $0x880] sm:$0xf]  ;;  %447 = vst [vmem:[%s3801_s27 + $0x218] sm:$0xf] %v446_v6 }
  0x6c   : > { %449 = vst [vmem:[%s3801_s27 + $0x21c] sm:$0xf] %v448_v7  ;;  %451 = vst [vmem:[%s3801_s27 + $0x220] sm:$0xf] %v450_v8  ;;  %v452_v9 = vld [vmem:[%s3794_s26 + $0x890] sm:$0xf] }
  0x6d   : > { %v454_v10 = vld [vmem:[%s3794_s26 + $0x8a0] sm:$0xf]  ;;  %v456_v11 = vld [vmem:[%s3794_s26 + $0x8b0] sm:$0xf]  ;;  %453 = vst [vmem:[%s3801_s27 + $0x224] sm:$0xf] %v452_v9 }
  0x6e   : > { %455 = vst [vmem:[%s3801_s27 + $0x228] sm:$0xf] %v454_v10  ;;  %457 = vst [vmem:[%s3801_s27 + $0x22c] sm:$0xf] %v456_v11  ;;  %v458_v12 = vld [vmem:[%s3794_s26 + $0x8c0] sm:$0xf] }
  0x6f   : > { %v460_v13 = vld [vmem:[%s3794_s26 + $0x8d0] sm:$0xf]  ;;  %v462_v14 = vld [vmem:[%s3794_s26 + $0x8e0] sm:$0xf]  ;;  %459 = vst [vmem:[%s3801_s27 + $0x230] sm:$0xf] %v458_v12 }
  0x70   : > { %461 = vst [vmem:[%s3801_s27 + $0x234] sm:$0xf] %v460_v13  ;;  %463 = vst [vmem:[%s3801_s27 + $0x238] sm:$0xf] %v462_v14  ;;  %v464_v15 = vld [vmem:[%s3794_s26 + $0x8f0] sm:$0xf] }
  0x71   : > { %v466_v16 = vld [vmem:[%s3794_s26 + $0x900] sm:$0xf]  ;;  %v468_v17 = vld [vmem:[%s3794_s26 + $0x910] sm:$0xf]  ;;  %465 = vst [vmem:[%s3801_s27 + $0x23c] sm:$0xf] %v464_v15 }
  0x72   : > { %467 = vst [vmem:[%s3801_s27 + $0x240] sm:$0xf] %v466_v16  ;;  %469 = vst [vmem:[%s3801_s27 + $0x244] sm:$0xf] %v468_v17  ;;  %v470_v18 = vld [vmem:[%s3794_s26 + $0x920] sm:$0xf] }
  0x73   : > { %v472_v19 = vld [vmem:[%s3794_s26 + $0x930] sm:$0xf]  ;;  %v474_v20 = vld [vmem:[%s3794_s26 + $0x940] sm:$0xf]  ;;  %471 = vst [vmem:[%s3801_s27 + $0x248] sm:$0xf] %v470_v18 }
  0x74   : > { %473 = vst [vmem:[%s3801_s27 + $0x24c] sm:$0xf] %v472_v19  ;;  %475 = vst [vmem:[%s3801_s27 + $0x250] sm:$0xf] %v474_v20  ;;  %v476_v21 = vld [vmem:[%s3794_s26 + $0x950] sm:$0xf] }
  0x75   : > { %v478_v22 = vld [vmem:[%s3794_s26 + $0x960] sm:$0xf]  ;;  %v480_v23 = vld [vmem:[%s3794_s26 + $0x970] sm:$0xf]  ;;  %477 = vst [vmem:[%s3801_s27 + $0x254] sm:$0xf] %v476_v21 }
  0x76   : > { %479 = vst [vmem:[%s3801_s27 + $0x258] sm:$0xf] %v478_v22  ;;  %481 = vst [vmem:[%s3801_s27 + $0x25c] sm:$0xf] %v480_v23  ;;  %v482_v24 = vld [vmem:[%s3794_s26 + $0x980] sm:$0xf] }
  0x77   : > { %v484_v25 = vld [vmem:[%s3794_s26 + $0x990] sm:$0xf]  ;;  %v486_v26 = vld [vmem:[%s3794_s26 + $0x9a0] sm:$0xf]  ;;  %483 = vst [vmem:[%s3801_s27 + $0x260] sm:$0xf] %v482_v24 }
  0x78   : > { %485 = vst [vmem:[%s3801_s27 + $0x264] sm:$0xf] %v484_v25  ;;  %487 = vst [vmem:[%s3801_s27 + $0x268] sm:$0xf] %v486_v26  ;;  %v488_v27 = vld [vmem:[%s3794_s26 + $0x9b0] sm:$0xf] }
  0x79   : > { %v490_v28 = vld [vmem:[%s3794_s26 + $0x9c0] sm:$0xf]  ;;  %v492_v29 = vld [vmem:[%s3794_s26 + $0x9d0] sm:$0xf]  ;;  %489 = vst [vmem:[%s3801_s27 + $0x26c] sm:$0xf] %v488_v27 }
  0x7a   : > { %491 = vst [vmem:[%s3801_s27 + $0x270] sm:$0xf] %v490_v28  ;;  %493 = vst [vmem:[%s3801_s27 + $0x274] sm:$0xf] %v492_v29  ;;  %v494_v30 = vld [vmem:[%s3794_s26 + $0x9e0] sm:$0xf] }
  0x7b   : > { %v496_v31 = vld [vmem:[%s3794_s26 + $0x9f0] sm:$0xf]  ;;  %v498_v32 = vld [vmem:[%s3794_s26 + $0xa00] sm:$0xf]  ;;  %495 = vst [vmem:[%s3801_s27 + $0x278] sm:$0xf] %v494_v30 }
  0x7c   : > { %497 = vst [vmem:[%s3801_s27 + $0x27c] sm:$0xf] %v496_v31  ;;  %499 = vst [vmem:[%s3801_s27 + $0x280] sm:$0xf] %v498_v32  ;;  %v500_v33 = vld [vmem:[%s3794_s26 + $0xa10] sm:$0xf] }
  0x7d   : > { %v502_v34 = vld [vmem:[%s3794_s26 + $0xa20] sm:$0xf]  ;;  %v504_v35 = vld [vmem:[%s3794_s26 + $0xa30] sm:$0xf]  ;;  %501 = vst [vmem:[%s3801_s27 + $0x284] sm:$0xf] %v500_v33 }
  0x7e   : > { %503 = vst [vmem:[%s3801_s27 + $0x288] sm:$0xf] %v502_v34  ;;  %505 = vst [vmem:[%s3801_s27 + $0x28c] sm:$0xf] %v504_v35  ;;  %v506_v36 = vld [vmem:[%s3794_s26 + $0xa40] sm:$0xf] }
  0x7f   : > { %v508_v37 = vld [vmem:[%s3794_s26 + $0xa50] sm:$0xf]  ;;  %v510_v38 = vld [vmem:[%s3794_s26 + $0xa60] sm:$0xf]  ;;  %507 = vst [vmem:[%s3801_s27 + $0x290] sm:$0xf] %v506_v36 }
  0x80   : > { %509 = vst [vmem:[%s3801_s27 + $0x294] sm:$0xf] %v508_v37  ;;  %511 = vst [vmem:[%s3801_s27 + $0x298] sm:$0xf] %v510_v38  ;;  %v512_v39 = vld [vmem:[%s3794_s26 + $0xa70] sm:$0xf] }
  0x81   : > { %v514_v40 = vld [vmem:[%s3794_s26 + $0xa80] sm:$0xf]  ;;  %v516_v41 = vld [vmem:[%s3794_s26 + $0xa90] sm:$0xf]  ;;  %513 = vst [vmem:[%s3801_s27 + $0x29c] sm:$0xf] %v512_v39 }
  0x82   : > { %515 = vst [vmem:[%s3801_s27 + $0x2a0] sm:$0xf] %v514_v40  ;;  %517 = vst [vmem:[%s3801_s27 + $0x2a4] sm:$0xf] %v516_v41  ;;  %v518_v42 = vld [vmem:[%s3794_s26 + $0xaa0] sm:$0xf] }
  0x83   : > { %v520_v43 = vld [vmem:[%s3794_s26 + $0xab0] sm:$0xf]  ;;  %v522_v44 = vld [vmem:[%s3794_s26 + $0xac0] sm:$0xf]  ;;  %519 = vst [vmem:[%s3801_s27 + $0x2a8] sm:$0xf] %v518_v42 }
  0x84   : > { %521 = vst [vmem:[%s3801_s27 + $0x2ac] sm:$0xf] %v520_v43  ;;  %523 = vst [vmem:[%s3801_s27 + $0x2b0] sm:$0xf] %v522_v44  ;;  %v524_v45 = vld [vmem:[%s3794_s26 + $0xad0] sm:$0xf] }
  0x85   : > { %v526_v46 = vld [vmem:[%s3794_s26 + $0xae0] sm:$0xf]  ;;  %v528_v47 = vld [vmem:[%s3794_s26 + $0xaf0] sm:$0xf]  ;;  %525 = vst [vmem:[%s3801_s27 + $0x2b4] sm:$0xf] %v524_v45 }
  0x86   : > { %527 = vst [vmem:[%s3801_s27 + $0x2b8] sm:$0xf] %v526_v46  ;;  %529 = vst [vmem:[%s3801_s27 + $0x2bc] sm:$0xf] %v528_v47  ;;  %v530_v48 = vld [vmem:[%s3794_s26 + $0xb00] sm:$0xf] }
  0x87   : > { %v532_v49 = vld [vmem:[%s3794_s26 + $0xb10] sm:$0xf]  ;;  %v534_v50 = vld [vmem:[%s3794_s26 + $0xb20] sm:$0xf]  ;;  %531 = vst [vmem:[%s3801_s27 + $0x2c0] sm:$0xf] %v530_v48 }
  0x88   : > { %533 = vst [vmem:[%s3801_s27 + $0x2c4] sm:$0xf] %v532_v49  ;;  %535 = vst [vmem:[%s3801_s27 + $0x2c8] sm:$0xf] %v534_v50  ;;  %v536_v51 = vld [vmem:[%s3794_s26 + $0xb30] sm:$0xf] }
  0x89   : > { %v538_v52 = vld [vmem:[%s3794_s26 + $0xb40] sm:$0xf]  ;;  %v540_v53 = vld [vmem:[%s3794_s26 + $0xb50] sm:$0xf]  ;;  %537 = vst [vmem:[%s3801_s27 + $0x2cc] sm:$0xf] %v536_v51 }
  0x8a   : > { %539 = vst [vmem:[%s3801_s27 + $0x2d0] sm:$0xf] %v538_v52  ;;  %541 = vst [vmem:[%s3801_s27 + $0x2d4] sm:$0xf] %v540_v53  ;;  %v542_v54 = vld [vmem:[%s3794_s26 + $0xb60] sm:$0xf] }
  0x8b   : > { %v544_v55 = vld [vmem:[%s3794_s26 + $0xb70] sm:$0xf]  ;;  %v546_v56 = vld [vmem:[%s3794_s26 + $0xb80] sm:$0xf]  ;;  %543 = vst [vmem:[%s3801_s27 + $0x2d8] sm:$0xf] %v542_v54 }
  0x8c   : > { %545 = vst [vmem:[%s3801_s27 + $0x2dc] sm:$0xf] %v544_v55  ;;  %547 = vst [vmem:[%s3801_s27 + $0x2e0] sm:$0xf] %v546_v56  ;;  %v548_v57 = vld [vmem:[%s3794_s26 + $0xb90] sm:$0xf] }
  0x8d   : > { %v550_v58 = vld [vmem:[%s3794_s26 + $0xba0] sm:$0xf]  ;;  %v552_v59 = vld [vmem:[%s3794_s26 + $0xbb0] sm:$0xf]  ;;  %549 = vst [vmem:[%s3801_s27 + $0x2e4] sm:$0xf] %v548_v57 }
  0x8e   : > { %551 = vst [vmem:[%s3801_s27 + $0x2e8] sm:$0xf] %v550_v58  ;;  %553 = vst [vmem:[%s3801_s27 + $0x2ec] sm:$0xf] %v552_v59  ;;  %v554_v60 = vld [vmem:[%s3794_s26 + $0xbc0] sm:$0xf] }
  0x8f   : > { %v556_v61 = vld [vmem:[%s3794_s26 + $0xbd0] sm:$0xf]  ;;  %v558_v62 = vld [vmem:[%s3794_s26 + $0xbe0] sm:$0xf]  ;;  %555 = vst [vmem:[%s3801_s27 + $0x2f0] sm:$0xf] %v554_v60 }
  0x90   : > { %557 = vst [vmem:[%s3801_s27 + $0x2f4] sm:$0xf] %v556_v61  ;;  %559 = vst [vmem:[%s3801_s27 + $0x2f8] sm:$0xf] %v558_v62  ;;  %v560_v63 = vld [vmem:[%s3794_s26 + $0xbf0] sm:$0xf] }
  0x91   : > { %v562_v0 = vld [vmem:[%s3794_s26 + $0xc00] sm:$0xf]  ;;  %v564_v1 = vld [vmem:[%s3794_s26 + $0xc10] sm:$0xf]  ;;  %561 = vst [vmem:[%s3801_s27 + $0x2fc] sm:$0xf] %v560_v63 }
  0x92   : > { %563 = vst [vmem:[%s3801_s27 + $0x300] sm:$0xf] %v562_v0  ;;  %565 = vst [vmem:[%s3801_s27 + $0x304] sm:$0xf] %v564_v1  ;;  %v566_v2 = vld [vmem:[%s3794_s26 + $0xc20] sm:$0xf] }
  0x93   : > { %v568_v3 = vld [vmem:[%s3794_s26 + $0xc30] sm:$0xf]  ;;  %v570_v4 = vld [vmem:[%s3794_s26 + $0xc40] sm:$0xf]  ;;  %567 = vst [vmem:[%s3801_s27 + $0x308] sm:$0xf] %v566_v2 }
  0x94   : > { %569 = vst [vmem:[%s3801_s27 + $0x30c] sm:$0xf] %v568_v3  ;;  %571 = vst [vmem:[%s3801_s27 + $0x310] sm:$0xf] %v570_v4  ;;  %v572_v5 = vld [vmem:[%s3794_s26 + $0xc50] sm:$0xf] }
  0x95   : > { %v574_v6 = vld [vmem:[%s3794_s26 + $0xc60] sm:$0xf]  ;;  %v576_v7 = vld [vmem:[%s3794_s26 + $0xc70] sm:$0xf]  ;;  %573 = vst [vmem:[%s3801_s27 + $0x314] sm:$0xf] %v572_v5 }
  0x96   : > { %575 = vst [vmem:[%s3801_s27 + $0x318] sm:$0xf] %v574_v6  ;;  %577 = vst [vmem:[%s3801_s27 + $0x31c] sm:$0xf] %v576_v7  ;;  %v578_v8 = vld [vmem:[%s3794_s26 + $0xc80] sm:$0xf] }
  0x97   : > { %v580_v9 = vld [vmem:[%s3794_s26 + $0xc90] sm:$0xf]  ;;  %v582_v10 = vld [vmem:[%s3794_s26 + $0xca0] sm:$0xf]  ;;  %579 = vst [vmem:[%s3801_s27 + $0x320] sm:$0xf] %v578_v8 }
  0x98   : > { %581 = vst [vmem:[%s3801_s27 + $0x324] sm:$0xf] %v580_v9  ;;  %583 = vst [vmem:[%s3801_s27 + $0x328] sm:$0xf] %v582_v10  ;;  %v584_v11 = vld [vmem:[%s3794_s26 + $0xcb0] sm:$0xf] }
  0x99   : > { %v586_v12 = vld [vmem:[%s3794_s26 + $0xcc0] sm:$0xf]  ;;  %v588_v13 = vld [vmem:[%s3794_s26 + $0xcd0] sm:$0xf]  ;;  %585 = vst [vmem:[%s3801_s27 + $0x32c] sm:$0xf] %v584_v11 }
  0x9a   : > { %587 = vst [vmem:[%s3801_s27 + $0x330] sm:$0xf] %v586_v12  ;;  %589 = vst [vmem:[%s3801_s27 + $0x334] sm:$0xf] %v588_v13  ;;  %v590_v14 = vld [vmem:[%s3794_s26 + $0xce0] sm:$0xf] }
  0x9b   : > { %v592_v15 = vld [vmem:[%s3794_s26 + $0xcf0] sm:$0xf]  ;;  %v594_v16 = vld [vmem:[%s3794_s26 + $0xd00] sm:$0xf]  ;;  %591 = vst [vmem:[%s3801_s27 + $0x338] sm:$0xf] %v590_v14 }
  0x9c   : > { %593 = vst [vmem:[%s3801_s27 + $0x33c] sm:$0xf] %v592_v15  ;;  %595 = vst [vmem:[%s3801_s27 + $0x340] sm:$0xf] %v594_v16  ;;  %v596_v17 = vld [vmem:[%s3794_s26 + $0xd10] sm:$0xf] }
  0x9d   : > { %v598_v18 = vld [vmem:[%s3794_s26 + $0xd20] sm:$0xf]  ;;  %v600_v19 = vld [vmem:[%s3794_s26 + $0xd30] sm:$0xf]  ;;  %597 = vst [vmem:[%s3801_s27 + $0x344] sm:$0xf] %v596_v17 }
  0x9e   : > { %599 = vst [vmem:[%s3801_s27 + $0x348] sm:$0xf] %v598_v18  ;;  %601 = vst [vmem:[%s3801_s27 + $0x34c] sm:$0xf] %v600_v19  ;;  %v602_v20 = vld [vmem:[%s3794_s26 + $0xd40] sm:$0xf] }
  0x9f   : > { %v604_v21 = vld [vmem:[%s3794_s26 + $0xd50] sm:$0xf]  ;;  %v606_v22 = vld [vmem:[%s3794_s26 + $0xd60] sm:$0xf]  ;;  %603 = vst [vmem:[%s3801_s27 + $0x350] sm:$0xf] %v602_v20 }
  0xa0   : > { %605 = vst [vmem:[%s3801_s27 + $0x354] sm:$0xf] %v604_v21  ;;  %607 = vst [vmem:[%s3801_s27 + $0x358] sm:$0xf] %v606_v22  ;;  %v608_v23 = vld [vmem:[%s3794_s26 + $0xd70] sm:$0xf] }
  0xa1   : > { %v610_v24 = vld [vmem:[%s3794_s26 + $0xd80] sm:$0xf]  ;;  %v612_v25 = vld [vmem:[%s3794_s26 + $0xd90] sm:$0xf]  ;;  %609 = vst [vmem:[%s3801_s27 + $0x35c] sm:$0xf] %v608_v23 }
  0xa2   : > { %611 = vst [vmem:[%s3801_s27 + $0x360] sm:$0xf] %v610_v24  ;;  %613 = vst [vmem:[%s3801_s27 + $0x364] sm:$0xf] %v612_v25  ;;  %v614_v26 = vld [vmem:[%s3794_s26 + $0xda0] sm:$0xf] }
  0xa3   : > { %v616_v27 = vld [vmem:[%s3794_s26 + $0xdb0] sm:$0xf]  ;;  %v618_v28 = vld [vmem:[%s3794_s26 + $0xdc0] sm:$0xf]  ;;  %615 = vst [vmem:[%s3801_s27 + $0x368] sm:$0xf] %v614_v26 }
  0xa4   : > { %617 = vst [vmem:[%s3801_s27 + $0x36c] sm:$0xf] %v616_v27  ;;  %619 = vst [vmem:[%s3801_s27 + $0x370] sm:$0xf] %v618_v28  ;;  %v620_v29 = vld [vmem:[%s3794_s26 + $0xdd0] sm:$0xf] }
  0xa5   : > { %v622_v30 = vld [vmem:[%s3794_s26 + $0xde0] sm:$0xf]  ;;  %v624_v31 = vld [vmem:[%s3794_s26 + $0xdf0] sm:$0xf]  ;;  %621 = vst [vmem:[%s3801_s27 + $0x374] sm:$0xf] %v620_v29 }
  0xa6   : > { %623 = vst [vmem:[%s3801_s27 + $0x378] sm:$0xf] %v622_v30  ;;  %625 = vst [vmem:[%s3801_s27 + $0x37c] sm:$0xf] %v624_v31  ;;  %v626_v32 = vld [vmem:[%s3794_s26 + $0xe00] sm:$0xf] }
  0xa7   : > { %v628_v33 = vld [vmem:[%s3794_s26 + $0xe10] sm:$0xf]  ;;  %v630_v34 = vld [vmem:[%s3794_s26 + $0xe20] sm:$0xf]  ;;  %627 = vst [vmem:[%s3801_s27 + $0x380] sm:$0xf] %v626_v32 }
  0xa8   : > { %629 = vst [vmem:[%s3801_s27 + $0x384] sm:$0xf] %v628_v33  ;;  %631 = vst [vmem:[%s3801_s27 + $0x388] sm:$0xf] %v630_v34  ;;  %v632_v35 = vld [vmem:[%s3794_s26 + $0xe30] sm:$0xf] }
  0xa9   : > { %v634_v36 = vld [vmem:[%s3794_s26 + $0xe40] sm:$0xf]  ;;  %v636_v37 = vld [vmem:[%s3794_s26 + $0xe50] sm:$0xf]  ;;  %633 = vst [vmem:[%s3801_s27 + $0x38c] sm:$0xf] %v632_v35 }
  0xaa   : > { %635 = vst [vmem:[%s3801_s27 + $0x390] sm:$0xf] %v634_v36  ;;  %637 = vst [vmem:[%s3801_s27 + $0x394] sm:$0xf] %v636_v37  ;;  %v638_v38 = vld [vmem:[%s3794_s26 + $0xe60] sm:$0xf] }
  0xab   : > { %v640_v39 = vld [vmem:[%s3794_s26 + $0xe70] sm:$0xf]  ;;  %v642_v40 = vld [vmem:[%s3794_s26 + $0xe80] sm:$0xf]  ;;  %639 = vst [vmem:[%s3801_s27 + $0x398] sm:$0xf] %v638_v38 }
  0xac   : > { %641 = vst [vmem:[%s3801_s27 + $0x39c] sm:$0xf] %v640_v39  ;;  %643 = vst [vmem:[%s3801_s27 + $0x3a0] sm:$0xf] %v642_v40  ;;  %v644_v41 = vld [vmem:[%s3794_s26 + $0xe90] sm:$0xf] }
  0xad   : > { %v646_v42 = vld [vmem:[%s3794_s26 + $0xea0] sm:$0xf]  ;;  %v648_v43 = vld [vmem:[%s3794_s26 + $0xeb0] sm:$0xf]  ;;  %645 = vst [vmem:[%s3801_s27 + $0x3a4] sm:$0xf] %v644_v41 }
  0xae   : > { %647 = vst [vmem:[%s3801_s27 + $0x3a8] sm:$0xf] %v646_v42  ;;  %649 = vst [vmem:[%s3801_s27 + $0x3ac] sm:$0xf] %v648_v43  ;;  %v650_v44 = vld [vmem:[%s3794_s26 + $0xec0] sm:$0xf] }
  0xaf   : > { %v652_v45 = vld [vmem:[%s3794_s26 + $0xed0] sm:$0xf]  ;;  %v654_v46 = vld [vmem:[%s3794_s26 + $0xee0] sm:$0xf]  ;;  %651 = vst [vmem:[%s3801_s27 + $0x3b0] sm:$0xf] %v650_v44 }
  0xb0   : > { %653 = vst [vmem:[%s3801_s27 + $0x3b4] sm:$0xf] %v652_v45  ;;  %655 = vst [vmem:[%s3801_s27 + $0x3b8] sm:$0xf] %v654_v46  ;;  %v656_v47 = vld [vmem:[%s3794_s26 + $0xef0] sm:$0xf] }
  0xb1   : > { %v658_v48 = vld [vmem:[%s3794_s26 + $0xf00] sm:$0xf]  ;;  %v660_v49 = vld [vmem:[%s3794_s26 + $0xf10] sm:$0xf]  ;;  %657 = vst [vmem:[%s3801_s27 + $0x3bc] sm:$0xf] %v656_v47 }
  0xb2   : > { %659 = vst [vmem:[%s3801_s27 + $0x3c0] sm:$0xf] %v658_v48  ;;  %661 = vst [vmem:[%s3801_s27 + $0x3c4] sm:$0xf] %v660_v49  ;;  %v662_v50 = vld [vmem:[%s3794_s26 + $0xf20] sm:$0xf] }
  0xb3   : > { %v664_v51 = vld [vmem:[%s3794_s26 + $0xf30] sm:$0xf]  ;;  %v666_v52 = vld [vmem:[%s3794_s26 + $0xf40] sm:$0xf]  ;;  %663 = vst [vmem:[%s3801_s27 + $0x3c8] sm:$0xf] %v662_v50 }
  0xb4   : > { %665 = vst [vmem:[%s3801_s27 + $0x3cc] sm:$0xf] %v664_v51  ;;  %667 = vst [vmem:[%s3801_s27 + $0x3d0] sm:$0xf] %v666_v52  ;;  %v668_v53 = vld [vmem:[%s3794_s26 + $0xf50] sm:$0xf] }
  0xb5   : > { %v670_v54 = vld [vmem:[%s3794_s26 + $0xf60] sm:$0xf]  ;;  %v672_v55 = vld [vmem:[%s3794_s26 + $0xf70] sm:$0xf]  ;;  %669 = vst [vmem:[%s3801_s27 + $0x3d4] sm:$0xf] %v668_v53 }
  0xb6   : > { %671 = vst [vmem:[%s3801_s27 + $0x3d8] sm:$0xf] %v670_v54  ;;  %673 = vst [vmem:[%s3801_s27 + $0x3dc] sm:$0xf] %v672_v55  ;;  %v674_v56 = vld [vmem:[%s3794_s26 + $0xf80] sm:$0xf] }
  0xb7   : > { %v676_v57 = vld [vmem:[%s3794_s26 + $0xf90] sm:$0xf]  ;;  %v678_v58 = vld [vmem:[%s3794_s26 + $0xfa0] sm:$0xf]  ;;  %675 = vst [vmem:[%s3801_s27 + $0x3e0] sm:$0xf] %v674_v56 }
  0xb8   : > { %677 = vst [vmem:[%s3801_s27 + $0x3e4] sm:$0xf] %v676_v57  ;;  %679 = vst [vmem:[%s3801_s27 + $0x3e8] sm:$0xf] %v678_v58  ;;  %v680_v59 = vld [vmem:[%s3794_s26 + $0xfb0] sm:$0xf] }
  0xb9   : > { %v682_v60 = vld [vmem:[%s3794_s26 + $0xfc0] sm:$0xf]  ;;  %v684_v61 = vld [vmem:[%s3794_s26 + $0xfd0] sm:$0xf]  ;;  %681 = vst [vmem:[%s3801_s27 + $0x3ec] sm:$0xf] %v680_v59 }
  0xba   : > { %683 = vst [vmem:[%s3801_s27 + $0x3f0] sm:$0xf] %v682_v60  ;;  %685 = vst [vmem:[%s3801_s27 + $0x3f4] sm:$0xf] %v684_v61  ;;  %v686_v62 = vld [vmem:[%s3794_s26 + $0xfe0] sm:$0xf] }
  0xbb   : > { %v688_v63 = vld [vmem:[%s3794_s26 + $0xff0] sm:$0xf]  ;;  %v690_v0 = vld [vmem:[%s3794_s26 + $0x1000] sm:$0xf]  ;;  %687 = vst [vmem:[%s3801_s27 + $0x3f8] sm:$0xf] %v686_v62 }
  0xbc   : > { %689 = vst [vmem:[%s3801_s27 + $0x3fc] sm:$0xf] %v688_v63  ;;  %691 = vst [vmem:[%s3801_s27 + $0x400] sm:$0xf] %v690_v0  ;;  %v692_v1 = vld [vmem:[%s3794_s26 + $0x1010] sm:$0xf] }
  0xbd   : > { %v694_v2 = vld [vmem:[%s3794_s26 + $0x1020] sm:$0xf]  ;;  %v696_v3 = vld [vmem:[%s3794_s26 + $0x1030] sm:$0xf]  ;;  %693 = vst [vmem:[%s3801_s27 + $0x404] sm:$0xf] %v692_v1 }
  0xbe   : > { %695 = vst [vmem:[%s3801_s27 + $0x408] sm:$0xf] %v694_v2  ;;  %697 = vst [vmem:[%s3801_s27 + $0x40c] sm:$0xf] %v696_v3  ;;  %v698_v4 = vld [vmem:[%s3794_s26 + $0x1040] sm:$0xf] }
  0xbf   : > { %v700_v5 = vld [vmem:[%s3794_s26 + $0x1050] sm:$0xf]  ;;  %v702_v6 = vld [vmem:[%s3794_s26 + $0x1060] sm:$0xf]  ;;  %699 = vst [vmem:[%s3801_s27 + $0x410] sm:$0xf] %v698_v4 }
  0xc0   : > { %701 = vst [vmem:[%s3801_s27 + $0x414] sm:$0xf] %v700_v5  ;;  %703 = vst [vmem:[%s3801_s27 + $0x418] sm:$0xf] %v702_v6  ;;  %v704_v7 = vld [vmem:[%s3794_s26 + $0x1070] sm:$0xf] }
  0xc1   : > { %v706_v8 = vld [vmem:[%s3794_s26 + $0x1080] sm:$0xf]  ;;  %v708_v9 = vld [vmem:[%s3794_s26 + $0x1090] sm:$0xf]  ;;  %705 = vst [vmem:[%s3801_s27 + $0x41c] sm:$0xf] %v704_v7 }
  0xc2   : > { %707 = vst [vmem:[%s3801_s27 + $0x420] sm:$0xf] %v706_v8  ;;  %709 = vst [vmem:[%s3801_s27 + $0x424] sm:$0xf] %v708_v9  ;;  %v710_v10 = vld [vmem:[%s3794_s26 + $0x10a0] sm:$0xf] }
  0xc3   : > { %v712_v11 = vld [vmem:[%s3794_s26 + $0x10b0] sm:$0xf]  ;;  %v714_v12 = vld [vmem:[%s3794_s26 + $0x10c0] sm:$0xf]  ;;  %711 = vst [vmem:[%s3801_s27 + $0x428] sm:$0xf] %v710_v10 }
  0xc4   : > { %713 = vst [vmem:[%s3801_s27 + $0x42c] sm:$0xf] %v712_v11  ;;  %715 = vst [vmem:[%s3801_s27 + $0x430] sm:$0xf] %v714_v12  ;;  %v716_v13 = vld [vmem:[%s3794_s26 + $0x10d0] sm:$0xf] }
  0xc5   : > { %v718_v14 = vld [vmem:[%s3794_s26 + $0x10e0] sm:$0xf]  ;;  %v720_v15 = vld [vmem:[%s3794_s26 + $0x10f0] sm:$0xf]  ;;  %717 = vst [vmem:[%s3801_s27 + $0x434] sm:$0xf] %v716_v13 }
  0xc6   : > { %719 = vst [vmem:[%s3801_s27 + $0x438] sm:$0xf] %v718_v14  ;;  %721 = vst [vmem:[%s3801_s27 + $0x43c] sm:$0xf] %v720_v15  ;;  %v722_v16 = vld [vmem:[%s3794_s26 + $0x1100] sm:$0xf] }
  0xc7   : > { %v724_v17 = vld [vmem:[%s3794_s26 + $0x1110] sm:$0xf]  ;;  %v726_v18 = vld [vmem:[%s3794_s26 + $0x1120] sm:$0xf]  ;;  %723 = vst [vmem:[%s3801_s27 + $0x440] sm:$0xf] %v722_v16 }
  0xc8   : > { %725 = vst [vmem:[%s3801_s27 + $0x444] sm:$0xf] %v724_v17  ;;  %727 = vst [vmem:[%s3801_s27 + $0x448] sm:$0xf] %v726_v18  ;;  %v728_v19 = vld [vmem:[%s3794_s26 + $0x1130] sm:$0xf] }
  0xc9   : > { %v730_v20 = vld [vmem:[%s3794_s26 + $0x1140] sm:$0xf]  ;;  %v732_v21 = vld [vmem:[%s3794_s26 + $0x1150] sm:$0xf]  ;;  %729 = vst [vmem:[%s3801_s27 + $0x44c] sm:$0xf] %v728_v19 }
  0xca   : > { %731 = vst [vmem:[%s3801_s27 + $0x450] sm:$0xf] %v730_v20  ;;  %733 = vst [vmem:[%s3801_s27 + $0x454] sm:$0xf] %v732_v21  ;;  %v734_v22 = vld [vmem:[%s3794_s26 + $0x1160] sm:$0xf] }
  0xcb   : > { %v736_v23 = vld [vmem:[%s3794_s26 + $0x1170] sm:$0xf]  ;;  %v738_v24 = vld [vmem:[%s3794_s26 + $0x1180] sm:$0xf]  ;;  %735 = vst [vmem:[%s3801_s27 + $0x458] sm:$0xf] %v734_v22 }
  0xcc   : > { %737 = vst [vmem:[%s3801_s27 + $0x45c] sm:$0xf] %v736_v23  ;;  %739 = vst [vmem:[%s3801_s27 + $0x460] sm:$0xf] %v738_v24  ;;  %v740_v25 = vld [vmem:[%s3794_s26 + $0x1190] sm:$0xf] }
  0xcd   : > { %v742_v26 = vld [vmem:[%s3794_s26 + $0x11a0] sm:$0xf]  ;;  %v744_v27 = vld [vmem:[%s3794_s26 + $0x11b0] sm:$0xf]  ;;  %741 = vst [vmem:[%s3801_s27 + $0x464] sm:$0xf] %v740_v25 }
  0xce   : > { %743 = vst [vmem:[%s3801_s27 + $0x468] sm:$0xf] %v742_v26  ;;  %745 = vst [vmem:[%s3801_s27 + $0x46c] sm:$0xf] %v744_v27  ;;  %v746_v28 = vld [vmem:[%s3794_s26 + $0x11c0] sm:$0xf] }
  0xcf   : > { %v748_v29 = vld [vmem:[%s3794_s26 + $0x11d0] sm:$0xf]  ;;  %v750_v30 = vld [vmem:[%s3794_s26 + $0x11e0] sm:$0xf]  ;;  %747 = vst [vmem:[%s3801_s27 + $0x470] sm:$0xf] %v746_v28 }
  0xd0   : > { %749 = vst [vmem:[%s3801_s27 + $0x474] sm:$0xf] %v748_v29  ;;  %751 = vst [vmem:[%s3801_s27 + $0x478] sm:$0xf] %v750_v30  ;;  %v752_v31 = vld [vmem:[%s3794_s26 + $0x11f0] sm:$0xf] }
  0xd1   : > { %753 = vst [vmem:[%s3801_s27 + $0x47c] sm:$0xf] %v752_v31 }
  0xd2 PF: > { %p3122_p6 = scmp.ge.s32.totalorder %s3729_s16, 1  ;;  %p1357_p7 = scmp.lt.s32.totalorder %s3729_s16, 5 }
  0xd4   : > { %p1358_p8 = pnand %p3122_p6, %p1357_p7 }
  0xd5   : > { %s1364_s28 = sand.u32 (!%p1358_p8), 1, %s3713_s12   ;;  %v4380_v32 = vld [vmem:[%s4619_s0] sm:$0xff] (!%p1358_p8)  ;;  %v4385_v33 = vld [vmem:[%s4619_s0 + $0x8] sm:$0xff] (!%p1358_p8)  ;;  %v4423_v63 = vld [vmem:[%s4619_s0 + $0x10] sm:$0xff] (!%p1358_p8)  ;;  %p1403_p9 = scmp.lt.s32.totalorder (!%p1358_p8), %s3721_s14, 3 }
  0xd6   : > { %1361 = sbr.rel (%p1358_p8) target bundleno = 599 (0x257), region = 69  ;;  %v3126_v34 = vcombine.high (!%p1358_p8), %v4380_v32, %v4380_v32  ;;  %v3128_v35 = vcombine.high (!%p1358_p8), %v4385_v33, %v4385_v33  ;;  %v4430_v2 = vld [vmem:[%s4619_s0 + $0x18] sm:$0xff] (!%p1358_p8)  ;;  %v3125_v5 = vcombine.low (!%p1358_p8), %v4380_v32, %v4380_v32  ;;  %v3130_v7 = vcombine.high (!%p1358_p8), %v4423_v63, %v4423_v63 }
  0xd7   : > { %s3488_s6 = smul.u32 (!%p1358_p8), 1152, %s1364_s28  ;;  %v3127_v9 = vcombine.low (!%p1358_p8), %v4385_v33, %v4385_v33  ;;  %v3132_v11 = vcombine.high (!%p1358_p8), %v4430_v2, %v4430_v2 }
  0xd8   : > { %2678 = vmatprep.mubr.bf16.mxu0 (!%p1358_p8), %v3126_v34  ;;  %2718 = vmatprep.mubr.bf16.mxu1 (!%p1358_p8), %v3128_v35 }
  0xd9   : > { %s4391_s7 = scalar_lea.vmem (!%p1358_p8), [#allocation2], %s3488_s6 }
  0xda   : > { %v3529_v36 = vld [vmem:[%s4391_s7 + $0x40] sm:$0xff] (!%p1358_p8)   ;;  %v3533_v40 = vld [vmem:[%s4391_s7 + $0x48] sm:$0xff] (!%p1358_p8)   ;;  %v3537_v44 = vld [vmem:[%s4391_s7 + $0x50] sm:$0xff] (!%p1358_p8)  }
  0xdb   : > { %v3530_v37 = vld [vmem:[%s4391_s7] sm:$0xff] (!%p1358_p8)   ;;  %3289 = vmatprep.subr.bf16.mxu0 (!%p1358_p8), %v3529_v36  ;;  %v3534_v41 = vld [vmem:[%s4391_s7 + $0x8] sm:$0xff] (!%p1358_p8)   ;;  %v3538_v45 = vld [vmem:[%s4391_s7 + $0x10] sm:$0xff] (!%p1358_p8)  }
  0xdc   : > { %v3531_v38 = vld [vmem:[%s4391_s7 + $0xc0] sm:$0xff] (!%p1358_p8)   ;;  %3290 = vmatpush3.bf16.msra.mxu0 (!%p1358_p8), %v3530_v37  ;;  %v3535_v42 = vld [vmem:[%s4391_s7 + $0xc8] sm:$0xff] (!%p1358_p8)   ;;  %v3539_v46 = vld [vmem:[%s4391_s7 + $0xd0] sm:$0xff] (!%p1358_p8)  }
  0xdd   : > { %v3532_v39 = vld [vmem:[%s4391_s7 + $0x80] sm:$0xff]   ;;  %3311 = vmatprep.subr.bf16.mxu1 %v3531_v38  ;;  %3291 = vmatprep.subr.bf16.mxu0 %v3533_v40  ;;  %v3536_v43 = vld [vmem:[%s4391_s7 + $0x88] sm:$0xff]   ;;  %v3540_v47 = vld [vmem:[%s4391_s7 + $0x90] sm:$0xff]   ;;  %s4630_s14 = smov (!%p1403_p9, %s3721_s14), 3 }
  0xde   : > { %3312 = vmatpush3.bf16.msra.mxu1 %v3532_v39  ;;  %v3541_v48 = vld [vmem:[%s4391_s7 + $0x58] sm:$0xff]   ;;  %v3545_v52 = vld [vmem:[%s4391_s7 + $0x60] sm:$0xff]   ;;  %v3549_v56 = vld [vmem:[%s4391_s7 + $0x68] sm:$0xff]   ;;  %s1405_s30 = scalar_lea.vmem %s4621_s2, %s4630_s14  ;;  %s3123_s4 = sshll.u32 %s4630_s14, 3 }
  0xdf   : > { %3313 = vmatprep.subr.bf16.mxu1 %v3535_v42  ;;  %v3542_v49 = vld [vmem:[%s4391_s7 + $0x18] sm:$0xff]   ;;  %v3546_v53 = vld [vmem:[%s4391_s7 + $0x20] sm:$0xff]   ;;  %v3550_v57 = vld [vmem:[%s4391_s7 + $0x28] sm:$0xff]  }
  0xe0   : > { %3292 = vmatpush3.bf16.msra.mxu0 %v3534_v41  ;;  %v3543_v50 = vld [vmem:[%s4391_s7 + $0xd8] sm:$0xff]   ;;  %v3547_v54 = vld [vmem:[%s4391_s7 + $0xe0] sm:$0xff]   ;;  %v3551_v58 = vld [vmem:[%s4391_s7 + $0xe8] sm:$0xff]  }
  0xe1   : > { %3293 = vmatprep.subr.bf16.mxu0 %v3537_v44  ;;  %v3544_v51 = vld [vmem:[%s4391_s7 + $0x98] sm:$0xff]   ;;  %v3548_v55 = vld [vmem:[%s4391_s7 + $0xa0] sm:$0xff]   ;;  %v3552_v59 = vld [vmem:[%s4391_s7 + $0xa8] sm:$0xff]  }
  0xe2   : > { %3314 = vmatpush3.bf16.msra.mxu1 %v3536_v43  ;;  %v3553_v60 = vld [vmem:[%s4391_s7 + $0x70] sm:$0xff]   ;;  %v3557_v1 = vld [vmem:[%s4391_s7 + $0x78] sm:$0xff]   ;;  %v3563_v8 = vld [vmem:[%s4391_s7 + $0x140] sm:$0xff]   ;;  %v3129_v43 = vcombine.low %v4423_v63, %v4423_v63 }
  0xe3   : > { %3315 = vmatprep.subr.bf16.mxu1 %v3539_v46  ;;  %v3554_v61 = vld [vmem:[%s4391_s7 + $0x30] sm:$0xff]   ;;  %v3558_v3 = vld [vmem:[%s4391_s7 + $0x38] sm:$0xff]   ;;  %v3566_v10 = vld [vmem:[%s4391_s7 + $0x100] sm:$0xff]  }
  0xe4   : > { %3294 = vmatpush3.bf16.msra.mxu0 %v3538_v45  ;;  %v3555_v62 = vld [vmem:[%s4391_s7 + $0xf0] sm:$0xff]   ;;  %v3559_v4 = vld [vmem:[%s4391_s7 + $0xf8] sm:$0xff]   ;;  %v3567_v12 = vld [vmem:[%s4391_s7 + $0x1c0] sm:$0xff]  }
  0xe5   : > { %3295 = vmatprep.subr.bf16.mxu0 %v3541_v48  ;;  %v3556_v0 = vld [vmem:[%s4391_s7 + $0xb0] sm:$0xff]   ;;  %v3562_v6 = vld [vmem:[%s4391_s7 + $0xb8] sm:$0xff]   ;;  %v3568_v13 = vld [vmem:[%s4391_s7 + $0x180] sm:$0xff]  }
  0xe6   : > { %3316 = vmatpush3.bf16.msra.mxu1 %v3540_v47  ;;  %v3569_v14 = vld [vmem:[%s4391_s7 + $0x148] sm:$0xff]   ;;  %v3573_v18 = vld [vmem:[%s4391_s7 + $0x150] sm:$0xff]   ;;  %v3577_v22 = vld [vmem:[%s4391_s7 + $0x158] sm:$0xff]   ;;  %v3131_v47 = vcombine.low %v4430_v2, %v4430_v2 }
  0xe7   : > { %3317 = vmatprep.subr.bf16.mxu1 %v3543_v50  ;;  %v3570_v15 = vld [vmem:[%s4391_s7 + $0x108] sm:$0xff]   ;;  %v3574_v19 = vld [vmem:[%s4391_s7 + $0x110] sm:$0xff]   ;;  %v3578_v23 = vld [vmem:[%s4391_s7 + $0x118] sm:$0xff]  }
  0xe8   : > { %3296 = vmatpush3.bf16.msra.mxu0 %v3542_v49  ;;  %v3571_v16 = vld [vmem:[%s4391_s7 + $0x1c8] sm:$0xff]   ;;  %v3575_v20 = vld [vmem:[%s4391_s7 + $0x1d0] sm:$0xff]   ;;  %v3579_v24 = vld [vmem:[%s4391_s7 + $0x1d8] sm:$0xff]  }
  0xe9   : > { %3297 = vmatprep.subr.bf16.mxu0 %v3545_v52  ;;  %v3572_v17 = vld [vmem:[%s4391_s7 + $0x188] sm:$0xff]   ;;  %v3576_v21 = vld [vmem:[%s4391_s7 + $0x190] sm:$0xff]   ;;  %v3580_v25 = vld [vmem:[%s4391_s7 + $0x198] sm:$0xff]  }
  0xea   : > { %3318 = vmatpush3.bf16.msra.mxu1 %v3544_v51  ;;  %v3581_v26 = vld [vmem:[%s4391_s7 + $0x160] sm:$0xff]   ;;  %v3585_v30 = vld [vmem:[%s4391_s7 + $0x168] sm:$0xff]   ;;  %v3589_v34 = vld [vmem:[%s4391_s7 + $0x170] sm:$0xff]  }
  0xeb   : > { %3319 = vmatprep.subr.bf16.mxu1 %v3547_v54  ;;  %v3582_v27 = vld [vmem:[%s4391_s7 + $0x120] sm:$0xff]   ;;  %v3586_v31 = vld [vmem:[%s4391_s7 + $0x128] sm:$0xff]   ;;  %v3590_v35 = vld [vmem:[%s4391_s7 + $0x130] sm:$0xff]  }
  0xec   : > { %3298 = vmatpush3.bf16.msra.mxu0 %v3546_v53  ;;  %v3583_v28 = vld [vmem:[%s4391_s7 + $0x1e0] sm:$0xff]   ;;  %v3587_v32 = vld [vmem:[%s4391_s7 + $0x1e8] sm:$0xff]   ;;  %v3591_v36 = vld [vmem:[%s4391_s7 + $0x1f0] sm:$0xff]  }
  0xed   : > { %3299 = vmatprep.subr.bf16.mxu0 %v3549_v56  ;;  %v3584_v29 = vld [vmem:[%s4391_s7 + $0x1a0] sm:$0xff]   ;;  %v3588_v33 = vld [vmem:[%s4391_s7 + $0x1a8] sm:$0xff]   ;;  %v3592_v38 = vld [vmem:[%s4391_s7 + $0x1b0] sm:$0xff]  }
  0xee   : > { %3320 = vmatpush3.bf16.msra.mxu1 %v3548_v55  ;;  %v4473_v37 = vld [vmem:[%s4619_s0 + $0x20] sm:$0xff]  ;;  %v3593_v39 = vld [vmem:[%s4391_s7 + $0x178] sm:$0xff]   ;;  %v4480_v40 = vld [vmem:[%s4619_s0 + $0x28] sm:$0xff] }
  0xef   : > { %3321 = vmatprep.subr.bf16.mxu1 %v3551_v58  ;;  %v3594_v41 = vld [vmem:[%s4391_s7 + $0x138] sm:$0xff]   ;;  %v3134_v45 = vcombine.high %v4473_v37, %v4473_v37  ;;  %v3599_v46 = vld [vmem:[%s4391_s7 + $0x240] sm:$0xff]   ;;  %v3136_v49 = vcombine.high %v4480_v40, %v4480_v40  ;;  %v3605_v52 = vld [vmem:[%s4391_s7 + $0x248] sm:$0xff]  }
  0xf0   : > { %3300 = vmatpush3.bf16.msra.mxu0 %v3550_v57  ;;  %v3595_v42 = vld [vmem:[%s4391_s7 + $0x1f8] sm:$0xff]   ;;  %v3602_v48 = vld [vmem:[%s4391_s7 + $0x200] sm:$0xff]   ;;  %v3606_v53 = vld [vmem:[%s4391_s7 + $0x208] sm:$0xff]  }
  0xf1   : > { %3301 = vmatprep.subr.bf16.mxu0 %v3553_v60  ;;  %v3598_v44 = vld [vmem:[%s4391_s7 + $0x1b8] sm:$0xff]   ;;  %v3603_v50 = vld [vmem:[%s4391_s7 + $0x2c0] sm:$0xff]   ;;  %v3607_v54 = vld [vmem:[%s4391_s7 + $0x2c8] sm:$0xff]  }
  0xf2   : > { %3322 = vmatpush3.bf16.msra.mxu1 %v3552_v59  ;;  %v3604_v51 = vld [vmem:[%s4391_s7 + $0x280] sm:$0xff]   ;;  %v3608_v55 = vld [vmem:[%s4391_s7 + $0x288] sm:$0xff]   ;;  %v3609_v56 = vld [vmem:[%s4391_s7 + $0x250] sm:$0xff]  }
  0xf3   : > { %3323 = vmatprep.subr.bf16.mxu1 %v3555_v62  ;;  %v3610_v57 = vld [vmem:[%s4391_s7 + $0x210] sm:$0xff]   ;;  %v3613_v60 = vld [vmem:[%s4391_s7 + $0x258] sm:$0xff]   ;;  %v3619_v2 = vld [vmem:[%s4391_s7 + $0x2e0] sm:$0xff]  }
  0xf4   : > { %3302 = vmatpush3.bf16.msra.mxu0 %v3554_v61  ;;  %v3611_v58 = vld [vmem:[%s4391_s7 + $0x2d0] sm:$0xff]   ;;  %v3614_v61 = vld [vmem:[%s4391_s7 + $0x218] sm:$0xff]  }
  0xf5   : > { %3303 = vmatprep.subr.bf16.mxu0 %v3557_v1  ;;  %v3612_v59 = vld [vmem:[%s4391_s7 + $0x290] sm:$0xff]   ;;  %v3615_v62 = vld [vmem:[%s4391_s7 + $0x2d8] sm:$0xff]   ;;  %v3618_v1 = vld [vmem:[%s4391_s7 + $0x220] sm:$0xff]  }
  0xf6   : > { %3324 = vmatpush3.bf16.msra.mxu1 %v3556_v0  ;;  %v3616_v63 = vld [vmem:[%s4391_s7 + $0x298] sm:$0xff]   ;;  %v3617_v0 = vld [vmem:[%s4391_s7 + $0x260] sm:$0xff]  }
  0xf7   : > { %3325 = vmatprep.subr.bf16.mxu1 %v3559_v4  ;;  %v3621_v4 = vld [vmem:[%s4391_s7 + $0x268] sm:$0xff]  }
  0xf8   : > { %3304 = vmatpush3.bf16.msra.mxu0 %v3558_v3  ;;  %v3620_v3 = vld [vmem:[%s4391_s7 + $0x2a0] sm:$0xff]  }
  0xf9   : > { %3333 = vmatprep.subr.bf16.mxu0 %v3563_v8  ;;  %v3625_v8 = vld [vmem:[%s4391_s7 + $0x270] sm:$0xff]  }
  0xfa   : > { %3326 = vmatpush3.bf16.msra.mxu1 %v3562_v6  ;;  %v3623_v6 = vld [vmem:[%s4391_s7 + $0x2e8] sm:$0xff]  }
  0xfb   : > { %2679 = vmatmul.mubr.bf16.vlgmr.msra.gmra.mrb[0].mxu0 %v3125_v5  ;;  %3355 = vmatprep.subr.bf16.mxu1 %v3567_v12  ;;  %v3622_v5 = vld [vmem:[%s4391_s7 + $0x228] sm:$0xff]   ;;  %v3628_v12 = vld [vmem:[%s4391_s7 + $0x2b0] sm:$0xff]  }
  0xfc   : > { %3334 = vmatpush3.bf16.msra.mxu0 %v3566_v10  ;;  %2758 = vmatprep.mubr.bf16.mxu0 %v3130_v7  ;;  %v3624_v7 = vld [vmem:[%s4391_s7 + $0x2a8] sm:$0xff]   ;;  %v3627_v10 = vld [vmem:[%s4391_s7 + $0x2f0] sm:$0xff]  }
  0xfd   : > { %2719 = vmatmul.mubr.bf16.vlgmr.msra.gmra.mrb[0].mxu1 %v3127_v9  ;;  %3335 = vmatprep.subr.bf16.mxu0 %v3569_v14  ;;  %v3626_v9 = vld [vmem:[%s4391_s7 + $0x230] sm:$0xff]   ;;  %v3630_v14 = vld [vmem:[%s4391_s7 + $0x238] sm:$0xff]  }
  0xfe   : > { %3356 = vmatpush3.bf16.msra.mxu1 %v3568_v13  ;;  %2798 = vmatprep.mubr.bf16.mxu1 %v3132_v11  ;;  %v4523_v11 = vld [vmem:[%s4619_s0 + $0x30] sm:$0xff]  ;;  %v3629_v13 = vld [vmem:[%s4391_s7 + $0x278] sm:$0xff]  }
  0xff   : > { %3357 = vmatprep.subr.bf16.mxu1 %v3571_v16  ;;  %v3133_v16 = vcombine.low %v4473_v37, %v4473_v37  ;;  %v3654_v37 = vld [vmem:[%s4391_s7 + $0x320] sm:$0xff]  }
 0x100   : > { %3336 = vmatpush3.bf16.msra.mxu0 %v3570_v15  ;;  %v3631_v15 = vld [vmem:[%s4391_s7 + $0x2f8] sm:$0xff]  }
 0x101   : > { %3337 = vmatprep.subr.bf16.mxu0 %v3573_v18  ;;  %v3138_v18 = vcombine.high %v4523_v11, %v4523_v11 }
 0x102   : > { %3358 = vmatpush3.bf16.msra.mxu1 %v3572_v17  ;;  %v3634_v17 = vld [vmem:[%s4391_s7 + $0x2b8] sm:$0xff]  }
 0x103   : > { %3359 = vmatprep.subr.bf16.mxu1 %v3575_v20  ;;  %v3135_v20 = vcombine.low %v4480_v40, %v4480_v40  ;;  %v3657_v40 = vld [vmem:[%s4391_s7 + $0x368] sm:$0xff]  }
 0x104   : > { %3338 = vmatpush3.bf16.msra.mxu0 %v3574_v19  ;;  %v3635_v19 = vld [vmem:[%s4391_s7 + $0x340] sm:$0xff]  }
 0x105   : > { %3339 = vmatprep.subr.bf16.mxu0 %v3577_v22  ;;  %v3639_v22 = vld [vmem:[%s4391_s7 + $0x3c0] sm:$0xff]  }
 0x106   : > { %3360 = vmatpush3.bf16.msra.mxu1 %v3576_v21  ;;  %v3638_v21 = vld [vmem:[%s4391_s7 + $0x300] sm:$0xff]  }
 0x107   : > { %3361 = vmatprep.subr.bf16.mxu1 %v3579_v24  ;;  %v3641_v24 = vld [vmem:[%s4391_s7 + $0x348] sm:$0xff]  }
 0x108   : > { %3340 = vmatpush3.bf16.msra.mxu0 %v3578_v23  ;;  %v3640_v23 = vld [vmem:[%s4391_s7 + $0x380] sm:$0xff]  }
 0x109   : > { %3341 = vmatprep.subr.bf16.mxu0 %v3581_v26  ;;  %v3643_v26 = vld [vmem:[%s4391_s7 + $0x3c8] sm:$0xff]  }
 0x10a   : > { %3362 = vmatpush3.bf16.msra.mxu1 %v3580_v25  ;;  %v3642_v25 = vld [vmem:[%s4391_s7 + $0x308] sm:$0xff]  }
 0x10b   : > { %3363 = vmatprep.subr.bf16.mxu1 %v3583_v28  ;;  %v3645_v28 = vld [vmem:[%s4391_s7 + $0x350] sm:$0xff]  }
 0x10c   : > { %3342 = vmatpush3.bf16.msra.mxu0 %v3582_v27  ;;  %v3644_v27 = vld [vmem:[%s4391_s7 + $0x388] sm:$0xff]  }
 0x10d   : > { %3343 = vmatprep.subr.bf16.mxu0 %v3585_v30  ;;  %v3647_v30 = vld [vmem:[%s4391_s7 + $0x3d0] sm:$0xff]  }
 0x10e   : > { %3364 = vmatpush3.bf16.msra.mxu1 %v3584_v29  ;;  %v3646_v29 = vld [vmem:[%s4391_s7 + $0x310] sm:$0xff]  }
 0x10f   : > { %3365 = vmatprep.subr.bf16.mxu1 %v3587_v32  ;;  %v3649_v32 = vld [vmem:[%s4391_s7 + $0x358] sm:$0xff]  }
 0x110   : > { %3344 = vmatpush3.bf16.msra.mxu0 %v3586_v31  ;;  %v3648_v31 = vld [vmem:[%s4391_s7 + $0x390] sm:$0xff]  }
 0x111   : > { %3345 = vmatprep.subr.bf16.mxu0 %v3589_v34  ;;  %v3651_v34 = vld [vmem:[%s4391_s7 + $0x3d8] sm:$0xff]  }
 0x112   : > { %3366 = vmatpush3.bf16.msra.mxu1 %v3588_v33  ;;  %v3650_v33 = vld [vmem:[%s4391_s7 + $0x318] sm:$0xff]  }
 0x113   : > { %3367 = vmatprep.subr.bf16.mxu1 %v3591_v36  ;;  %v3653_v36 = vld [vmem:[%s4391_s7 + $0x360] sm:$0xff]  }
 0x114   : > { %3346 = vmatpush3.bf16.msra.mxu0 %v3590_v35  ;;  %v3652_v35 = vld [vmem:[%s4391_s7 + $0x398] sm:$0xff]  }
 0x115   : > { %3347 = vmatprep.subr.bf16.mxu0 %v3593_v39  ;;  %v3656_v39 = vld [vmem:[%s4391_s7 + $0x3a0] sm:$0xff]  }
 0x116   : > { %3368 = vmatpush3.bf16.msra.mxu1 %v3592_v38  ;;  %v3655_v38 = vld [vmem:[%s4391_s7 + $0x3e0] sm:$0xff]  }
 0x117   : > { %3369 = vmatprep.subr.bf16.mxu1 %v3595_v42  ;;  %v3659_v42 = vld [vmem:[%s4391_s7 + $0x3e8] sm:$0xff]  }
 0x118   : > { %3348 = vmatpush3.bf16.msra.mxu0 %v3594_v41  ;;  %v3658_v41 = vld [vmem:[%s4391_s7 + $0x328] sm:$0xff]  }
 0x119   : > { %3377 = vmatprep.subr.bf16.mxu0 %v3599_v46  ;;  %v3663_v46 = vld [vmem:[%s4391_s7 + $0x3f0] sm:$0xff]  }
 0x11a   : > { %3370 = vmatpush3.bf16.msra.mxu1 %v3598_v44  ;;  %v3661_v44 = vld [vmem:[%s4391_s7 + $0x370] sm:$0xff]  }
 0x11b   : > { %2759 = vmatmul.mubr.bf16.vlgmr.msra.gmra.mrb[4].mxu0 %v3129_v43  ;;  %3399 = vmatprep.subr.bf16.mxu1 %v3603_v50  ;;  %v3660_v43 = vld [vmem:[%s4391_s7 + $0x3a8] sm:$0xff]   ;;  %v3667_v50 = vld [vmem:[%s4391_s7 + $0x3f8] sm:$0xff]  }
 0x11c   : > { %3378 = vmatpush3.bf16.msra.mxu0 %v3602_v48  ;;  %2838 = vmatprep.mubr.bf16.mxu0 %v3134_v45  ;;  %v3662_v45 = vld [vmem:[%s4391_s7 + $0x330] sm:$0xff]   ;;  %v3665_v48 = vld [vmem:[%s4391_s7 + $0x378] sm:$0xff]  }
 0x11d   : > { %2799 = vmatmul.mubr.bf16.vlgmr.msra.gmra.mrb[4].mxu1 %v3131_v47  ;;  %3379 = vmatprep.subr.bf16.mxu0 %v3605_v52  ;;  %v3664_v47 = vld [vmem:[%s4391_s7 + $0x3b0] sm:$0xff]   ;;  %v3670_v52 = vld [vmem:[%s4391_s7 + $0x3b8] sm:$0xff]  }
 0x11e   : > { %3400 = vmatpush3.bf16.msra.mxu1 %v3604_v51  ;;  %2878 = vmatprep.mubr.bf16.mxu1 %v3136_v49  ;;  %v3666_v49 = vld [vmem:[%s4391_s7 + $0x338] sm:$0xff]   ;;  %v3137_v51 = vcombine.low %v4523_v11, %v4523_v11 }
 0x11f   : > { %3401 = vmatprep.subr.bf16.mxu1 %v3607_v54  ;;  %v1422_v54 = vld [vmem:[%s4619_s0 + $0x38] sm:$0xff] }
 0x120   : > { %3380 = vmatpush3.bf16.msra.mxu0 %v3606_v53  ;;  %v3671_v53 = vld [vmem:[%s4391_s7 + $0x440] sm:$0xff]  }
 0x121   : > { %3381 = vmatprep.subr.bf16.mxu0 %v3609_v56  ;;  %v3140_v56 = vcombine.high %v1422_v54, %v1422_v54 }
 0x122   : > { %3402 = vmatpush3.bf16.msra.mxu1 %v3608_v55  ;;  %v3139_v55 = vcombine.low %v1422_v54, %v1422_v54 }
 0x123   : > { %3403 = vmatprep.subr.bf16.mxu1 %v3611_v58  ;;  %v3675_v58 = vld [vmem:[%s4391_s7 + $0x448] sm:$0xff]  }
 0x124   : > { %3382 = vmatpush3.bf16.msra.mxu0 %v3610_v57  ;;  %v3674_v57 = vld [vmem:[%s4391_s7 + $0x400] sm:$0xff]  }
 0x125   : > { %3383 = vmatprep.subr.bf16.mxu0 %v3613_v60  ;;  %v3677_v60 = vld [vmem:[%s4391_s7 + $0x450] sm:$0xff]  }
 0x126   : > { %3404 = vmatpush3.bf16.msra.mxu1 %v3612_v59  ;;  %v3676_v59 = vld [vmem:[%s4391_s7 + $0x408] sm:$0xff]  }
 0x127   : > { %3405 = vmatprep.subr.bf16.mxu1 %v3615_v62  ;;  %v3679_v62 = vld [vmem:[%s4391_s7 + $0x458] sm:$0xff]  }
 0x128   : > { %3384 = vmatpush3.bf16.msra.mxu0 %v3614_v61  ;;  %v3678_v61 = vld [vmem:[%s4391_s7 + $0x410] sm:$0xff]  }
 0x129   : > { %3385 = vmatprep.subr.bf16.mxu0 %v3617_v0  ;;  %v3681_v0 = vld [vmem:[%s4391_s7 + $0x460] sm:$0xff]  }
 0x12a   : > { %3406 = vmatpush3.bf16.msra.mxu1 %v3616_v63  ;;  %v3680_v63 = vld [vmem:[%s4391_s7 + $0x418] sm:$0xff]  }
 0x12b   : > { %3407 = vmatprep.subr.bf16.mxu1 %v3619_v2  ;;  %v1423_v2 = vld [vmem:[%s4619_s0 + $0x40] sm:$0xff] }
 0x12c   : > { %3386 = vmatpush3.bf16.msra.mxu0 %v3618_v1  ;;  %v3682_v1 = vld [vmem:[%s4391_s7 + $0x420] sm:$0xff]  }
 0x12d   : > { %3387 = vmatprep.subr.bf16.mxu0 %v3621_v4  ;;  %v3142_v4 = vcombine.high %v1423_v2, %v1423_v2 }
 0x12e   : > { %3408 = vmatpush3.bf16.msra.mxu1 %v3620_v3  ;;  %v3683_v3 = vld [vmem:[%s4391_s7 + $0x468] sm:$0xff]  }
 0x12f   : > { %3409 = vmatprep.subr.bf16.mxu1 %v3623_v6  ;;  %v3685_v6 = vld [vmem:[%s4391_s7 + $0x470] sm:$0xff]  }
 0x130   : > { %3388 = vmatpush3.bf16.msra.mxu0 %v3622_v5  ;;  %v3684_v5 = vld [vmem:[%s4391_s7 + $0x428] sm:$0xff]  }
 0x131   : > { %3389 = vmatprep.subr.bf16.mxu0 %v3625_v8  ;;  %v3687_v8 = vld [vmem:[%s4391_s7 + $0x478] sm:$0xff]  }
 0x132   : > { %3410 = vmatpush3.bf16.msra.mxu1 %v3624_v7  ;;  %v3686_v7 = vld [vmem:[%s4391_s7 + $0x430] sm:$0xff]  }
 0x133   : > { %3411 = vmatprep.subr.bf16.mxu1 %v3627_v10  ;;  %v3141_v10 = vcombine.low %v1423_v2, %v1423_v2 }
 0x134   : > { %3390 = vmatpush3.bf16.msra.mxu0 %v3626_v9  ;;  %v3688_v9 = vld [vmem:[%s4391_s7 + $0x438] sm:$0xff]   ;;  %s1413_s7 = scalar_lea.vmem %s4622_s3, %s3123_s4 }
 0x135   : > { %3391 = vmatprep.subr.bf16.mxu0 %v3629_v13 }
 0x136   : > { %3412 = vmatpush3.bf16.msra.mxu1 %v3628_v12  ;;  %v3124_v12 = vld [vmem:[%s1405_s30] ss:$0 sm:$0xff] }
 0x137   : > { %3413 = vmatprep.subr.bf16.mxu1 %v3631_v15 }
 0x138   : > { %3392 = vmatpush3.bf16.msra.mxu0 %v3630_v14 }
 0x139   : > { %3421 = vmatprep.subr.bf16.mxu0 %v3635_v19 }
 0x13a   : > { %3414 = vmatpush3.bf16.msra.mxu1 %v3634_v17 }
 0x13b   : > { %2839 = vmatmul.mubr.bf16.vlgmr.msra.gmra.mrb[8].mxu0 %v3133_v16  ;;  %3443 = vmatprep.subr.bf16.mxu1 %v3639_v22 }
 0x13c   : > { %3422 = vmatpush3.bf16.msra.mxu0 %v3638_v21  ;;  %2918 = vmatprep.mubr.bf16.mxu0 %v3138_v18 }
 0x13d   : > { %2879 = vmatmul.mubr.bf16.vlgmr.msra.gmra.mrb[8].mxu1 %v3135_v20  ;;  %3423 = vmatprep.subr.bf16.mxu0 %v3641_v24 }
 0x13e   : > { %3444 = vmatpush3.bf16.msra.mxu1 %v3640_v23  ;;  %2958 = vmatprep.mubr.bf16.mxu1 %v3140_v56 }
 0x13f   : > { %3445 = vmatprep.subr.bf16.mxu1 %v3643_v26 }
 0x140   : > { %3424 = vmatpush3.bf16.msra.mxu0 %v3642_v25 }
 0x141   : > { %3425 = vmatprep.subr.bf16.mxu0 %v3645_v28 }
 0x142   : > { %3446 = vmatpush3.bf16.msra.mxu1 %v3644_v27 }
 0x143   : > { %3447 = vmatprep.subr.bf16.mxu1 %v3647_v30 }
 0x144   : > { %3426 = vmatpush3.bf16.msra.mxu0 %v3646_v29 }
 0x145   : > { %3427 = vmatprep.subr.bf16.mxu0 %v3649_v32 }
 0x146   : > { %3448 = vmatpush3.bf16.msra.mxu1 %v3648_v31 }
 0x147   : > { %3449 = vmatprep.subr.bf16.mxu1 %v3651_v34 }
 0x148   : > { %3428 = vmatpush3.bf16.msra.mxu0 %v3650_v33 }
 0x149   : > { %3429 = vmatprep.subr.bf16.mxu0 %v3653_v36 }
 0x14a   : > { %3450 = vmatpush3.bf16.msra.mxu1 %v3652_v35 }
 0x14b   : > { %3451 = vmatprep.subr.bf16.mxu1 %v3655_v38 }
 0x14c   : > { %3430 = vmatpush3.bf16.msra.mxu0 %v3654_v37 }
 0x14d   : > { %3431 = vmatprep.subr.bf16.mxu0 %v3657_v40 }
 0x14e   : > { %3452 = vmatpush3.bf16.msra.mxu1 %v3656_v39 }
 0x14f   : > { %3453 = vmatprep.subr.bf16.mxu1 %v3659_v42 }
 0x150   : > { %3432 = vmatpush3.bf16.msra.mxu0 %v3658_v41 }
 0x151   : > { %3433 = vmatprep.subr.bf16.mxu0 %v3661_v44 }
 0x152   : > { %3454 = vmatpush3.bf16.msra.mxu1 %v3660_v43 }
 0x153   : > { %3455 = vmatprep.subr.bf16.mxu1 %v3663_v46 }
 0x154   : > { %3434 = vmatpush3.bf16.msra.mxu0 %v3662_v45 }
 0x155   : > { %3435 = vmatprep.subr.bf16.mxu0 %v3665_v48 }
 0x156   : > { %3456 = vmatpush3.bf16.msra.mxu1 %v3664_v47 }
 0x157   : > { %3457 = vmatprep.subr.bf16.mxu1 %v3667_v50 }
 0x158   : > { %3436 = vmatpush3.bf16.msra.mxu0 %v3666_v49 }
 0x159   : > { %3465 = vmatprep.subr.bf16.mxu0 %v3671_v53 }
 0x15a   : > { %3458 = vmatpush3.bf16.msra.mxu1 %v3670_v52 }
 0x15b   : > { %2919 = vmatmul.mubr.bf16.vlgmr.msra.gmra.mrb[12].mxu0 %v3137_v51 }
 0x15c   : > { %3466 = vmatpush3.bf16.msra.mxu0 %v3674_v57  ;;  %2998 = vmatprep.mubr.bf16.mxu0 %v3142_v4 }
 0x15d   : > { %2959 = vmatmul.mubr.bf16.vlgmr.msra.gmra.mrb[12].mxu1 %v3139_v55  ;;  %3467 = vmatprep.subr.bf16.mxu0 %v3675_v58 }
 0x160   : > { %3468 = vmatpush3.bf16.msra.mxu0 %v3676_v59 }
 0x161   : > { %3469 = vmatprep.subr.bf16.mxu0 %v3677_v60 }
 0x164   : > { %3470 = vmatpush3.bf16.msra.mxu0 %v3678_v61 }
 0x165   : > { %3471 = vmatprep.subr.bf16.mxu0 %v3679_v62 }
 0x168   : > { %3472 = vmatpush3.bf16.msra.mxu0 %v3680_v63 }
 0x169   : > { %3473 = vmatprep.subr.bf16.mxu0 %v3681_v0 }
 0x16c   : > { %3474 = vmatpush3.bf16.msra.mxu0 %v3682_v1 }
 0x16d   : > { %3475 = vmatprep.subr.bf16.mxu0 %v3683_v3 }
 0x170   : > { %3476 = vmatpush3.bf16.msra.mxu0 %v3684_v5 }
 0x171   : > { %3477 = vmatprep.subr.bf16.mxu0 %v3685_v6 }
 0x174   : > { %3478 = vmatpush3.bf16.msra.mxu0 %v3686_v7 }
 0x175   : > { %3479 = vmatprep.subr.bf16.mxu0 %v3687_v8 }
 0x178   : > { %3480 = vmatpush3.bf16.msra.mxu0 %v3688_v9 }
 0x17b   : > { %2999 = vmatmul.mubr.bf16.vlgmr.msra.gmra.mrb[16].mxu0 %v3141_v10 }
 0x1ce   : > { %v3305_v11 = vpop.f32.mrb[0].mxu0 }
 0x1cf   : > { %v3306_v13 = vpop.f32.mrb[1].mxu0 }
 0x1d0   : > { %v3307_v14 = vadd.f32 %v3306_v13, %v3305_v11  ;;  %v3308_v15 = vpop.f32.mrb[2].mxu0  ;;  %v3327_v16 = vpop.f32.mrb[0].mxu1 }
 0x1d1   : > { %v3309_v17 = vpop.f32.mrb[3].mxu0  ;;  %v3328_v18 = vpop.f32.mrb[1].mxu1 }
 0x1d2   : > { %v2681_v19 = vadd.f32 %v3307_v14, %v3124_v12  ;;  %v3329_v20 = vadd.f32 %v3328_v18, %v3327_v16  ;;  %v3330_v21 = vpop.f32.mrb[2].mxu1 }
 0x1d3   : > { %v3331_v22 = vpop.f32.mrb[3].mxu1 }
 0x1d4   : > { %v2721_v23 = vadd.f32 %v3329_v20, %v2681_v19 }
 0x1ee   : > { %v3349_v24 = vpop.f32.mrb[4].mxu0 }
 0x1ef   : > { %v3350_v25 = vpop.f32.mrb[5].mxu0 }
 0x1f0   : > { %v3351_v26 = vadd.f32 %v3350_v25, %v3349_v24  ;;  %v3352_v27 = vpop.f32.mrb[6].mxu0  ;;  %v3371_v28 = vpop.f32.mrb[4].mxu1 }
 0x1f1   : > { %v3353_v29 = vpop.f32.mrb[7].mxu0  ;;  %v3372_v30 = vpop.f32.mrb[5].mxu1 }
 0x1f2   : > { %v2761_v31 = vadd.f32 %v3351_v26, %v2721_v23  ;;  %v3373_v32 = vadd.f32 %v3372_v30, %v3371_v28  ;;  %v3374_v33 = vpop.f32.mrb[6].mxu1 }
 0x1f3   : > { %v3375_v34 = vpop.f32.mrb[7].mxu1 }
 0x1f4   : > { %v2801_v35 = vadd.f32 %v3373_v32, %v2761_v31 }
 0x20e   : > { %v3393_v36 = vpop.f32.mrb[8].mxu0 }
 0x20f   : > { %v3394_v37 = vpop.f32.mrb[9].mxu0 }
 0x210   : > { %v3395_v38 = vadd.f32 %v3394_v37, %v3393_v36  ;;  %v3396_v39 = vpop.f32.mrb[10].mxu0  ;;  %v3415_v40 = vpop.f32.mrb[8].mxu1 }
 0x211   : > { %v3397_v41 = vpop.f32.mrb[11].mxu0  ;;  %v3416_v42 = vpop.f32.mrb[9].mxu1 }
 0x212   : > { %v2841_v43 = vadd.f32 %v3395_v38, %v2801_v35  ;;  %v3417_v44 = vadd.f32 %v3416_v42, %v3415_v40  ;;  %v3418_v45 = vpop.f32.mrb[10].mxu1 }
 0x213   : > { %v3419_v46 = vpop.f32.mrb[11].mxu1 }
 0x214   : > { %v2881_v47 = vadd.f32 %v3417_v44, %v2841_v43 }
 0x22e   : > { %v3437_v48 = vpop.f32.mrb[12].mxu0 }
 0x22f   : > { %v3438_v49 = vpop.f32.mrb[13].mxu0 }
 0x230   : > { %v3439_v50 = vadd.f32 %v3438_v49, %v3437_v48  ;;  %v3440_v51 = vpop.f32.mrb[14].mxu0  ;;  %v3459_v52 = vpop.f32.mrb[12].mxu1 }
 0x231   : > { %v3441_v53 = vpop.f32.mrb[15].mxu0  ;;  %v3460_v55 = vpop.f32.mrb[13].mxu1 }
 0x232   : > { %v2921_v54 = vadd.f32 %v3439_v50, %v2881_v47  ;;  %v3461_v56 = vadd.f32 %v3460_v55, %v3459_v52  ;;  %v3462_v57 = vpop.f32.mrb[14].mxu1 }
 0x233   : > { %v3463_v58 = vpop.f32.mrb[15].mxu1 }
 0x234   : > { %v2961_v59 = vadd.f32 %v3461_v56, %v2921_v54 }
 0x24e   : > { %v3481_v60 = vpop.f32.mrb[16].mxu0 }
 0x24f   : > { %v3482_v61 = vpop.f32.mrb[17].mxu0 }
 0x250   : > { %v3483_v62 = vadd.f32 %v3482_v61, %v3481_v60  ;;  %v3484_v63 = vpop.f32.mrb[18].mxu0 }
 0x251   : > { %v3485_v0 = vpop.f32.mrb[19].mxu0 }
 0x252   : > { %v3001_v1 = vadd.f32 %v3483_v62, %v2961_v59 }
 0x254   : > { %v3006_v2 = vmax.f32 %v3001_v1, 0.0 }
 0x256   : > { %3007 = vst [vmem:[%s1413_s7] sm:$0xff] %v3006_v2 }
 0x257 PF: > { %s13_s16 = sadd.s32 1, %s3729_s16   ;;  %s4623_s12 = smov %s3717_s13 }
 0x258   : > { %p10_p10 = scmp.ge.s32.totalorder %s13_s16, 6   ;;  %s4624_s13 = smov %s3786_s20 }
 0x259   : > { %s4625_s14 = smov %s3725_s15  ;;  %s4626_s15 = smov %s4628_s17 }
 0x25a   :  { %12 = sbr.rel (!%p10_p10) target bundleno = 3 (0x3), region = 114 }

// kernel: _lambda_.18
= control target key start
LH: loop header
LB: loop body
LE: loop exit
PB: predicated region body
PF: predicated region fallthrough
CT: control target
= control target key end

     0   :  { %s69_s0 = inlined_call_operand.vmem [shape: f32[8,128], index: 0, kind: input, shape index: {}]   ;;  %s70_s1 = inlined_call_operand.vmem [shape: f32[8,128], index: 1, kind: input, shape index: {}]   ;;  %s71_s2 = inlined_call_operand.vmem [shape: f32[8,128], index: 2, kind: input, shape index: {}]   ;;  %s72_s3 = inlined_call_operand.vmem [shape: f32[8,128], index: 3, kind: input, shape index: {}]   ;;  %s73_s4 = inlined_call_operand.vmem [shape: f32[8,128], index: 4, kind: output, shape index: {}]  }
   0x1   :  { %v17_v0 = vld [vmem:[%s69_s0] sm:$0xff] }
   0x2   :  { %v18_v1 = vld [vmem:[%s70_s1] sm:$0xff] }
   0x3   :  { %v20_v2 = vld [vmem:[%s71_s2] sm:$0xff]  ;;  %v19_v3 = vmax.f32 %v17_v0, %v18_v1 }
   0x4   :  { %v21_v4 = vld [vmem:[%s72_s3] sm:$0xff] }
   0x5   :  { %v22_v5 = vmax.f32 %v20_v2, %v21_v4 }
   0x7   :  { %v23_v6 = vmax.f32 %v19_v3, %v22_v5 }
   0x9   :  { %24 = vst [vmem:[%s73_s4] sm:$0xff] %v23_v6 }

// kernel: _lambda_.19
= control target key start
LH: loop header
LB: loop body
LE: loop exit
PB: predicated region body
PF: predicated region fallthrough
CT: control target
= control target key end

     0   :  { %v100_v30 = vlaneseq  ;;  %v541_v34 = vmov 1966171168   ;;  %s677_s0 = inlined_call_operand.vmem [shape: bf16[2,512], index: 0, kind: input, shape index: {}]   ;;  %s678_s1 = inlined_call_operand.vmem [shape: bf16[512,10], index: 1, kind: input, shape index: {}]   ;;  %s679_s2 = inlined_call_operand.vmem [shape: f32[1,10], index: 2, kind: input, shape index: {}]   ;;  %s680_s3 = inlined_call_operand.hbm [shape: f32[2,10], index: 3, kind: output, shape index: {}]  }
   0x1   :  { %v485_v0 = vld [vmem:[%s678_s1 + $0x40] sm:$0xff]   ;;  %v489_v4 = vld [vmem:[%s678_s1 + $0x48] sm:$0xff]   ;;  %v493_v8 = vld [vmem:[%s678_s1 + $0x50] sm:$0xff]   ;;  %v98_v35 = vunpack.c.l.s4 %v541_v34 }
   0x2   :  { %v486_v1 = vld [vmem:[%s678_s1 + $0xc0] sm:$0xff]   ;;  %439 = vmatprep.subr.bf16.mxu0 %v485_v0  ;;  %v490_v5 = vld [vmem:[%s678_s1 + $0xc8] sm:$0xff]   ;;  %v494_v9 = vld [vmem:[%s678_s1 + $0xd0] sm:$0xff]   ;;  %v101_v36 = vshrl.u32 %v100_v30, 7 }
   0x3   :  { %v487_v2 = vld [vmem:[%s678_s1] sm:$0xff]   ;;  %461 = vmatprep.subr.bf16.mxu1 %v486_v1  ;;  %v491_v6 = vld [vmem:[%s678_s1 + $0x8] sm:$0xff]   ;;  %v495_v10 = vld [vmem:[%s678_s1 + $0x10] sm:$0xff]  }
   0x4   :  { %v488_v3 = vld [vmem:[%s678_s1 + $0x80] sm:$0xff]   ;;  %440 = vmatpush3.bf16.msra.mxu0 %v487_v2  ;;  %v492_v7 = vld [vmem:[%s678_s1 + $0x88] sm:$0xff]   ;;  %v496_v11 = vld [vmem:[%s678_s1 + $0x90] sm:$0xff]  }
   0x5   :  { %462 = vmatpush3.bf16.msra.mxu1 %v488_v3  ;;  %441 = vmatprep.subr.bf16.mxu0 %v489_v4  ;;  %v497_v12 = vld [vmem:[%s678_s1 + $0x58] sm:$0xff]   ;;  %v501_v16 = vld [vmem:[%s678_s1 + $0x60] sm:$0xff]   ;;  %v505_v20 = vld [vmem:[%s678_s1 + $0x68] sm:$0xff]  }
   0x6   :  { %463 = vmatprep.subr.bf16.mxu1 %v490_v5  ;;  %v498_v13 = vld [vmem:[%s678_s1 + $0xd8] sm:$0xff]   ;;  %v502_v17 = vld [vmem:[%s678_s1 + $0xe0] sm:$0xff]   ;;  %v506_v21 = vld [vmem:[%s678_s1 + $0xe8] sm:$0xff]  }
   0x7   :  { %v499_v14 = vld [vmem:[%s678_s1 + $0x18] sm:$0xff]   ;;  %v503_v18 = vld [vmem:[%s678_s1 + $0x20] sm:$0xff]   ;;  %v507_v22 = vld [vmem:[%s678_s1 + $0x28] sm:$0xff]  }
   0x8   :  { %442 = vmatpush3.bf16.msra.mxu0 %v491_v6  ;;  %v500_v15 = vld [vmem:[%s678_s1 + $0x98] sm:$0xff]   ;;  %v504_v19 = vld [vmem:[%s678_s1 + $0xa0] sm:$0xff]   ;;  %v508_v23 = vld [vmem:[%s678_s1 + $0xa8] sm:$0xff]  }
   0x9   :  { %464 = vmatpush3.bf16.msra.mxu1 %v492_v7  ;;  %443 = vmatprep.subr.bf16.mxu0 %v493_v8  ;;  %v509_v24 = vld [vmem:[%s678_s1 + $0x70] sm:$0xff]   ;;  %v513_v28 = vld [vmem:[%s678_s1 + $0x78] sm:$0xff]   ;;  %v406_v33 = vld.sshfl [vmem:[%s677_s0] sm:$0x33 pattern:$0x75316420] }
   0xa   :  { %465 = vmatprep.subr.bf16.mxu1 %v494_v9  ;;  %v510_v25 = vld [vmem:[%s678_s1 + $0xf0] sm:$0xff]   ;;  %v514_v29 = vld [vmem:[%s678_s1 + $0xf8] sm:$0xff]  }
   0xb   :  { %v511_v26 = vld [vmem:[%s678_s1 + $0x30] sm:$0xff]   ;;  %v515_v31 = vld [vmem:[%s678_s1 + $0x38] sm:$0xff]  }
   0xc   :  { %444 = vmatpush3.bf16.msra.mxu0 %v495_v10  ;;  %v512_v27 = vld [vmem:[%s678_s1 + $0xb0] sm:$0xff]   ;;  %v516_v32 = vld [vmem:[%s678_s1 + $0xb8] sm:$0xff]  }
   0xd   :  { %466 = vmatpush3.bf16.msra.mxu1 %v496_v11  ;;  %445 = vmatprep.subr.bf16.mxu0 %v497_v12 }
   0xe   :  { %467 = vmatprep.subr.bf16.mxu1 %v498_v13 }
  0x10   :  { %446 = vmatpush3.bf16.msra.mxu0 %v499_v14 }
  0x11   :  { %468 = vmatpush3.bf16.msra.mxu1 %v500_v15  ;;  %447 = vmatprep.subr.bf16.mxu0 %v501_v16 }
  0x12   :  { %469 = vmatprep.subr.bf16.mxu1 %v502_v17 }
  0x14   :  { %448 = vmatpush3.bf16.msra.mxu0 %v503_v18 }
  0x15   :  { %470 = vmatpush3.bf16.msra.mxu1 %v504_v19  ;;  %449 = vmatprep.subr.bf16.mxu0 %v505_v20 }
  0x16   :  { %471 = vmatprep.subr.bf16.mxu1 %v506_v21 }
  0x18   :  { %450 = vmatpush3.bf16.msra.mxu0 %v507_v22 }
  0x19   :  { %472 = vmatpush3.bf16.msra.mxu1 %v508_v23  ;;  %451 = vmatprep.subr.bf16.mxu0 %v509_v24 }
  0x1a   :  { %473 = vmatprep.subr.bf16.mxu1 %v510_v25 }
  0x1c   :  { %452 = vmatpush3.bf16.msra.mxu0 %v511_v26 }
  0x1d   :  { %474 = vmatpush3.bf16.msra.mxu1 %v512_v27  ;;  %453 = vmatprep.subr.bf16.mxu0 %v513_v28 }
  0x1e   :  { %475 = vmatprep.subr.bf16.mxu1 %v514_v29 }
  0x20   :  { %454 = vmatpush3.bf16.msra.mxu0 %v515_v31 }
  0x21   :  { %476 = vmatpush3.bf16.msra.mxu1 %v516_v32 }
  0x22   :  { %8 = vsyncpa [#allocation3], 0  ;;  %v96_v37 = vcombine.high %v406_v33, %v406_v33  ;;  %v99_v38 = vunpack.c.0.s8 %v98_v35  ;;  %v405_v45 = vld [vmem:[%s679_s2] ss:$0 sm:$0xff]  ;;  %s542_s0 = smov [#allocation2]   ;;  %vm389_vm0 = vcmask 74752  }
  0x23   :  { %s397_s25 = sshll.u32 %s542_s0, 4  ;;  %s398_s25 = int_to_ptr.vmem [resolvable:$true] %s397_s25 }
  0x24   :  { %v102_v39 = vsub.s32 %v99_v38, %v101_v36  ;;  %s517_s26 = scalar_lea.vmem %s398_s25, 32  ;;  %p522_p1 = scmp.lt.s32.totalorder %s398_s25, %s398_s25 }
  0x25   :  { %p518_p0 = scmp.ne.s32.totalorder %s398_s25, %s517_s26  ;;  %p523_p2 = scmp.lt.s32.totalorder %s517_s26, %s517_s26 }
  0x26   :  { %v110_v40 = vrot.slane %v96_v37, %v102_v39  ;;  %v103_v41 = vrot.slane %v406_v33, %v102_v39 }
  0x27   :  { %p524_p3 = por %p523_p2, %p522_p1 }
  0x28   :  { %341 = vmatprep.mubr.bf16.mxu0 %v110_v40  ;;  %v112_v42 = vcombine.high %v110_v40, %v110_v40  ;;  %v111_v43 = vcombine.high %v103_v41, %v103_v41 }
  0x29   :  { %342 = vmatmul.mubr.bf16.vlgmr.msra.gmra.mrb[0].mxu0 %v103_v41  ;;  %p525_p4 = pnand %p524_p3, %p518_p0 }
  0x2a   :  { %381 = vmatprep.mubr.bf16.mxu1 %v112_v42 }
  0x2b   :  { %382 = vmatmul.mubr.bf16.vlgmr.msra.gmra.mrb[0].mxu1 %v111_v43 }
  0xfc   :  { %v455_v44 = vpop.f32.mrb[0].mxu0 }
  0xfd   :  { %v456_v46 = vpop.f32.mrb[1].mxu0 }
  0xfe   :  { %v477_v47 = vpop.f32.mrb[0].mxu1  ;;  %v457_v48 = vadd.f32 %v456_v46, %v455_v44  ;;  %v458_v49 = vpop.f32.mrb[2].mxu0 }
  0xff   :  { %v478_v50 = vpop.f32.mrb[1].mxu1  ;;  %v459_v51 = vpop.f32.mrb[3].mxu0 }
 0x100   :  { %v344_v52 = vadd.f32 %v457_v48, %v405_v45  ;;  %v479_v53 = vadd.f32 %v478_v50, %v477_v47  ;;  %v480_v54 = vpop.f32.mrb[2].mxu1 }
 0x101   :  { %v481_v55 = vpop.f32.mrb[3].mxu1 }
 0x102   :  { %v384_v56 = vadd.f32 %v479_v53, %v344_v52 }
 0x104   :  { %390 = vst.msk [vmem:[#allocation2] sm:$0x3] %vm389_vm0, %v384_v56 }
 0x105   :  { %528 = shalt.err (!%p525_p4)
}
 0x106   :  { %s529_s28 = scalar_lea.hbm %s680_s3, 32 }
 0x107   :  { %p530_p5 = scmp.ne.s32.totalorder %s680_s3, %s529_s28  ;;  %p533_p6 = scmp.lt.u32.totalorder %s529_s28, %s680_s3 }
 0x109   :  { %p535_p7 = pnand %p533_p6, %p530_p5 }
 0x10b   :  { %538 = shalt.err (!%p535_p7)
}
 0x10c   :  { %400 = dma.vmem_to_hbm [thread:$0]  %s398_s25, 32, %s680_s3, [#allocation3]  }
 0x10d   :  { %539 = dma.done.wait [#allocation3], 32  }
 0x10e   :  { %540 = vsyncadd [#allocation3], 4294967264 }
 0x10f   :  { %404 = vsyncpa [#allocation3], 1 }

</bundles_post_ra>
